<compile_context>
chip_gen: v6e
topology: v6e:2x2x1
jax: 0.10.0
libtpu: 0.0.40
codegen_flags: <defaults>
</compile_context>

<pallas_src>
import functools
import math

import jax
import jax.numpy as jnp
from jax.experimental import pallas as pl
from jax.experimental.pallas import tpu as pltpu

# ---------------- scaled-down BERT config (structure mirrors TRAIN_CLASSIFICATION_CONFIG) ----
CFG = dict(
    vocab_size=64,               # TRAIN_TOKEN_VOCAB_COUNT, scaled down
    hidden_size=128,             # 768 -> 128
    num_hidden_layers=2,         # 12 -> 2
    num_attention_heads=4,       # 12 -> 4  (head_dim = 32)
    intermediate_size=256,       # 3072 -> 256
    max_position_embeddings=16,  # 512 -> 16
    type_vocab_size=1,
    num_labels=16,               # 219 -> 16
    layer_norm_eps=1e-12,
    initializer_range=0.02,
)

_VMEM = pl.BlockSpec(memory_space=pltpu.MemorySpace.VMEM)


# ---------------- in-kernel helpers ----------------------------------------------------------
def _ln(x, g, b, eps):
    mu = jnp.mean(x, axis=-1, keepdims=True)
    xc = x - mu
    var = jnp.mean(xc * xc, axis=-1, keepdims=True)
    return xc * jax.lax.rsqrt(var + eps) * g + b


def _gelu(x):
    # TODO(synk): HF 'gelu' for BERT is erf-exact; tanh approximation used for robust TPU lowering.
    c = math.sqrt(2.0 / math.pi)
    return 0.5 * x * (1.0 + jnp.tanh(c * (x + 0.044715 * x * x * x)))


# ---------------- single fused kernel: emb-LN + 2 encoder layers + pooler + CE ---------------
def _bert_fused_kernel(*refs, nl, nh, dh, B, S, eps):
    H = nh * dh
    emb_ref, emb_ln_g_ref, emb_ln_b_ref = refs[0], refs[1], refs[2]
    layer_refs = refs[3:3 + 12 * nl]
    (pool_w_ref, pool_b_ref, cls_w_ref, cls_b_ref,
     labels_ref) = refs[3 + 12 * nl:3 + 12 * nl + 5]
    o_ref = refs[3 + 12 * nl + 5]
    ctx_ref = refs[3 + 12 * nl + 6]          # (B*S, H) f32 VMEM scratch for per-head contexts

    # embeddings LayerNorm (fused here; no standalone launch)
    x = _ln(emb_ref[...], emb_ln_g_ref[...], emb_ln_b_ref[...], eps)       # (B*S, H) f32

    for l in range(nl):
        (wqkv_ref, bqkv_ref, wo_ref, bo_ref, ln1g_ref, ln1b_ref,
         wi_ref, bi_ref, wf_ref, bf_ref, ln2g_ref, ln2b_ref) = layer_refs[12 * l:12 * (l + 1)]

        # fused Q|K|V projection over the whole (B*S, H) slab; 1/sqrt(dh) pre-folded into Wq
        qkv = jnp.dot(x.astype(jnp.bfloat16), wqkv_ref[...],
                      preferred_element_type=jnp.float32) + bqkv_ref[...]   # (B*S, 3H) f32

        # per-(batch, head) attention; each head's context lands in its lane slice of ctx_ref
        # so the output projection below is one lane-dense K=H matmul.
        for b in range(B):
            r0, r1 = b * S, (b + 1) * S
            for h in range(nh):
                c0 = h * dh
                qh = qkv[r0:r1, c0:c0 + dh].astype(jnp.bfloat16)            # (S, dh)
                kh = qkv[r0:r1, H + c0:H + c0 + dh].astype(jnp.bfloat16)
                vh = qkv[r0:r1, 2 * H + c0:2 * H + c0 + dh].astype(jnp.bfloat16)
                s = jax.lax.dot_general(qh, kh, (((1,), (1,)), ((), ())),
                                        preferred_element_type=jnp.float32)  # (S, S) f32
                m = jnp.max(s, axis=-1, keepdims=True)
                p = jnp.exp(s - m)
                p = p * pl.reciprocal(jnp.sum(p, axis=-1, keepdims=True), approx=True)
                ctx_ref[r0:r1, c0:c0 + dh] = jnp.dot(
                    p.astype(jnp.bfloat16), vh, preferred_element_type=jnp.float32)

        # single (B*S, H) @ (H, H) output projection + residual + LayerNorm 1
        attn = jnp.dot(ctx_ref[...].astype(jnp.bfloat16), wo_ref[...],
                       preferred_element_type=jnp.float32) + bo_ref[...]
        h1 = _ln(attn + x, ln1g_ref[...], ln1b_ref[...], eps)

        # feed-forward (GELU) + residual + LayerNorm 2
        inter = _gelu(jnp.dot(h1.astype(jnp.bfloat16), wi_ref[...],
                              preferred_element_type=jnp.float32) + bi_ref[...])
        ffn = jnp.dot(inter.astype(jnp.bfloat16), wf_ref[...],
                      preferred_element_type=jnp.float32) + bf_ref[...]
        x = _ln(ffn + h1, ln2g_ref[...], ln2b_ref[...], eps)

    # pooler on CLS rows, classifier, cross-entropy (mean over batch)
    cls = x.reshape(B, S, H)[:, 0, :]                                       # (B, H)
    pooled = jnp.tanh(jnp.dot(cls.astype(jnp.bfloat16), pool_w_ref[...],
                              preferred_element_type=jnp.float32) + pool_b_ref[...])
    logits = jnp.dot(pooled.astype(jnp.bfloat16), cls_w_ref[...],
                     preferred_element_type=jnp.float32) + cls_b_ref[...]   # (B, L)
    m = jnp.max(logits, axis=-1, keepdims=True)
    z = logits - m
    lse = jnp.log(jnp.sum(jnp.exp(z), axis=-1, keepdims=True))
    logp = z - lse                                                          # (B, L)
    cols = jax.lax.broadcasted_iota(jnp.int32, logits.shape, 1)
    nll = -jnp.sum(jnp.where(cols == labels_ref[...], logp, 0.0),
                   axis=-1, keepdims=True)                                  # (B, 1)
    o_ref[...] = jnp.sum(nll, axis=0, keepdims=True) * (1.0 / B)


# ---------------- parameter init (deterministic, BERT-style shapes, bf16 matmul weights) -----
def init_params(key, cfg):
    H = cfg["hidden_size"]
    I = cfg["intermediate_size"]
    L = cfg["num_labels"]
    nh = cfg["num_attention_heads"]
    dh = H // nh
    std = cfg["initializer_range"]
    keys = iter(jax.random.split(key, 64))

    def nrm_f32(shape):
        return std * jax.random.normal(next(keys), shape, jnp.float32)

    def nrm(shape, dtype=jnp.float32):
        return nrm_f32(shape).astype(dtype)

    def zeros(shape):
        return jnp.zeros(shape, jnp.float32)

    def ones(shape):
        return jnp.ones(shape, jnp.float32)

    params = dict(
        word_emb=nrm((cfg["vocab_size"], H)),
        pos_emb=nrm((cfg["max_position_embeddings"], H)),
        type_emb=nrm((cfg["type_vocab_size"], H)),
        emb_ln_g=ones((1, H)), emb_ln_b=zeros((1, H)),
        pool_w=nrm((H, H), jnp.bfloat16), pool_b=zeros((1, H)),
        cls_w=nrm((H, L), jnp.bfloat16), cls_b=zeros((1, L)),
        layers=[],
    )
    scale = 1.0 / math.sqrt(dh)
    for _ in range(cfg["num_hidden_layers"]):
        wq, wk, wv = nrm_f32((H, H)), nrm_f32((H, H)), nrm_f32((H, H))
        # fold the attention 1/sqrt(dh) scale into the Q projection (bias is zero-init anyway)
        wqkv = jnp.concatenate([wq * scale, wk, wv], axis=1).astype(jnp.bfloat16)
        params["layers"].append(dict(
            wqkv=wqkv, bqkv=zeros((1, 3 * H)),
            wo=nrm((H, H), jnp.bfloat16), bo=zeros((1, H)),
            ln1_g=ones((1, H)), ln1_b=zeros((1, H)),
            wi=nrm((H, I), jnp.bfloat16), bi=zeros((1, I)),
            wf=nrm((I, H), jnp.bfloat16), bf=zeros((1, H)),
            ln2_g=ones((1, H)), ln2_b=zeros((1, H)),
        ))
    return params


# ---------------- full forward: BertForSequenceClassification -> CE loss ---------------------
def bert_classification_loss(params, input_ids, labels):
    cfg = CFG
    B, S = input_ids.shape
    H = cfg["hidden_size"]
    nh = cfg["num_attention_heads"]
    dh = H // nh
    nl = cfg["num_hidden_layers"]
    eps = cfg["layer_norm_eps"]

    # --- embeddings (word + position + token_type=0); gathers are glue JAX ---
    emb = (jnp.take(params["word_emb"], input_ids, axis=0)
           + params["pos_emb"][None, :S, :]
           + params["type_emb"][0][None, None, :])
    emb = emb.reshape(B * S, H).astype(jnp.float32)
    # TODO(synk): dropout (hidden/attention prob 0.1) omitted — deterministic eval-mode forward.

    layer_args = []
    for lp in params["layers"]:
        layer_args += [lp["wqkv"], lp["bqkv"], lp["wo"], lp["bo"],
                       lp["ln1_g"], lp["ln1_b"], lp["wi"], lp["bi"],
                       lp["wf"], lp["bf"], lp["ln2_g"], lp["ln2_b"]]

    args = ([emb, params["emb_ln_g"], params["emb_ln_b"]] + layer_args
            + [params["pool_w"], params["pool_b"], params["cls_w"], params["cls_b"],
               labels.astype(jnp.int32).reshape(B, 1)])

    kernel = functools.partial(_bert_fused_kernel, nl=nl, nh=nh, dh=dh, B=B, S=S, eps=eps)
    out = pl.pallas_call(
        kernel,
        out_shape=jax.ShapeDtypeStruct((1, 1), jnp.float32),
        in_specs=[_VMEM] * len(args),
        out_specs=_VMEM,
        scratch_shapes=[pltpu.VMEM((B * S, H), jnp.float32)],   # per-head context buffer
    )(*args)
    return out[0, 0]


if __name__ == "__main__":
    key = jax.random.PRNGKey(0)
    pkey, ikey, lkey = jax.random.split(key, 3)

    params = init_params(pkey, CFG)
    B, S = 2, 8
    input_ids = jax.random.randint(ikey, (B, S), 0, CFG["vocab_size"], dtype=jnp.int32)
    labels = jax.random.randint(lkey, (B,), 0, CFG["num_labels"], dtype=jnp.int32)

    loss = jax.jit(bert_classification_loss)(params, input_ids, labels)
    jax.block_until_ready(loss)
    assert loss.shape == () and jnp.isfinite(loss)
    print("KERNEL_OK")
</pallas_src>

<mosaic_0001>
module attributes {stable_mosaic.version = 11 : i64} {
  func.func @_bert_fused_kernel(%arg0: memref<16x128xf32, #tpu.memory_space<vmem>>, %arg1: memref<1x128xf32, #tpu.memory_space<vmem>>, %arg2: memref<1x128xf32, #tpu.memory_space<vmem>>, %arg3: memref<128x384xbf16, #tpu.memory_space<vmem>>, %arg4: memref<1x384xf32, #tpu.memory_space<vmem>>, %arg5: memref<128x128xbf16, #tpu.memory_space<vmem>>, %arg6: memref<1x128xf32, #tpu.memory_space<vmem>>, %arg7: memref<1x128xf32, #tpu.memory_space<vmem>>, %arg8: memref<1x128xf32, #tpu.memory_space<vmem>>, %arg9: memref<128x256xbf16, #tpu.memory_space<vmem>>, %arg10: memref<1x256xf32, #tpu.memory_space<vmem>>, %arg11: memref<256x128xbf16, #tpu.memory_space<vmem>>, %arg12: memref<1x128xf32, #tpu.memory_space<vmem>>, %arg13: memref<1x128xf32, #tpu.memory_space<vmem>>, %arg14: memref<1x128xf32, #tpu.memory_space<vmem>>, %arg15: memref<128x384xbf16, #tpu.memory_space<vmem>>, %arg16: memref<1x384xf32, #tpu.memory_space<vmem>>, %arg17: memref<128x128xbf16, #tpu.memory_space<vmem>>, %arg18: memref<1x128xf32, #tpu.memory_space<vmem>>, %arg19: memref<1x128xf32, #tpu.memory_space<vmem>>, %arg20: memref<1x128xf32, #tpu.memory_space<vmem>>, %arg21: memref<128x256xbf16, #tpu.memory_space<vmem>>, %arg22: memref<1x256xf32, #tpu.memory_space<vmem>>, %arg23: memref<256x128xbf16, #tpu.memory_space<vmem>>, %arg24: memref<1x128xf32, #tpu.memory_space<vmem>>, %arg25: memref<1x128xf32, #tpu.memory_space<vmem>>, %arg26: memref<1x128xf32, #tpu.memory_space<vmem>>, %arg27: memref<128x128xbf16, #tpu.memory_space<vmem>>, %arg28: memref<1x128xf32, #tpu.memory_space<vmem>>, %arg29: memref<128x16xbf16, #tpu.memory_space<vmem>>, %arg30: memref<1x16xf32, #tpu.memory_space<vmem>>, %arg31: memref<2x1xi32, #tpu.memory_space<vmem>>, %arg32: memref<1x1xf32, #tpu.memory_space<vmem>>, %arg33: memref<16x128xf32, #tpu.memory_space<vmem>>) attributes {dimension_semantics = [], scalar_prefetch = 0 : i64, scratch_operands = 1 : i64, tpu.core_type = #tpu.core_type<tc>} {
    %c0 = arith.constant 0 : index
    %c0_0 = arith.constant 0 : index
    %0 = vector.load %arg0[%c0, %c0_0] : memref<16x128xf32, #tpu.memory_space<vmem>>, vector<16x128xf32>
    %c0_1 = arith.constant 0 : index
    %c0_2 = arith.constant 0 : index
    %1 = vector.load %arg1[%c0_1, %c0_2] : memref<1x128xf32, #tpu.memory_space<vmem>>, vector<1x128xf32>
    %c0_3 = arith.constant 0 : index
    %c0_4 = arith.constant 0 : index
    %2 = vector.load %arg2[%c0_3, %c0_4] : memref<1x128xf32, #tpu.memory_space<vmem>>, vector<1x128xf32>
    %cst = arith.constant dense<0.000000e+00> : vector<16xf32>
    %3 = vector.multi_reduction <add>, %0, %cst [1] : vector<16x128xf32> to vector<16xf32>
    %4 = vector.shape_cast %3 : vector<16xf32> to vector<16x1xf32>
    %cst_5 = arith.constant 1.280000e+02 : f32
    %5 = vector.broadcast %cst_5 : f32 to vector<16x1xf32>
    %6 = arith.divf %4, %5 : vector<16x1xf32>
    %7 = vector.broadcast %6 : vector<16x1xf32> to vector<16x128xf32>
    %8 = arith.subf %0, %7 : vector<16x128xf32>
    %9 = arith.mulf %8, %8 : vector<16x128xf32>
    %cst_6 = arith.constant dense<0.000000e+00> : vector<16xf32>
    %10 = vector.multi_reduction <add>, %9, %cst_6 [1] : vector<16x128xf32> to vector<16xf32>
    %11 = vector.shape_cast %10 : vector<16xf32> to vector<16x1xf32>
    %cst_7 = arith.constant 1.280000e+02 : f32
    %12 = vector.broadcast %cst_7 : f32 to vector<16x1xf32>
    %13 = arith.divf %11, %12 : vector<16x1xf32>
    %cst_8 = arith.constant 9.99999996E-13 : f32
    %14 = vector.broadcast %cst_8 : f32 to vector<16x1xf32>
    %15 = arith.addf %13, %14 : vector<16x1xf32>
    %16 = math.rsqrt %15 : vector<16x1xf32>
    %17 = vector.broadcast %16 : vector<16x1xf32> to vector<16x128xf32>
    %18 = arith.mulf %8, %17 : vector<16x128xf32>
    %19 = vector.broadcast %1 : vector<1x128xf32> to vector<16x128xf32>
    %20 = arith.mulf %18, %19 : vector<16x128xf32>
    %21 = vector.broadcast %2 : vector<1x128xf32> to vector<16x128xf32>
    %22 = arith.addf %20, %21 : vector<16x128xf32>
    %23 = arith.truncf %22 : vector<16x128xf32> to vector<16x128xbf16>
    %c0_9 = arith.constant 0 : index
    %c0_10 = arith.constant 0 : index
    %24 = vector.load %arg3[%c0_9, %c0_10] : memref<128x384xbf16, #tpu.memory_space<vmem>>, vector<128x384xbf16>
    %cst_11 = arith.constant dense<0.000000e+00> : vector<16x384xf32>
    %25 = tpu.matmul %23, %24, %cst_11 {dimension_numbers = #tpu.dot_dimension_numbers<[1], [0], [0], [1], [0, 0, 1, 1], [], []>} : vector<16x128xbf16>, vector<128x384xbf16>, vector<16x384xf32> -> vector<16x384xf32>
    %c0_12 = arith.constant 0 : index
    %c0_13 = arith.constant 0 : index
    %26 = vector.load %arg4[%c0_12, %c0_13] : memref<1x384xf32, #tpu.memory_space<vmem>>, vector<1x384xf32>
    %27 = vector.broadcast %26 : vector<1x384xf32> to vector<16x384xf32>
    %28 = arith.addf %25, %27 : vector<16x384xf32>
    %29 = vector.extract_strided_slice %28 {offsets = [0, 0], sizes = [8, 32], strides = [1, 1]} : vector<16x384xf32> to vector<8x32xf32>
    %30 = arith.truncf %29 : vector<8x32xf32> to vector<8x32xbf16>
    %31 = vector.extract_strided_slice %28 {offsets = [0, 128], sizes = [8, 32], strides = [1, 1]} : vector<16x384xf32> to vector<8x32xf32>
    %32 = arith.truncf %31 : vector<8x32xf32> to vector<8x32xbf16>
    %33 = vector.extract_strided_slice %28 {offsets = [0, 256], sizes = [8, 32], strides = [1, 1]} : vector<16x384xf32> to vector<8x32xf32>
    %34 = arith.truncf %33 : vector<8x32xf32> to vector<8x32xbf16>
    %cst_14 = arith.constant dense<0.000000e+00> : vector<8x8xf32>
    %35 = tpu.matmul %30, %32, %cst_14 {dimension_numbers = #tpu.dot_dimension_numbers<[1], [1], [0], [0], [0, 0, 1, 0], [], []>} : vector<8x32xbf16>, vector<8x32xbf16>, vector<8x8xf32> -> vector<8x8xf32>
    %cst_15 = arith.constant dense<0xFF800000> : vector<8xf32>
    %36 = vector.multi_reduction <maximumf>, %35, %cst_15 [1] : vector<8x8xf32> to vector<8xf32>
    %37 = vector.shape_cast %36 : vector<8xf32> to vector<8x1xf32>
    %38 = vector.broadcast %37 : vector<8x1xf32> to vector<8x8xf32>
    %39 = arith.subf %35, %38 : vector<8x8xf32>
    %40 = math.exp %39 : vector<8x8xf32>
    %cst_16 = arith.constant dense<0.000000e+00> : vector<8xf32>
    %41 = vector.multi_reduction <add>, %40, %cst_16 [1] : vector<8x8xf32> to vector<8xf32>
    %42 = vector.shape_cast %41 : vector<8xf32> to vector<8x1xf32>
    %43 = tpu.reciprocal %42 {approx = true} : vector<8x1xf32> -> vector<8x1xf32>
    %44 = vector.broadcast %43 : vector<8x1xf32> to vector<8x8xf32>
    %45 = arith.mulf %40, %44 : vector<8x8xf32>
    %46 = arith.truncf %45 : vector<8x8xf32> to vector<8x8xbf16>
    %cst_17 = arith.constant dense<0.000000e+00> : vector<8x32xf32>
    %47 = tpu.matmul %46, %34, %cst_17 {dimension_numbers = #tpu.dot_dimension_numbers<[1], [0], [0], [1], [0, 0, 1, 1], [], []>} : vector<8x8xbf16>, vector<8x32xbf16>, vector<8x32xf32> -> vector<8x32xf32>
    %c0_18 = arith.constant 0 : index
    %c0_19 = arith.constant 0 : index
    %48 = vector.load %arg33[%c0_18, %c0_19] : memref<16x128xf32, #tpu.memory_space<vmem>>, vector<8x32xf32>
    tpu.vector_store %arg33[%c0_18, %c0_19], %47 {strides = array<i32>} : memref<16x128xf32, #tpu.memory_space<vmem>>, vector<8x32xf32>,
    %49 = vector.extract_strided_slice %28 {offsets = [0, 32], sizes = [8, 32], strides = [1, 1]} : vector<16x384xf32> to vector<8x32xf32>
    %50 = arith.truncf %49 : vector<8x32xf32> to vector<8x32xbf16>
    %51 = vector.extract_strided_slice %28 {offsets = [0, 160], sizes = [8, 32], strides = [1, 1]} : vector<16x384xf32> to vector<8x32xf32>
    %52 = arith.truncf %51 : vector<8x32xf32> to vector<8x32xbf16>
    %53 = vector.extract_strided_slice %28 {offsets = [0, 288], sizes = [8, 32], strides = [1, 1]} : vector<16x384xf32> to vector<8x32xf32>
    %54 = arith.truncf %53 : vector<8x32xf32> to vector<8x32xbf16>
    %cst_20 = arith.constant dense<0.000000e+00> : vector<8x8xf32>
    %55 = tpu.matmul %50, %52, %cst_20 {dimension_numbers = #tpu.dot_dimension_numbers<[1], [1], [0], [0], [0, 0, 1, 0], [], []>} : vector<8x32xbf16>, vector<8x32xbf16>, vector<8x8xf32> -> vector<8x8xf32>
    %cst_21 = arith.constant dense<0xFF800000> : vector<8xf32>
    %56 = vector.multi_reduction <maximumf>, %55, %cst_21 [1] : vector<8x8xf32> to vector<8xf32>
    %57 = vector.shape_cast %56 : vector<8xf32> to vector<8x1xf32>
    %58 = vector.broadcast %57 : vector<8x1xf32> to vector<8x8xf32>
    %59 = arith.subf %55, %58 : vector<8x8xf32>
    %60 = math.exp %59 : vector<8x8xf32>
    %cst_22 = arith.constant dense<0.000000e+00> : vector<8xf32>
    %61 = vector.multi_reduction <add>, %60, %cst_22 [1] : vector<8x8xf32> to vector<8xf32>
    %62 = vector.shape_cast %61 : vector<8xf32> to vector<8x1xf32>
    %63 = tpu.reciprocal %62 {approx = true} : vector<8x1xf32> -> vector<8x1xf32>
    %64 = vector.broadcast %63 : vector<8x1xf32> to vector<8x8xf32>
    %65 = arith.mulf %60, %64 : vector<8x8xf32>
    %66 = arith.truncf %65 : vector<8x8xf32> to vector<8x8xbf16>
    %cst_23 = arith.constant dense<0.000000e+00> : vector<8x32xf32>
    %67 = tpu.matmul %66, %54, %cst_23 {dimension_numbers = #tpu.dot_dimension_numbers<[1], [0], [0], [1], [0, 0, 1, 1], [], []>} : vector<8x8xbf16>, vector<8x32xbf16>, vector<8x32xf32> -> vector<8x32xf32>
    %c0_24 = arith.constant 0 : index
    %c32 = arith.constant 32 : index
    %68 = vector.load %arg33[%c0_24, %c32] : memref<16x128xf32, #tpu.memory_space<vmem>>, vector<8x32xf32>
    tpu.vector_store %arg33[%c0_24, %c32], %67 {strides = array<i32>} : memref<16x128xf32, #tpu.memory_space<vmem>>, vector<8x32xf32>,
    %69 = vector.extract_strided_slice %28 {offsets = [0, 64], sizes = [8, 32], strides = [1, 1]} : vector<16x384xf32> to vector<8x32xf32>
    %70 = arith.truncf %69 : vector<8x32xf32> to vector<8x32xbf16>
    %71 = vector.extract_strided_slice %28 {offsets = [0, 192], sizes = [8, 32], strides = [1, 1]} : vector<16x384xf32> to vector<8x32xf32>
    %72 = arith.truncf %71 : vector<8x32xf32> to vector<8x32xbf16>
    %73 = vector.extract_strided_slice %28 {offsets = [0, 320], sizes = [8, 32], strides = [1, 1]} : vector<16x384xf32> to vector<8x32xf32>
    %74 = arith.truncf %73 : vector<8x32xf32> to vector<8x32xbf16>
    %cst_25 = arith.constant dense<0.000000e+00> : vector<8x8xf32>
    %75 = tpu.matmul %70, %72, %cst_25 {dimension_numbers = #tpu.dot_dimension_numbers<[1], [1], [0], [0], [0, 0, 1, 0], [], []>} : vector<8x32xbf16>, vector<8x32xbf16>, vector<8x8xf32> -> vector<8x8xf32>
    %cst_26 = arith.constant dense<0xFF800000> : vector<8xf32>
    %76 = vector.multi_reduction <maximumf>, %75, %cst_26 [1] : vector<8x8xf32> to vector<8xf32>
    %77 = vector.shape_cast %76 : vector<8xf32> to vector<8x1xf32>
    %78 = vector.broadcast %77 : vector<8x1xf32> to vector<8x8xf32>
    %79 = arith.subf %75, %78 : vector<8x8xf32>
    %80 = math.exp %79 : vector<8x8xf32>
    %cst_27 = arith.constant dense<0.000000e+00> : vector<8xf32>
    %81 = vector.multi_reduction <add>, %80, %cst_27 [1] : vector<8x8xf32> to vector<8xf32>
    %82 = vector.shape_cast %81 : vector<8xf32> to vector<8x1xf32>
    %83 = tpu.reciprocal %82 {approx = true} : vector<8x1xf32> -> vector<8x1xf32>
    %84 = vector.broadcast %83 : vector<8x1xf32> to vector<8x8xf32>
    %85 = arith.mulf %80, %84 : vector<8x8xf32>
    %86 = arith.truncf %85 : vector<8x8xf32> to vector<8x8xbf16>
    %cst_28 = arith.constant dense<0.000000e+00> : vector<8x32xf32>
    %87 = tpu.matmul %86, %74, %cst_28 {dimension_numbers = #tpu.dot_dimension_numbers<[1], [0], [0], [1], [0, 0, 1, 1], [], []>} : vector<8x8xbf16>, vector<8x32xbf16>, vector<8x32xf32> -> vector<8x32xf32>
    %c0_29 = arith.constant 0 : index
    %c64 = arith.constant 64 : index
    %88 = vector.load %arg33[%c0_29, %c64] : memref<16x128xf32, #tpu.memory_space<vmem>>, vector<8x32xf32>
    tpu.vector_store %arg33[%c0_29, %c64], %87 {strides = array<i32>} : memref<16x128xf32, #tpu.memory_space<vmem>>, vector<8x32xf32>,
    %89 = vector.extract_strided_slice %28 {offsets = [0, 96], sizes = [8, 32], strides = [1, 1]} : vector<16x384xf32> to vector<8x32xf32>
    %90 = arith.truncf %89 : vector<8x32xf32> to vector<8x32xbf16>
    %91 = vector.extract_strided_slice %28 {offsets = [0, 224], sizes = [8, 32], strides = [1, 1]} : vector<16x384xf32> to vector<8x32xf32>
    %92 = arith.truncf %91 : vector<8x32xf32> to vector<8x32xbf16>
    %93 = vector.extract_strided_slice %28 {offsets = [0, 352], sizes = [8, 32], strides = [1, 1]} : vector<16x384xf32> to vector<8x32xf32>
    %94 = arith.truncf %93 : vector<8x32xf32> to vector<8x32xbf16>
    %cst_30 = arith.constant dense<0.000000e+00> : vector<8x8xf32>
    %95 = tpu.matmul %90, %92, %cst_30 {dimension_numbers = #tpu.dot_dimension_numbers<[1], [1], [0], [0], [0, 0, 1, 0], [], []>} : vector<8x32xbf16>, vector<8x32xbf16>, vector<8x8xf32> -> vector<8x8xf32>
    %cst_31 = arith.constant dense<0xFF800000> : vector<8xf32>
    %96 = vector.multi_reduction <maximumf>, %95, %cst_31 [1] : vector<8x8xf32> to vector<8xf32>
    %97 = vector.shape_cast %96 : vector<8xf32> to vector<8x1xf32>
    %98 = vector.broadcast %97 : vector<8x1xf32> to vector<8x8xf32>
    %99 = arith.subf %95, %98 : vector<8x8xf32>
    %100 = math.exp %99 : vector<8x8xf32>
    %cst_32 = arith.constant dense<0.000000e+00> : vector<8xf32>
    %101 = vector.multi_reduction <add>, %100, %cst_32 [1] : vector<8x8xf32> to vector<8xf32>
    %102 = vector.shape_cast %101 : vector<8xf32> to vector<8x1xf32>
    %103 = tpu.reciprocal %102 {approx = true} : vector<8x1xf32> -> vector<8x1xf32>
    %104 = vector.broadcast %103 : vector<8x1xf32> to vector<8x8xf32>
    %105 = arith.mulf %100, %104 : vector<8x8xf32>
    %106 = arith.truncf %105 : vector<8x8xf32> to vector<8x8xbf16>
    %cst_33 = arith.constant dense<0.000000e+00> : vector<8x32xf32>
    %107 = tpu.matmul %106, %94, %cst_33 {dimension_numbers = #tpu.dot_dimension_numbers<[1], [0], [0], [1], [0, 0, 1, 1], [], []>} : vector<8x8xbf16>, vector<8x32xbf16>, vector<8x32xf32> -> vector<8x32xf32>
    %c0_34 = arith.constant 0 : index
    %c96 = arith.constant 96 : index
    %108 = vector.load %arg33[%c0_34, %c96] : memref<16x128xf32, #tpu.memory_space<vmem>>, vector<8x32xf32>
    tpu.vector_store %arg33[%c0_34, %c96], %107 {strides = array<i32>} : memref<16x128xf32, #tpu.memory_space<vmem>>, vector<8x32xf32>,
    %109 = vector.extract_strided_slice %28 {offsets = [8, 0], sizes = [8, 32], strides = [1, 1]} : vector<16x384xf32> to vector<8x32xf32>
    %110 = arith.truncf %109 : vector<8x32xf32> to vector<8x32xbf16>
    %111 = vector.extract_strided_slice %28 {offsets = [8, 128], sizes = [8, 32], strides = [1, 1]} : vector<16x384xf32> to vector<8x32xf32>
    %112 = arith.truncf %111 : vector<8x32xf32> to vector<8x32xbf16>
    %113 = vector.extract_strided_slice %28 {offsets = [8, 256], sizes = [8, 32], strides = [1, 1]} : vector<16x384xf32> to vector<8x32xf32>
    %114 = arith.truncf %113 : vector<8x32xf32> to vector<8x32xbf16>
    %cst_35 = arith.constant dense<0.000000e+00> : vector<8x8xf32>
    %115 = tpu.matmul %110, %112, %cst_35 {dimension_numbers = #tpu.dot_dimension_numbers<[1], [1], [0], [0], [0, 0, 1, 0], [], []>} : vector<8x32xbf16>, vector<8x32xbf16>, vector<8x8xf32> -> vector<8x8xf32>
    %cst_36 = arith.constant dense<0xFF800000> : vector<8xf32>
    %116 = vector.multi_reduction <maximumf>, %115, %cst_36 [1] : vector<8x8xf32> to vector<8xf32>
    %117 = vector.shape_cast %116 : vector<8xf32> to vector<8x1xf32>
    %118 = vector.broadcast %117 : vector<8x1xf32> to vector<8x8xf32>
    %119 = arith.subf %115, %118 : vector<8x8xf32>
    %120 = math.exp %119 : vector<8x8xf32>
    %cst_37 = arith.constant dense<0.000000e+00> : vector<8xf32>
    %121 = vector.multi_reduction <add>, %120, %cst_37 [1] : vector<8x8xf32> to vector<8xf32>
    %122 = vector.shape_cast %121 : vector<8xf32> to vector<8x1xf32>
    %123 = tpu.reciprocal %122 {approx = true} : vector<8x1xf32> -> vector<8x1xf32>
    %124 = vector.broadcast %123 : vector<8x1xf32> to vector<8x8xf32>
    %125 = arith.mulf %120, %124 : vector<8x8xf32>
    %126 = arith.truncf %125 : vector<8x8xf32> to vector<8x8xbf16>
    %cst_38 = arith.constant dense<0.000000e+00> : vector<8x32xf32>
    %127 = tpu.matmul %126, %114, %cst_38 {dimension_numbers = #tpu.dot_dimension_numbers<[1], [0], [0], [1], [0, 0, 1, 1], [], []>} : vector<8x8xbf16>, vector<8x32xbf16>, vector<8x32xf32> -> vector<8x32xf32>
    %c8 = arith.constant 8 : index
    %c0_39 = arith.constant 0 : index
    %128 = vector.load %arg33[%c8, %c0_39] : memref<16x128xf32, #tpu.memory_space<vmem>>, vector<8x32xf32>
    tpu.vector_store %arg33[%c8, %c0_39], %127 {strides = array<i32>} : memref<16x128xf32, #tpu.memory_space<vmem>>, vector<8x32xf32>,
    %129 = vector.extract_strided_slice %28 {offsets = [8, 32], sizes = [8, 32], strides = [1, 1]} : vector<16x384xf32> to vector<8x32xf32>
    %130 = arith.truncf %129 : vector<8x32xf32> to vector<8x32xbf16>
    %131 = vector.extract_strided_slice %28 {offsets = [8, 160], sizes = [8, 32], strides = [1, 1]} : vector<16x384xf32> to vector<8x32xf32>
    %132 = arith.truncf %131 : vector<8x32xf32> to vector<8x32xbf16>
    %133 = vector.extract_strided_slice %28 {offsets = [8, 288], sizes = [8, 32], strides = [1, 1]} : vector<16x384xf32> to vector<8x32xf32>
    %134 = arith.truncf %133 : vector<8x32xf32> to vector<8x32xbf16>
    %cst_40 = arith.constant dense<0.000000e+00> : vector<8x8xf32>
    %135 = tpu.matmul %130, %132, %cst_40 {dimension_numbers = #tpu.dot_dimension_numbers<[1], [1], [0], [0], [0, 0, 1, 0], [], []>} : vector<8x32xbf16>, vector<8x32xbf16>, vector<8x8xf32> -> vector<8x8xf32>
    %cst_41 = arith.constant dense<0xFF800000> : vector<8xf32>
    %136 = vector.multi_reduction <maximumf>, %135, %cst_41 [1] : vector<8x8xf32> to vector<8xf32>
    %137 = vector.shape_cast %136 : vector<8xf32> to vector<8x1xf32>
    %138 = vector.broadcast %137 : vector<8x1xf32> to vector<8x8xf32>
    %139 = arith.subf %135, %138 : vector<8x8xf32>
    %140 = math.exp %139 : vector<8x8xf32>
    %cst_42 = arith.constant dense<0.000000e+00> : vector<8xf32>
    %141 = vector.multi_reduction <add>, %140, %cst_42 [1] : vector<8x8xf32> to vector<8xf32>
    %142 = vector.shape_cast %141 : vector<8xf32> to vector<8x1xf32>
    %143 = tpu.reciprocal %142 {approx = true} : vector<8x1xf32> -> vector<8x1xf32>
    %144 = vector.broadcast %143 : vector<8x1xf32> to vector<8x8xf32>
    %145 = arith.mulf %140, %144 : vector<8x8xf32>
    %146 = arith.truncf %145 : vector<8x8xf32> to vector<8x8xbf16>
    %cst_43 = arith.constant dense<0.000000e+00> : vector<8x32xf32>
    %147 = tpu.matmul %146, %134, %cst_43 {dimension_numbers = #tpu.dot_dimension_numbers<[1], [0], [0], [1], [0, 0, 1, 1], [], []>} : vector<8x8xbf16>, vector<8x32xbf16>, vector<8x32xf32> -> vector<8x32xf32>
    %c8_44 = arith.constant 8 : index
    %c32_45 = arith.constant 32 : index
    %148 = vector.load %arg33[%c8_44, %c32_45] : memref<16x128xf32, #tpu.memory_space<vmem>>, vector<8x32xf32>
    tpu.vector_store %arg33[%c8_44, %c32_45], %147 {strides = array<i32>} : memref<16x128xf32, #tpu.memory_space<vmem>>, vector<8x32xf32>,
    %149 = vector.extract_strided_slice %28 {offsets = [8, 64], sizes = [8, 32], strides = [1, 1]} : vector<16x384xf32> to vector<8x32xf32>
    %150 = arith.truncf %149 : vector<8x32xf32> to vector<8x32xbf16>
    %151 = vector.extract_strided_slice %28 {offsets = [8, 192], sizes = [8, 32], strides = [1, 1]} : vector<16x384xf32> to vector<8x32xf32>
    %152 = arith.truncf %151 : vector<8x32xf32> to vector<8x32xbf16>
    %153 = vector.extract_strided_slice %28 {offsets = [8, 320], sizes = [8, 32], strides = [1, 1]} : vector<16x384xf32> to vector<8x32xf32>
    %154 = arith.truncf %153 : vector<8x32xf32> to vector<8x32xbf16>
    %cst_46 = arith.constant dense<0.000000e+00> : vector<8x8xf32>
    %155 = tpu.matmul %150, %152, %cst_46 {dimension_numbers = #tpu.dot_dimension_numbers<[1], [1], [0], [0], [0, 0, 1, 0], [], []>} : vector<8x32xbf16>, vector<8x32xbf16>, vector<8x8xf32> -> vector<8x8xf32>
    %cst_47 = arith.constant dense<0xFF800000> : vector<8xf32>
    %156 = vector.multi_reduction <maximumf>, %155, %cst_47 [1] : vector<8x8xf32> to vector<8xf32>
    %157 = vector.shape_cast %156 : vector<8xf32> to vector<8x1xf32>
    %158 = vector.broadcast %157 : vector<8x1xf32> to vector<8x8xf32>
    %159 = arith.subf %155, %158 : vector<8x8xf32>
    %160 = math.exp %159 : vector<8x8xf32>
    %cst_48 = arith.constant dense<0.000000e+00> : vector<8xf32>
    %161 = vector.multi_reduction <add>, %160, %cst_48 [1] : vector<8x8xf32> to vector<8xf32>
    %162 = vector.shape_cast %161 : vector<8xf32> to vector<8x1xf32>
    %163 = tpu.reciprocal %162 {approx = true} : vector<8x1xf32> -> vector<8x1xf32>
    %164 = vector.broadcast %163 : vector<8x1xf32> to vector<8x8xf32>
    %165 = arith.mulf %160, %164 : vector<8x8xf32>
    %166 = arith.truncf %165 : vector<8x8xf32> to vector<8x8xbf16>
    %cst_49 = arith.constant dense<0.000000e+00> : vector<8x32xf32>
    %167 = tpu.matmul %166, %154, %cst_49 {dimension_numbers = #tpu.dot_dimension_numbers<[1], [0], [0], [1], [0, 0, 1, 1], [], []>} : vector<8x8xbf16>, vector<8x32xbf16>, vector<8x32xf32> -> vector<8x32xf32>
    %c8_50 = arith.constant 8 : index
    %c64_51 = arith.constant 64 : index
    %168 = vector.load %arg33[%c8_50, %c64_51] : memref<16x128xf32, #tpu.memory_space<vmem>>, vector<8x32xf32>
    tpu.vector_store %arg33[%c8_50, %c64_51], %167 {strides = array<i32>} : memref<16x128xf32, #tpu.memory_space<vmem>>, vector<8x32xf32>,
    %169 = vector.extract_strided_slice %28 {offsets = [8, 96], sizes = [8, 32], strides = [1, 1]} : vector<16x384xf32> to vector<8x32xf32>
    %170 = arith.truncf %169 : vector<8x32xf32> to vector<8x32xbf16>
    %171 = vector.extract_strided_slice %28 {offsets = [8, 224], sizes = [8, 32], strides = [1, 1]} : vector<16x384xf32> to vector<8x32xf32>
    %172 = arith.truncf %171 : vector<8x32xf32> to vector<8x32xbf16>
    %173 = vector.extract_strided_slice %28 {offsets = [8, 352], sizes = [8, 32], strides = [1, 1]} : vector<16x384xf32> to vector<8x32xf32>
    %174 = arith.truncf %173 : vector<8x32xf32> to vector<8x32xbf16>
    %cst_52 = arith.constant dense<0.000000e+00> : vector<8x8xf32>
    %175 = tpu.matmul %170, %172, %cst_52 {dimension_numbers = #tpu.dot_dimension_numbers<[1], [1], [0], [0], [0, 0, 1, 0], [], []>} : vector<8x32xbf16>, vector<8x32xbf16>, vector<8x8xf32> -> vector<8x8xf32>
    %cst_53 = arith.constant dense<0xFF800000> : vector<8xf32>
    %176 = vector.multi_reduction <maximumf>, %175, %cst_53 [1] : vector<8x8xf32> to vector<8xf32>
    %177 = vector.shape_cast %176 : vector<8xf32> to vector<8x1xf32>
    %178 = vector.broadcast %177 : vector<8x1xf32> to vector<8x8xf32>
    %179 = arith.subf %175, %178 : vector<8x8xf32>
    %180 = math.exp %179 : vector<8x8xf32>
    %cst_54 = arith.constant dense<0.000000e+00> : vector<8xf32>
    %181 = vector.multi_reduction <add>, %180, %cst_54 [1] : vector<8x8xf32> to vector<8xf32>
    %182 = vector.shape_cast %181 : vector<8xf32> to vector<8x1xf32>
    %183 = tpu.reciprocal %182 {approx = true} : vector<8x1xf32> -> vector<8x1xf32>
    %184 = vector.broadcast %183 : vector<8x1xf32> to vector<8x8xf32>
    %185 = arith.mulf %180, %184 : vector<8x8xf32>
    %186 = arith.truncf %185 : vector<8x8xf32> to vector<8x8xbf16>
    %cst_55 = arith.constant dense<0.000000e+00> : vector<8x32xf32>
    %187 = tpu.matmul %186, %174, %cst_55 {dimension_numbers = #tpu.dot_dimension_numbers<[1], [0], [0], [1], [0, 0, 1, 1], [], []>} : vector<8x8xbf16>, vector<8x32xbf16>, vector<8x32xf32> -> vector<8x32xf32>
    %c8_56 = arith.constant 8 : index
    %c96_57 = arith.constant 96 : index
    %188 = vector.load %arg33[%c8_56, %c96_57] : memref<16x128xf32, #tpu.memory_space<vmem>>, vector<8x32xf32>
    tpu.vector_store %arg33[%c8_56, %c96_57], %187 {strides = array<i32>} : memref<16x128xf32, #tpu.memory_space<vmem>>, vector<8x32xf32>,
    %c0_58 = arith.constant 0 : index
    %c0_59 = arith.constant 0 : index
    %189 = vector.load %arg33[%c0_58, %c0_59] : memref<16x128xf32, #tpu.memory_space<vmem>>, vector<16x128xf32>
    %190 = arith.truncf %189 : vector<16x128xf32> to vector<16x128xbf16>
    %c0_60 = arith.constant 0 : index
    %c0_61 = arith.constant 0 : index
    %191 = vector.load %arg5[%c0_60, %c0_61] : memref<128x128xbf16, #tpu.memory_space<vmem>>, vector<128x128xbf16>
    %cst_62 = arith.constant dense<0.000000e+00> : vector<16x128xf32>
    %192 = tpu.matmul %190, %191, %cst_62 {dimension_numbers = #tpu.dot_dimension_numbers<[1], [0], [0], [1], [0, 0, 1, 1], [], []>} : vector<16x128xbf16>, vector<128x128xbf16>, vector<16x128xf32> -> vector<16x128xf32>
    %c0_63 = arith.constant 0 : index
    %c0_64 = arith.constant 0 : index
    %193 = vector.load %arg6[%c0_63, %c0_64] : memref<1x128xf32, #tpu.memory_space<vmem>>, vector<1x128xf32>
    %194 = vector.broadcast %193 : vector<1x128xf32> to vector<16x128xf32>
    %195 = arith.addf %192, %194 : vector<16x128xf32>
    %196 = arith.addf %195, %22 : vector<16x128xf32>
    %c0_65 = arith.constant 0 : index
    %c0_66 = arith.constant 0 : index
    %197 = vector.load %arg7[%c0_65, %c0_66] : memref<1x128xf32, #tpu.memory_space<vmem>>, vector<1x128xf32>
    %c0_67 = arith.constant 0 : index
    %c0_68 = arith.constant 0 : index
    %198 = vector.load %arg8[%c0_67, %c0_68] : memref<1x128xf32, #tpu.memory_space<vmem>>, vector<1x128xf32>
    %cst_69 = arith.constant dense<0.000000e+00> : vector<16xf32>
    %199 = vector.multi_reduction <add>, %196, %cst_69 [1] : vector<16x128xf32> to vector<16xf32>
    %200 = vector.shape_cast %199 : vector<16xf32> to vector<16x1xf32>
    %cst_70 = arith.constant 1.280000e+02 : f32
    %201 = vector.broadcast %cst_70 : f32 to vector<16x1xf32>
    %202 = arith.divf %200, %201 : vector<16x1xf32>
    %203 = vector.broadcast %202 : vector<16x1xf32> to vector<16x128xf32>
    %204 = arith.subf %196, %203 : vector<16x128xf32>
    %205 = arith.mulf %204, %204 : vector<16x128xf32>
    %cst_71 = arith.constant dense<0.000000e+00> : vector<16xf32>
    %206 = vector.multi_reduction <add>, %205, %cst_71 [1] : vector<16x128xf32> to vector<16xf32>
    %207 = vector.shape_cast %206 : vector<16xf32> to vector<16x1xf32>
    %cst_72 = arith.constant 1.280000e+02 : f32
    %208 = vector.broadcast %cst_72 : f32 to vector<16x1xf32>
    %209 = arith.divf %207, %208 : vector<16x1xf32>
    %cst_73 = arith.constant 9.99999996E-13 : f32
    %210 = vector.broadcast %cst_73 : f32 to vector<16x1xf32>
    %211 = arith.addf %209, %210 : vector<16x1xf32>
    %212 = math.rsqrt %211 : vector<16x1xf32>
    %213 = vector.broadcast %212 : vector<16x1xf32> to vector<16x128xf32>
    %214 = arith.mulf %204, %213 : vector<16x128xf32>
    %215 = vector.broadcast %197 : vector<1x128xf32> to vector<16x128xf32>
    %216 = arith.mulf %214, %215 : vector<16x128xf32>
    %217 = vector.broadcast %198 : vector<1x128xf32> to vector<16x128xf32>
    %218 = arith.addf %216, %217 : vector<16x128xf32>
    %219 = arith.truncf %218 : vector<16x128xf32> to vector<16x128xbf16>
    %c0_74 = arith.constant 0 : index
    %c0_75 = arith.constant 0 : index
    %220 = vector.load %arg9[%c0_74, %c0_75] : memref<128x256xbf16, #tpu.memory_space<vmem>>, vector<128x256xbf16>
    %cst_76 = arith.constant dense<0.000000e+00> : vector<16x256xf32>
    %221 = tpu.matmul %219, %220, %cst_76 {dimension_numbers = #tpu.dot_dimension_numbers<[1], [0], [0], [1], [0, 0, 1, 1], [], []>} : vector<16x128xbf16>, vector<128x256xbf16>, vector<16x256xf32> -> vector<16x256xf32>
    %c0_77 = arith.constant 0 : index
    %c0_78 = arith.constant 0 : index
    %222 = vector.load %arg10[%c0_77, %c0_78] : memref<1x256xf32, #tpu.memory_space<vmem>>, vector<1x256xf32>
    %223 = vector.broadcast %222 : vector<1x256xf32> to vector<16x256xf32>
    %224 = arith.addf %221, %223 : vector<16x256xf32>
    %cst_79 = arith.constant 5.000000e-01 : f32
    %225 = vector.broadcast %cst_79 : f32 to vector<16x256xf32>
    %226 = arith.mulf %225, %224 : vector<16x256xf32>
    %cst_80 = arith.constant 4.471500e-02 : f32
    %227 = vector.broadcast %cst_80 : f32 to vector<16x256xf32>
    %228 = arith.mulf %227, %224 : vector<16x256xf32>
    %229 = arith.mulf %228, %224 : vector<16x256xf32>
    %230 = arith.mulf %229, %224 : vector<16x256xf32>
    %231 = arith.addf %224, %230 : vector<16x256xf32>
    %cst_81 = arith.constant 0.797884583 : f32
    %232 = vector.broadcast %cst_81 : f32 to vector<16x256xf32>
    %233 = arith.mulf %232, %231 : vector<16x256xf32>
    %234 = math.tanh %233 : vector<16x256xf32>
    %cst_82 = arith.constant 1.000000e+00 : f32
    %235 = vector.broadcast %cst_82 : f32 to vector<16x256xf32>
    %236 = arith.addf %235, %234 : vector<16x256xf32>
    %237 = arith.mulf %226, %236 : vector<16x256xf32>
    %238 = arith.truncf %237 : vector<16x256xf32> to vector<16x256xbf16>
    %c0_83 = arith.constant 0 : index
    %c0_84 = arith.constant 0 : index
    %239 = vector.load %arg11[%c0_83, %c0_84] : memref<256x128xbf16, #tpu.memory_space<vmem>>, vector<256x128xbf16>
    %cst_85 = arith.constant dense<0.000000e+00> : vector<16x128xf32>
    %240 = tpu.matmul %238, %239, %cst_85 {dimension_numbers = #tpu.dot_dimension_numbers<[1], [0], [0], [1], [0, 0, 1, 1], [], []>} : vector<16x256xbf16>, vector<256x128xbf16>, vector<16x128xf32> -> vector<16x128xf32>
    %c0_86 = arith.constant 0 : index
    %c0_87 = arith.constant 0 : index
    %241 = vector.load %arg12[%c0_86, %c0_87] : memref<1x128xf32, #tpu.memory_space<vmem>>, vector<1x128xf32>
    %242 = vector.broadcast %241 : vector<1x128xf32> to vector<16x128xf32>
    %243 = arith.addf %240, %242 : vector<16x128xf32>
    %244 = arith.addf %243, %218 : vector<16x128xf32>
    %c0_88 = arith.constant 0 : index
    %c0_89 = arith.constant 0 : index
    %245 = vector.load %arg13[%c0_88, %c0_89] : memref<1x128xf32, #tpu.memory_space<vmem>>, vector<1x128xf32>
    %c0_90 = arith.constant 0 : index
    %c0_91 = arith.constant 0 : index
    %246 = vector.load %arg14[%c0_90, %c0_91] : memref<1x128xf32, #tpu.memory_space<vmem>>, vector<1x128xf32>
    %cst_92 = arith.constant dense<0.000000e+00> : vector<16xf32>
    %247 = vector.multi_reduction <add>, %244, %cst_92 [1] : vector<16x128xf32> to vector<16xf32>
    %248 = vector.shape_cast %247 : vector<16xf32> to vector<16x1xf32>
    %cst_93 = arith.constant 1.280000e+02 : f32
    %249 = vector.broadcast %cst_93 : f32 to vector<16x1xf32>
    %250 = arith.divf %248, %249 : vector<16x1xf32>
    %251 = vector.broadcast %250 : vector<16x1xf32> to vector<16x128xf32>
    %252 = arith.subf %244, %251 : vector<16x128xf32>
    %253 = arith.mulf %252, %252 : vector<16x128xf32>
    %cst_94 = arith.constant dense<0.000000e+00> : vector<16xf32>
    %254 = vector.multi_reduction <add>, %253, %cst_94 [1] : vector<16x128xf32> to vector<16xf32>
    %255 = vector.shape_cast %254 : vector<16xf32> to vector<16x1xf32>
    %cst_95 = arith.constant 1.280000e+02 : f32
    %256 = vector.broadcast %cst_95 : f32 to vector<16x1xf32>
    %257 = arith.divf %255, %256 : vector<16x1xf32>
    %cst_96 = arith.constant 9.99999996E-13 : f32
    %258 = vector.broadcast %cst_96 : f32 to vector<16x1xf32>
    %259 = arith.addf %257, %258 : vector<16x1xf32>
    %260 = math.rsqrt %259 : vector<16x1xf32>
    %261 = vector.broadcast %260 : vector<16x1xf32> to vector<16x128xf32>
    %262 = arith.mulf %252, %261 : vector<16x128xf32>
    %263 = vector.broadcast %245 : vector<1x128xf32> to vector<16x128xf32>
    %264 = arith.mulf %262, %263 : vector<16x128xf32>
    %265 = vector.broadcast %246 : vector<1x128xf32> to vector<16x128xf32>
    %266 = arith.addf %264, %265 : vector<16x128xf32>
    %267 = arith.truncf %266 : vector<16x128xf32> to vector<16x128xbf16>
    %c0_97 = arith.constant 0 : index
    %c0_98 = arith.constant 0 : index
    %268 = vector.load %arg15[%c0_97, %c0_98] : memref<128x384xbf16, #tpu.memory_space<vmem>>, vector<128x384xbf16>
    %cst_99 = arith.constant dense<0.000000e+00> : vector<16x384xf32>
    %269 = tpu.matmul %267, %268, %cst_99 {dimension_numbers = #tpu.dot_dimension_numbers<[1], [0], [0], [1], [0, 0, 1, 1], [], []>} : vector<16x128xbf16>, vector<128x384xbf16>, vector<16x384xf32> -> vector<16x384xf32>
    %c0_100 = arith.constant 0 : index
    %c0_101 = arith.constant 0 : index
    %270 = vector.load %arg16[%c0_100, %c0_101] : memref<1x384xf32, #tpu.memory_space<vmem>>, vector<1x384xf32>
    %271 = vector.broadcast %270 : vector<1x384xf32> to vector<16x384xf32>
    %272 = arith.addf %269, %271 : vector<16x384xf32>
    %273 = vector.extract_strided_slice %272 {offsets = [0, 0], sizes = [8, 32], strides = [1, 1]} : vector<16x384xf32> to vector<8x32xf32>
    %274 = arith.truncf %273 : vector<8x32xf32> to vector<8x32xbf16>
    %275 = vector.extract_strided_slice %272 {offsets = [0, 128], sizes = [8, 32], strides = [1, 1]} : vector<16x384xf32> to vector<8x32xf32>
    %276 = arith.truncf %275 : vector<8x32xf32> to vector<8x32xbf16>
    %277 = vector.extract_strided_slice %272 {offsets = [0, 256], sizes = [8, 32], strides = [1, 1]} : vector<16x384xf32> to vector<8x32xf32>
    %278 = arith.truncf %277 : vector<8x32xf32> to vector<8x32xbf16>
    %cst_102 = arith.constant dense<0.000000e+00> : vector<8x8xf32>
    %279 = tpu.matmul %274, %276, %cst_102 {dimension_numbers = #tpu.dot_dimension_numbers<[1], [1], [0], [0], [0, 0, 1, 0], [], []>} : vector<8x32xbf16>, vector<8x32xbf16>, vector<8x8xf32> -> vector<8x8xf32>
    %cst_103 = arith.constant dense<0xFF800000> : vector<8xf32>
    %280 = vector.multi_reduction <maximumf>, %279, %cst_103 [1] : vector<8x8xf32> to vector<8xf32>
    %281 = vector.shape_cast %280 : vector<8xf32> to vector<8x1xf32>
    %282 = vector.broadcast %281 : vector<8x1xf32> to vector<8x8xf32>
    %283 = arith.subf %279, %282 : vector<8x8xf32>
    %284 = math.exp %283 : vector<8x8xf32>
    %cst_104 = arith.constant dense<0.000000e+00> : vector<8xf32>
    %285 = vector.multi_reduction <add>, %284, %cst_104 [1] : vector<8x8xf32> to vector<8xf32>
    %286 = vector.shape_cast %285 : vector<8xf32> to vector<8x1xf32>
    %287 = tpu.reciprocal %286 {approx = true} : vector<8x1xf32> -> vector<8x1xf32>
    %288 = vector.broadcast %287 : vector<8x1xf32> to vector<8x8xf32>
    %289 = arith.mulf %284, %288 : vector<8x8xf32>
    %290 = arith.truncf %289 : vector<8x8xf32> to vector<8x8xbf16>
    %cst_105 = arith.constant dense<0.000000e+00> : vector<8x32xf32>
    %291 = tpu.matmul %290, %278, %cst_105 {dimension_numbers = #tpu.dot_dimension_numbers<[1], [0], [0], [1], [0, 0, 1, 1], [], []>} : vector<8x8xbf16>, vector<8x32xbf16>, vector<8x32xf32> -> vector<8x32xf32>
    %c0_106 = arith.constant 0 : index
    %c0_107 = arith.constant 0 : index
    %292 = vector.load %arg33[%c0_106, %c0_107] : memref<16x128xf32, #tpu.memory_space<vmem>>, vector<8x32xf32>
    tpu.vector_store %arg33[%c0_106, %c0_107], %291 {strides = array<i32>} : memref<16x128xf32, #tpu.memory_space<vmem>>, vector<8x32xf32>,
    %293 = vector.extract_strided_slice %272 {offsets = [0, 32], sizes = [8, 32], strides = [1, 1]} : vector<16x384xf32> to vector<8x32xf32>
    %294 = arith.truncf %293 : vector<8x32xf32> to vector<8x32xbf16>
    %295 = vector.extract_strided_slice %272 {offsets = [0, 160], sizes = [8, 32], strides = [1, 1]} : vector<16x384xf32> to vector<8x32xf32>
    %296 = arith.truncf %295 : vector<8x32xf32> to vector<8x32xbf16>
    %297 = vector.extract_strided_slice %272 {offsets = [0, 288], sizes = [8, 32], strides = [1, 1]} : vector<16x384xf32> to vector<8x32xf32>
    %298 = arith.truncf %297 : vector<8x32xf32> to vector<8x32xbf16>
    %cst_108 = arith.constant dense<0.000000e+00> : vector<8x8xf32>
    %299 = tpu.matmul %294, %296, %cst_108 {dimension_numbers = #tpu.dot_dimension_numbers<[1], [1], [0], [0], [0, 0, 1, 0], [], []>} : vector<8x32xbf16>, vector<8x32xbf16>, vector<8x8xf32> -> vector<8x8xf32>
    %cst_109 = arith.constant dense<0xFF800000> : vector<8xf32>
    %300 = vector.multi_reduction <maximumf>, %299, %cst_109 [1] : vector<8x8xf32> to vector<8xf32>
    %301 = vector.shape_cast %300 : vector<8xf32> to vector<8x1xf32>
    %302 = vector.broadcast %301 : vector<8x1xf32> to vector<8x8xf32>
    %303 = arith.subf %299, %302 : vector<8x8xf32>
    %304 = math.exp %303 : vector<8x8xf32>
    %cst_110 = arith.constant dense<0.000000e+00> : vector<8xf32>
    %305 = vector.multi_reduction <add>, %304, %cst_110 [1] : vector<8x8xf32> to vector<8xf32>
    %306 = vector.shape_cast %305 : vector<8xf32> to vector<8x1xf32>
    %307 = tpu.reciprocal %306 {approx = true} : vector<8x1xf32> -> vector<8x1xf32>
    %308 = vector.broadcast %307 : vector<8x1xf32> to vector<8x8xf32>
    %309 = arith.mulf %304, %308 : vector<8x8xf32>
    %310 = arith.truncf %309 : vector<8x8xf32> to vector<8x8xbf16>
    %cst_111 = arith.constant dense<0.000000e+00> : vector<8x32xf32>
    %311 = tpu.matmul %310, %298, %cst_111 {dimension_numbers = #tpu.dot_dimension_numbers<[1], [0], [0], [1], [0, 0, 1, 1], [], []>} : vector<8x8xbf16>, vector<8x32xbf16>, vector<8x32xf32> -> vector<8x32xf32>
    %c0_112 = arith.constant 0 : index
    %c32_113 = arith.constant 32 : index
    %312 = vector.load %arg33[%c0_112, %c32_113] : memref<16x128xf32, #tpu.memory_space<vmem>>, vector<8x32xf32>
    tpu.vector_store %arg33[%c0_112, %c32_113], %311 {strides = array<i32>} : memref<16x128xf32, #tpu.memory_space<vmem>>, vector<8x32xf32>,
    %313 = vector.extract_strided_slice %272 {offsets = [0, 64], sizes = [8, 32], strides = [1, 1]} : vector<16x384xf32> to vector<8x32xf32>
    %314 = arith.truncf %313 : vector<8x32xf32> to vector<8x32xbf16>
    %315 = vector.extract_strided_slice %272 {offsets = [0, 192], sizes = [8, 32], strides = [1, 1]} : vector<16x384xf32> to vector<8x32xf32>
    %316 = arith.truncf %315 : vector<8x32xf32> to vector<8x32xbf16>
    %317 = vector.extract_strided_slice %272 {offsets = [0, 320], sizes = [8, 32], strides = [1, 1]} : vector<16x384xf32> to vector<8x32xf32>
    %318 = arith.truncf %317 : vector<8x32xf32> to vector<8x32xbf16>
    %cst_114 = arith.constant dense<0.000000e+00> : vector<8x8xf32>
    %319 = tpu.matmul %314, %316, %cst_114 {dimension_numbers = #tpu.dot_dimension_numbers<[1], [1], [0], [0], [0, 0, 1, 0], [], []>} : vector<8x32xbf16>, vector<8x32xbf16>, vector<8x8xf32> -> vector<8x8xf32>
    %cst_115 = arith.constant dense<0xFF800000> : vector<8xf32>
    %320 = vector.multi_reduction <maximumf>, %319, %cst_115 [1] : vector<8x8xf32> to vector<8xf32>
    %321 = vector.shape_cast %320 : vector<8xf32> to vector<8x1xf32>
    %322 = vector.broadcast %321 : vector<8x1xf32> to vector<8x8xf32>
    %323 = arith.subf %319, %322 : vector<8x8xf32>
    %324 = math.exp %323 : vector<8x8xf32>
    %cst_116 = arith.constant dense<0.000000e+00> : vector<8xf32>
    %325 = vector.multi_reduction <add>, %324, %cst_116 [1] : vector<8x8xf32> to vector<8xf32>
    %326 = vector.shape_cast %325 : vector<8xf32> to vector<8x1xf32>
    %327 = tpu.reciprocal %326 {approx = true} : vector<8x1xf32> -> vector<8x1xf32>
    %328 = vector.broadcast %327 : vector<8x1xf32> to vector<8x8xf32>
    %329 = arith.mulf %324, %328 : vector<8x8xf32>
    %330 = arith.truncf %329 : vector<8x8xf32> to vector<8x8xbf16>
    %cst_117 = arith.constant dense<0.000000e+00> : vector<8x32xf32>
    %331 = tpu.matmul %330, %318, %cst_117 {dimension_numbers = #tpu.dot_dimension_numbers<[1], [0], [0], [1], [0, 0, 1, 1], [], []>} : vector<8x8xbf16>, vector<8x32xbf16>, vector<8x32xf32> -> vector<8x32xf32>
    %c0_118 = arith.constant 0 : index
    %c64_119 = arith.constant 64 : index
    %332 = vector.load %arg33[%c0_118, %c64_119] : memref<16x128xf32, #tpu.memory_space<vmem>>, vector<8x32xf32>
    tpu.vector_store %arg33[%c0_118, %c64_119], %331 {strides = array<i32>} : memref<16x128xf32, #tpu.memory_space<vmem>>, vector<8x32xf32>,
    %333 = vector.extract_strided_slice %272 {offsets = [0, 96], sizes = [8, 32], strides = [1, 1]} : vector<16x384xf32> to vector<8x32xf32>
    %334 = arith.truncf %333 : vector<8x32xf32> to vector<8x32xbf16>
    %335 = vector.extract_strided_slice %272 {offsets = [0, 224], sizes = [8, 32], strides = [1, 1]} : vector<16x384xf32> to vector<8x32xf32>
    %336 = arith.truncf %335 : vector<8x32xf32> to vector<8x32xbf16>
    %337 = vector.extract_strided_slice %272 {offsets = [0, 352], sizes = [8, 32], strides = [1, 1]} : vector<16x384xf32> to vector<8x32xf32>
    %338 = arith.truncf %337 : vector<8x32xf32> to vector<8x32xbf16>
    %cst_120 = arith.constant dense<0.000000e+00> : vector<8x8xf32>
    %339 = tpu.matmul %334, %336, %cst_120 {dimension_numbers = #tpu.dot_dimension_numbers<[1], [1], [0], [0], [0, 0, 1, 0], [], []>} : vector<8x32xbf16>, vector<8x32xbf16>, vector<8x8xf32> -> vector<8x8xf32>
    %cst_121 = arith.constant dense<0xFF800000> : vector<8xf32>
    %340 = vector.multi_reduction <maximumf>, %339, %cst_121 [1] : vector<8x8xf32> to vector<8xf32>
    %341 = vector.shape_cast %340 : vector<8xf32> to vector<8x1xf32>
    %342 = vector.broadcast %341 : vector<8x1xf32> to vector<8x8xf32>
    %343 = arith.subf %339, %342 : vector<8x8xf32>
    %344 = math.exp %343 : vector<8x8xf32>
    %cst_122 = arith.constant dense<0.000000e+00> : vector<8xf32>
    %345 = vector.multi_reduction <add>, %344, %cst_122 [1] : vector<8x8xf32> to vector<8xf32>
    %346 = vector.shape_cast %345 : vector<8xf32> to vector<8x1xf32>
    %347 = tpu.reciprocal %346 {approx = true} : vector<8x1xf32> -> vector<8x1xf32>
    %348 = vector.broadcast %347 : vector<8x1xf32> to vector<8x8xf32>
    %349 = arith.mulf %344, %348 : vector<8x8xf32>
    %350 = arith.truncf %349 : vector<8x8xf32> to vector<8x8xbf16>
    %cst_123 = arith.constant dense<0.000000e+00> : vector<8x32xf32>
    %351 = tpu.matmul %350, %338, %cst_123 {dimension_numbers = #tpu.dot_dimension_numbers<[1], [0], [0], [1], [0, 0, 1, 1], [], []>} : vector<8x8xbf16>, vector<8x32xbf16>, vector<8x32xf32> -> vector<8x32xf32>
    %c0_124 = arith.constant 0 : index
    %c96_125 = arith.constant 96 : index
    %352 = vector.load %arg33[%c0_124, %c96_125] : memref<16x128xf32, #tpu.memory_space<vmem>>, vector<8x32xf32>
    tpu.vector_store %arg33[%c0_124, %c96_125], %351 {strides = array<i32>} : memref<16x128xf32, #tpu.memory_space<vmem>>, vector<8x32xf32>,
    %353 = vector.extract_strided_slice %272 {offsets = [8, 0], sizes = [8, 32], strides = [1, 1]} : vector<16x384xf32> to vector<8x32xf32>
    %354 = arith.truncf %353 : vector<8x32xf32> to vector<8x32xbf16>
    %355 = vector.extract_strided_slice %272 {offsets = [8, 128], sizes = [8, 32], strides = [1, 1]} : vector<16x384xf32> to vector<8x32xf32>
    %356 = arith.truncf %355 : vector<8x32xf32> to vector<8x32xbf16>
    %357 = vector.extract_strided_slice %272 {offsets = [8, 256], sizes = [8, 32], strides = [1, 1]} : vector<16x384xf32> to vector<8x32xf32>
    %358 = arith.truncf %357 : vector<8x32xf32> to vector<8x32xbf16>
    %cst_126 = arith.constant dense<0.000000e+00> : vector<8x8xf32>
    %359 = tpu.matmul %354, %356, %cst_126 {dimension_numbers = #tpu.dot_dimension_numbers<[1], [1], [0], [0], [0, 0, 1, 0], [], []>} : vector<8x32xbf16>, vector<8x32xbf16>, vector<8x8xf32> -> vector<8x8xf32>
    %cst_127 = arith.constant dense<0xFF800000> : vector<8xf32>
    %360 = vector.multi_reduction <maximumf>, %359, %cst_127 [1] : vector<8x8xf32> to vector<8xf32>
    %361 = vector.shape_cast %360 : vector<8xf32> to vector<8x1xf32>
    %362 = vector.broadcast %361 : vector<8x1xf32> to vector<8x8xf32>
    %363 = arith.subf %359, %362 : vector<8x8xf32>
    %364 = math.exp %363 : vector<8x8xf32>
    %cst_128 = arith.constant dense<0.000000e+00> : vector<8xf32>
    %365 = vector.multi_reduction <add>, %364, %cst_128 [1] : vector<8x8xf32> to vector<8xf32>
    %366 = vector.shape_cast %365 : vector<8xf32> to vector<8x1xf32>
    %367 = tpu.reciprocal %366 {approx = true} : vector<8x1xf32> -> vector<8x1xf32>
    %368 = vector.broadcast %367 : vector<8x1xf32> to vector<8x8xf32>
    %369 = arith.mulf %364, %368 : vector<8x8xf32>
    %370 = arith.truncf %369 : vector<8x8xf32> to vector<8x8xbf16>
    %cst_129 = arith.constant dense<0.000000e+00> : vector<8x32xf32>
    %371 = tpu.matmul %370, %358, %cst_129 {dimension_numbers = #tpu.dot_dimension_numbers<[1], [0], [0], [1], [0, 0, 1, 1], [], []>} : vector<8x8xbf16>, vector<8x32xbf16>, vector<8x32xf32> -> vector<8x32xf32>
    %c8_130 = arith.constant 8 : index
    %c0_131 = arith.constant 0 : index
    %372 = vector.load %arg33[%c8_130, %c0_131] : memref<16x128xf32, #tpu.memory_space<vmem>>, vector<8x32xf32>
    tpu.vector_store %arg33[%c8_130, %c0_131], %371 {strides = array<i32>} : memref<16x128xf32, #tpu.memory_space<vmem>>, vector<8x32xf32>,
    %373 = vector.extract_strided_slice %272 {offsets = [8, 32], sizes = [8, 32], strides = [1, 1]} : vector<16x384xf32> to vector<8x32xf32>
    %374 = arith.truncf %373 : vector<8x32xf32> to vector<8x32xbf16>
    %375 = vector.extract_strided_slice %272 {offsets = [8, 160], sizes = [8, 32], strides = [1, 1]} : vector<16x384xf32> to vector<8x32xf32>
    %376 = arith.truncf %375 : vector<8x32xf32> to vector<8x32xbf16>
    %377 = vector.extract_strided_slice %272 {offsets = [8, 288], sizes = [8, 32], strides = [1, 1]} : vector<16x384xf32> to vector<8x32xf32>
    %378 = arith.truncf %377 : vector<8x32xf32> to vector<8x32xbf16>
    %cst_132 = arith.constant dense<0.000000e+00> : vector<8x8xf32>
    %379 = tpu.matmul %374, %376, %cst_132 {dimension_numbers = #tpu.dot_dimension_numbers<[1], [1], [0], [0], [0, 0, 1, 0], [], []>} : vector<8x32xbf16>, vector<8x32xbf16>, vector<8x8xf32> -> vector<8x8xf32>
    %cst_133 = arith.constant dense<0xFF800000> : vector<8xf32>
    %380 = vector.multi_reduction <maximumf>, %379, %cst_133 [1] : vector<8x8xf32> to vector<8xf32>
    %381 = vector.shape_cast %380 : vector<8xf32> to vector<8x1xf32>
    %382 = vector.broadcast %381 : vector<8x1xf32> to vector<8x8xf32>
    %383 = arith.subf %379, %382 : vector<8x8xf32>
    %384 = math.exp %383 : vector<8x8xf32>
    %cst_134 = arith.constant dense<0.000000e+00> : vector<8xf32>
    %385 = vector.multi_reduction <add>, %384, %cst_134 [1] : vector<8x8xf32> to vector<8xf32>
    %386 = vector.shape_cast %385 : vector<8xf32> to vector<8x1xf32>
    %387 = tpu.reciprocal %386 {approx = true} : vector<8x1xf32> -> vector<8x1xf32>
    %388 = vector.broadcast %387 : vector<8x1xf32> to vector<8x8xf32>
    %389 = arith.mulf %384, %388 : vector<8x8xf32>
    %390 = arith.truncf %389 : vector<8x8xf32> to vector<8x8xbf16>
    %cst_135 = arith.constant dense<0.000000e+00> : vector<8x32xf32>
    %391 = tpu.matmul %390, %378, %cst_135 {dimension_numbers = #tpu.dot_dimension_numbers<[1], [0], [0], [1], [0, 0, 1, 1], [], []>} : vector<8x8xbf16>, vector<8x32xbf16>, vector<8x32xf32> -> vector<8x32xf32>
    %c8_136 = arith.constant 8 : index
    %c32_137 = arith.constant 32 : index
    %392 = vector.load %arg33[%c8_136, %c32_137] : memref<16x128xf32, #tpu.memory_space<vmem>>, vector<8x32xf32>
    tpu.vector_store %arg33[%c8_136, %c32_137], %391 {strides = array<i32>} : memref<16x128xf32, #tpu.memory_space<vmem>>, vector<8x32xf32>,
    %393 = vector.extract_strided_slice %272 {offsets = [8, 64], sizes = [8, 32], strides = [1, 1]} : vector<16x384xf32> to vector<8x32xf32>
    %394 = arith.truncf %393 : vector<8x32xf32> to vector<8x32xbf16>
    %395 = vector.extract_strided_slice %272 {offsets = [8, 192], sizes = [8, 32], strides = [1, 1]} : vector<16x384xf32> to vector<8x32xf32>
    %396 = arith.truncf %395 : vector<8x32xf32> to vector<8x32xbf16>
    %397 = vector.extract_strided_slice %272 {offsets = [8, 320], sizes = [8, 32], strides = [1, 1]} : vector<16x384xf32> to vector<8x32xf32>
    %398 = arith.truncf %397 : vector<8x32xf32> to vector<8x32xbf16>
    %cst_138 = arith.constant dense<0.000000e+00> : vector<8x8xf32>
    %399 = tpu.matmul %394, %396, %cst_138 {dimension_numbers = #tpu.dot_dimension_numbers<[1], [1], [0], [0], [0, 0, 1, 0], [], []>} : vector<8x32xbf16>, vector<8x32xbf16>, vector<8x8xf32> -> vector<8x8xf32>
    %cst_139 = arith.constant dense<0xFF800000> : vector<8xf32>
    %400 = vector.multi_reduction <maximumf>, %399, %cst_139 [1] : vector<8x8xf32> to vector<8xf32>
    %401 = vector.shape_cast %400 : vector<8xf32> to vector<8x1xf32>
    %402 = vector.broadcast %401 : vector<8x1xf32> to vector<8x8xf32>
    %403 = arith.subf %399, %402 : vector<8x8xf32>
    %404 = math.exp %403 : vector<8x8xf32>
    %cst_140 = arith.constant dense<0.000000e+00> : vector<8xf32>
    %405 = vector.multi_reduction <add>, %404, %cst_140 [1] : vector<8x8xf32> to vector<8xf32>
    %406 = vector.shape_cast %405 : vector<8xf32> to vector<8x1xf32>
    %407 = tpu.reciprocal %406 {approx = true} : vector<8x1xf32> -> vector<8x1xf32>
    %408 = vector.broadcast %407 : vector<8x1xf32> to vector<8x8xf32>
    %409 = arith.mulf %404, %408 : vector<8x8xf32>
    %410 = arith.truncf %409 : vector<8x8xf32> to vector<8x8xbf16>
    %cst_141 = arith.constant dense<0.000000e+00> : vector<8x32xf32>
    %411 = tpu.matmul %410, %398, %cst_141 {dimension_numbers = #tpu.dot_dimension_numbers<[1], [0], [0], [1], [0, 0, 1, 1], [], []>} : vector<8x8xbf16>, vector<8x32xbf16>, vector<8x32xf32> -> vector<8x32xf32>
    %c8_142 = arith.constant 8 : index
    %c64_143 = arith.constant 64 : index
    %412 = vector.load %arg33[%c8_142, %c64_143] : memref<16x128xf32, #tpu.memory_space<vmem>>, vector<8x32xf32>
    tpu.vector_store %arg33[%c8_142, %c64_143], %411 {strides = array<i32>} : memref<16x128xf32, #tpu.memory_space<vmem>>, vector<8x32xf32>,
    %413 = vector.extract_strided_slice %272 {offsets = [8, 96], sizes = [8, 32], strides = [1, 1]} : vector<16x384xf32> to vector<8x32xf32>
    %414 = arith.truncf %413 : vector<8x32xf32> to vector<8x32xbf16>
    %415 = vector.extract_strided_slice %272 {offsets = [8, 224], sizes = [8, 32], strides = [1, 1]} : vector<16x384xf32> to vector<8x32xf32>
    %416 = arith.truncf %415 : vector<8x32xf32> to vector<8x32xbf16>
    %417 = vector.extract_strided_slice %272 {offsets = [8, 352], sizes = [8, 32], strides = [1, 1]} : vector<16x384xf32> to vector<8x32xf32>
    %418 = arith.truncf %417 : vector<8x32xf32> to vector<8x32xbf16>
    %cst_144 = arith.constant dense<0.000000e+00> : vector<8x8xf32>
    %419 = tpu.matmul %414, %416, %cst_144 {dimension_numbers = #tpu.dot_dimension_numbers<[1], [1], [0], [0], [0, 0, 1, 0], [], []>} : vector<8x32xbf16>, vector<8x32xbf16>, vector<8x8xf32> -> vector<8x8xf32>
    %cst_145 = arith.constant dense<0xFF800000> : vector<8xf32>
    %420 = vector.multi_reduction <maximumf>, %419, %cst_145 [1] : vector<8x8xf32> to vector<8xf32>
    %421 = vector.shape_cast %420 : vector<8xf32> to vector<8x1xf32>
    %422 = vector.broadcast %421 : vector<8x1xf32> to vector<8x8xf32>
    %423 = arith.subf %419, %422 : vector<8x8xf32>
    %424 = math.exp %423 : vector<8x8xf32>
    %cst_146 = arith.constant dense<0.000000e+00> : vector<8xf32>
    %425 = vector.multi_reduction <add>, %424, %cst_146 [1] : vector<8x8xf32> to vector<8xf32>
    %426 = vector.shape_cast %425 : vector<8xf32> to vector<8x1xf32>
    %427 = tpu.reciprocal %426 {approx = true} : vector<8x1xf32> -> vector<8x1xf32>
    %428 = vector.broadcast %427 : vector<8x1xf32> to vector<8x8xf32>
    %429 = arith.mulf %424, %428 : vector<8x8xf32>
    %430 = arith.truncf %429 : vector<8x8xf32> to vector<8x8xbf16>
    %cst_147 = arith.constant dense<0.000000e+00> : vector<8x32xf32>
    %431 = tpu.matmul %430, %418, %cst_147 {dimension_numbers = #tpu.dot_dimension_numbers<[1], [0], [0], [1], [0, 0, 1, 1], [], []>} : vector<8x8xbf16>, vector<8x32xbf16>, vector<8x32xf32> -> vector<8x32xf32>
    %c8_148 = arith.constant 8 : index
    %c96_149 = arith.constant 96 : index
    %432 = vector.load %arg33[%c8_148, %c96_149] : memref<16x128xf32, #tpu.memory_space<vmem>>, vector<8x32xf32>
    tpu.vector_store %arg33[%c8_148, %c96_149], %431 {strides = array<i32>} : memref<16x128xf32, #tpu.memory_space<vmem>>, vector<8x32xf32>,
    %c0_150 = arith.constant 0 : index
    %c0_151 = arith.constant 0 : index
    %433 = vector.load %arg33[%c0_150, %c0_151] : memref<16x128xf32, #tpu.memory_space<vmem>>, vector<16x128xf32>
    %434 = arith.truncf %433 : vector<16x128xf32> to vector<16x128xbf16>
    %c0_152 = arith.constant 0 : index
    %c0_153 = arith.constant 0 : index
    %435 = vector.load %arg17[%c0_152, %c0_153] : memref<128x128xbf16, #tpu.memory_space<vmem>>, vector<128x128xbf16>
    %cst_154 = arith.constant dense<0.000000e+00> : vector<16x128xf32>
    %436 = tpu.matmul %434, %435, %cst_154 {dimension_numbers = #tpu.dot_dimension_numbers<[1], [0], [0], [1], [0, 0, 1, 1], [], []>} : vector<16x128xbf16>, vector<128x128xbf16>, vector<16x128xf32> -> vector<16x128xf32>
    %c0_155 = arith.constant 0 : index
    %c0_156 = arith.constant 0 : index
    %437 = vector.load %arg18[%c0_155, %c0_156] : memref<1x128xf32, #tpu.memory_space<vmem>>, vector<1x128xf32>
    %438 = vector.broadcast %437 : vector<1x128xf32> to vector<16x128xf32>
    %439 = arith.addf %436, %438 : vector<16x128xf32>
    %440 = arith.addf %439, %266 : vector<16x128xf32>
    %c0_157 = arith.constant 0 : index
    %c0_158 = arith.constant 0 : index
    %441 = vector.load %arg19[%c0_157, %c0_158] : memref<1x128xf32, #tpu.memory_space<vmem>>, vector<1x128xf32>
    %c0_159 = arith.constant 0 : index
    %c0_160 = arith.constant 0 : index
    %442 = vector.load %arg20[%c0_159, %c0_160] : memref<1x128xf32, #tpu.memory_space<vmem>>, vector<1x128xf32>
    %cst_161 = arith.constant dense<0.000000e+00> : vector<16xf32>
    %443 = vector.multi_reduction <add>, %440, %cst_161 [1] : vector<16x128xf32> to vector<16xf32>
    %444 = vector.shape_cast %443 : vector<16xf32> to vector<16x1xf32>
    %cst_162 = arith.constant 1.280000e+02 : f32
    %445 = vector.broadcast %cst_162 : f32 to vector<16x1xf32>
    %446 = arith.divf %444, %445 : vector<16x1xf32>
    %447 = vector.broadcast %446 : vector<16x1xf32> to vector<16x128xf32>
    %448 = arith.subf %440, %447 : vector<16x128xf32>
    %449 = arith.mulf %448, %448 : vector<16x128xf32>
    %cst_163 = arith.constant dense<0.000000e+00> : vector<16xf32>
    %450 = vector.multi_reduction <add>, %449, %cst_163 [1] : vector<16x128xf32> to vector<16xf32>
    %451 = vector.shape_cast %450 : vector<16xf32> to vector<16x1xf32>
    %cst_164 = arith.constant 1.280000e+02 : f32
    %452 = vector.broadcast %cst_164 : f32 to vector<16x1xf32>
    %453 = arith.divf %451, %452 : vector<16x1xf32>
    %cst_165 = arith.constant 9.99999996E-13 : f32
    %454 = vector.broadcast %cst_165 : f32 to vector<16x1xf32>
    %455 = arith.addf %453, %454 : vector<16x1xf32>
    %456 = math.rsqrt %455 : vector<16x1xf32>
    %457 = vector.broadcast %456 : vector<16x1xf32> to vector<16x128xf32>
    %458 = arith.mulf %448, %457 : vector<16x128xf32>
    %459 = vector.broadcast %441 : vector<1x128xf32> to vector<16x128xf32>
    %460 = arith.mulf %458, %459 : vector<16x128xf32>
    %461 = vector.broadcast %442 : vector<1x128xf32> to vector<16x128xf32>
    %462 = arith.addf %460, %461 : vector<16x128xf32>
    %463 = arith.truncf %462 : vector<16x128xf32> to vector<16x128xbf16>
    %c0_166 = arith.constant 0 : index
    %c0_167 = arith.constant 0 : index
    %464 = vector.load %arg21[%c0_166, %c0_167] : memref<128x256xbf16, #tpu.memory_space<vmem>>, vector<128x256xbf16>
    %cst_168 = arith.constant dense<0.000000e+00> : vector<16x256xf32>
    %465 = tpu.matmul %463, %464, %cst_168 {dimension_numbers = #tpu.dot_dimension_numbers<[1], [0], [0], [1], [0, 0, 1, 1], [], []>} : vector<16x128xbf16>, vector<128x256xbf16>, vector<16x256xf32> -> vector<16x256xf32>
    %c0_169 = arith.constant 0 : index
    %c0_170 = arith.constant 0 : index
    %466 = vector.load %arg22[%c0_169, %c0_170] : memref<1x256xf32, #tpu.memory_space<vmem>>, vector<1x256xf32>
    %467 = vector.broadcast %466 : vector<1x256xf32> to vector<16x256xf32>
    %468 = arith.addf %465, %467 : vector<16x256xf32>
    %cst_171 = arith.constant 5.000000e-01 : f32
    %469 = vector.broadcast %cst_171 : f32 to vector<16x256xf32>
    %470 = arith.mulf %469, %468 : vector<16x256xf32>
    %cst_172 = arith.constant 4.471500e-02 : f32
    %471 = vector.broadcast %cst_172 : f32 to vector<16x256xf32>
    %472 = arith.mulf %471, %468 : vector<16x256xf32>
    %473 = arith.mulf %472, %468 : vector<16x256xf32>
    %474 = arith.mulf %473, %468 : vector<16x256xf32>
    %475 = arith.addf %468, %474 : vector<16x256xf32>
    %cst_173 = arith.constant 0.797884583 : f32
    %476 = vector.broadcast %cst_173 : f32 to vector<16x256xf32>
    %477 = arith.mulf %476, %475 : vector<16x256xf32>
    %478 = math.tanh %477 : vector<16x256xf32>
    %cst_174 = arith.constant 1.000000e+00 : f32
    %479 = vector.broadcast %cst_174 : f32 to vector<16x256xf32>
    %480 = arith.addf %479, %478 : vector<16x256xf32>
    %481 = arith.mulf %470, %480 : vector<16x256xf32>
    %482 = arith.truncf %481 : vector<16x256xf32> to vector<16x256xbf16>
    %c0_175 = arith.constant 0 : index
    %c0_176 = arith.constant 0 : index
    %483 = vector.load %arg23[%c0_175, %c0_176] : memref<256x128xbf16, #tpu.memory_space<vmem>>, vector<256x128xbf16>
    %cst_177 = arith.constant dense<0.000000e+00> : vector<16x128xf32>
    %484 = tpu.matmul %482, %483, %cst_177 {dimension_numbers = #tpu.dot_dimension_numbers<[1], [0], [0], [1], [0, 0, 1, 1], [], []>} : vector<16x256xbf16>, vector<256x128xbf16>, vector<16x128xf32> -> vector<16x128xf32>
    %c0_178 = arith.constant 0 : index
    %c0_179 = arith.constant 0 : index
    %485 = vector.load %arg24[%c0_178, %c0_179] : memref<1x128xf32, #tpu.memory_space<vmem>>, vector<1x128xf32>
    %486 = vector.broadcast %485 : vector<1x128xf32> to vector<16x128xf32>
    %487 = arith.addf %484, %486 : vector<16x128xf32>
    %488 = arith.addf %487, %462 : vector<16x128xf32>
    %c0_180 = arith.constant 0 : index
    %c0_181 = arith.constant 0 : index
    %489 = vector.load %arg25[%c0_180, %c0_181] : memref<1x128xf32, #tpu.memory_space<vmem>>, vector<1x128xf32>
    %c0_182 = arith.constant 0 : index
    %c0_183 = arith.constant 0 : index
    %490 = vector.load %arg26[%c0_182, %c0_183] : memref<1x128xf32, #tpu.memory_space<vmem>>, vector<1x128xf32>
    %cst_184 = arith.constant dense<0.000000e+00> : vector<16xf32>
    %491 = vector.multi_reduction <add>, %488, %cst_184 [1] : vector<16x128xf32> to vector<16xf32>
    %492 = vector.shape_cast %491 : vector<16xf32> to vector<16x1xf32>
    %cst_185 = arith.constant 1.280000e+02 : f32
    %493 = vector.broadcast %cst_185 : f32 to vector<16x1xf32>
    %494 = arith.divf %492, %493 : vector<16x1xf32>
    %495 = vector.broadcast %494 : vector<16x1xf32> to vector<16x128xf32>
    %496 = arith.subf %488, %495 : vector<16x128xf32>
    %497 = arith.mulf %496, %496 : vector<16x128xf32>
    %cst_186 = arith.constant dense<0.000000e+00> : vector<16xf32>
    %498 = vector.multi_reduction <add>, %497, %cst_186 [1] : vector<16x128xf32> to vector<16xf32>
    %499 = vector.shape_cast %498 : vector<16xf32> to vector<16x1xf32>
    %cst_187 = arith.constant 1.280000e+02 : f32
    %500 = vector.broadcast %cst_187 : f32 to vector<16x1xf32>
    %501 = arith.divf %499, %500 : vector<16x1xf32>
    %cst_188 = arith.constant 9.99999996E-13 : f32
    %502 = vector.broadcast %cst_188 : f32 to vector<16x1xf32>
    %503 = arith.addf %501, %502 : vector<16x1xf32>
    %504 = math.rsqrt %503 : vector<16x1xf32>
    %505 = vector.broadcast %504 : vector<16x1xf32> to vector<16x128xf32>
    %506 = arith.mulf %496, %505 : vector<16x128xf32>
    %507 = vector.broadcast %489 : vector<1x128xf32> to vector<16x128xf32>
    %508 = arith.mulf %506, %507 : vector<16x128xf32>
    %509 = vector.broadcast %490 : vector<1x128xf32> to vector<16x128xf32>
    %510 = arith.addf %508, %509 : vector<16x128xf32>
    %511 = vector.shape_cast %510 : vector<16x128xf32> to vector<2x8x128xf32>
    %512 = vector.extract_strided_slice %511 {offsets = [0, 0, 0], sizes = [2, 1, 128], strides = [1, 1, 1]} : vector<2x8x128xf32> to vector<2x1x128xf32>
    %513 = vector.shape_cast %512 : vector<2x1x128xf32> to vector<2x128xf32>
    %514 = arith.truncf %513 : vector<2x128xf32> to vector<2x128xbf16>
    %c0_189 = arith.constant 0 : index
    %c0_190 = arith.constant 0 : index
    %515 = vector.load %arg27[%c0_189, %c0_190] : memref<128x128xbf16, #tpu.memory_space<vmem>>, vector<128x128xbf16>
    %cst_191 = arith.constant dense<0.000000e+00> : vector<2x128xf32>
    %516 = tpu.matmul %514, %515, %cst_191 {dimension_numbers = #tpu.dot_dimension_numbers<[1], [0], [0], [1], [0, 0, 1, 1], [], []>} : vector<2x128xbf16>, vector<128x128xbf16>, vector<2x128xf32> -> vector<2x128xf32>
    %c0_192 = arith.constant 0 : index
    %c0_193 = arith.constant 0 : index
    %517 = vector.load %arg28[%c0_192, %c0_193] : memref<1x128xf32, #tpu.memory_space<vmem>>, vector<1x128xf32>
    %518 = vector.broadcast %517 : vector<1x128xf32> to vector<2x128xf32>
    %519 = arith.addf %516, %518 : vector<2x128xf32>
    %520 = math.tanh %519 : vector<2x128xf32>
    %521 = arith.truncf %520 : vector<2x128xf32> to vector<2x128xbf16>
    %c0_194 = arith.constant 0 : index
    %c0_195 = arith.constant 0 : index
    %522 = vector.load %arg29[%c0_194, %c0_195] : memref<128x16xbf16, #tpu.memory_space<vmem>>, vector<128x16xbf16>
    %cst_196 = arith.constant dense<0.000000e+00> : vector<2x16xf32>
    %523 = tpu.matmul %521, %522, %cst_196 {dimension_numbers = #tpu.dot_dimension_numbers<[1], [0], [0], [1], [0, 0, 1, 1], [], []>} : vector<2x128xbf16>, vector<128x16xbf16>, vector<2x16xf32> -> vector<2x16xf32>
    %c0_197 = arith.constant 0 : index
    %c0_198 = arith.constant 0 : index
    %524 = vector.load %arg30[%c0_197, %c0_198] : memref<1x16xf32, #tpu.memory_space<vmem>>, vector<1x16xf32>
    %525 = vector.broadcast %524 : vector<1x16xf32> to vector<2x16xf32>
    %526 = arith.addf %523, %525 : vector<2x16xf32>
    %cst_199 = arith.constant dense<0xFF800000> : vector<2xf32>
    %527 = vector.multi_reduction <maximumf>, %526, %cst_199 [1] : vector<2x16xf32> to vector<2xf32>
    %528 = vector.shape_cast %527 : vector<2xf32> to vector<2x1xf32>
    %529 = vector.broadcast %528 : vector<2x1xf32> to vector<2x16xf32>
    %530 = arith.subf %526, %529 : vector<2x16xf32>
    %531 = math.exp %530 : vector<2x16xf32>
    %cst_200 = arith.constant dense<0.000000e+00> : vector<2xf32>
    %532 = vector.multi_reduction <add>, %531, %cst_200 [1] : vector<2x16xf32> to vector<2xf32>
    %533 = vector.shape_cast %532 : vector<2xf32> to vector<2x1xf32>
    %534 = math.log %533 : vector<2x1xf32>
    %535 = vector.broadcast %534 : vector<2x1xf32> to vector<2x16xf32>
    %536 = arith.subf %530, %535 : vector<2x16xf32>
    %537 = tpu.iota {dimensions = array<i32: 1>} : vector<2x16xi32>
    %c0_201 = arith.constant 0 : index
    %c0_202 = arith.constant 0 : index
    %538 = vector.load %arg31[%c0_201, %c0_202] : memref<2x1xi32, #tpu.memory_space<vmem>>, vector<2x1xi32>
    %539 = vector.broadcast %538 : vector<2x1xi32> to vector<2x16xi32>
    %540 = arith.cmpi eq, %537, %539 : vector<2x16xi32>
    %cst_203 = arith.constant 0.000000e+00 : f32
    %541 = vector.broadcast %cst_203 : f32 to vector<2x16xf32>
    %542 = arith.select %540, %536, %541 : vector<2x16xi1>, vector<2x16xf32>
    %cst_204 = arith.constant dense<0.000000e+00> : vector<2xf32>
    %543 = vector.multi_reduction <add>, %542, %cst_204 [1] : vector<2x16xf32> to vector<2xf32>
    %544 = vector.shape_cast %543 : vector<2xf32> to vector<2x1xf32>
    %cst_205 = arith.constant 0.000000e+00 : f32
    %545 = vector.broadcast %cst_205 : f32 to vector<2x1xf32>
    %546 = arith.subf %545, %544 : vector<2x1xf32>
    %cst_206 = arith.constant dense<0.000000e+00> : vector<1xf32>
    %547 = vector.multi_reduction <add>, %546, %cst_206 [0] : vector<2x1xf32> to vector<1xf32>
    %548 = vector.shape_cast %547 : vector<1xf32> to vector<1x1xf32>
    %cst_207 = arith.constant 5.000000e-01 : f32
    %549 = vector.broadcast %cst_207 : f32 to vector<1x1xf32>
    %550 = arith.mulf %548, %549 : vector<1x1xf32>
    %c0_208 = arith.constant 0 : index
    %c0_209 = arith.constant 0 : index
    %551 = vector.load %arg32[%c0_208, %c0_209] : memref<1x1xf32, #tpu.memory_space<vmem>>, vector<1x1xf32>
    tpu.vector_store %arg32[%c0_208, %c0_209], %550 {strides = array<i32>} : memref<1x1xf32, #tpu.memory_space<vmem>>, vector<1x1xf32>,
    return
  }
}

</mosaic_0001>

<bundles_post_ra>
// kernel: bert_classification_loss.1
= control target key start
LH: loop header
LB: loop body
LE: loop exit
PB: predicated region body
PF: predicated region fallthrough
CT: control target
= control target key end

     0   :  { %s5693_s6 = smov 1   ;;  %s5694_s10 = smov 2   ;;  %s6488_s0 = inlined_call_operand.smem [shape: u32[33], index: -1, kind: input, shape index: {}] }
   0x1   :  { %s5765_s5 = sld [smem:[%s6488_s0]]   ;;  %s5695_s14 = smov 3  }
   0x2   :  { %s5770_s9 = sld [smem:[%s6488_s0 + %s5693_s6]]   ;;  %s5696_s18 = smov 4  }
   0x3   :  { %s5775_s13 = sld [smem:[%s6488_s0 + %s5694_s10]]   ;;  %s5697_s22 = smov 5  }
   0x4   :  { %s5780_s17 = sld [smem:[%s6488_s0 + %s5695_s14]]   ;;  %s5698_s26 = smov 6  }
   0x5   :  { %s5785_s21 = sld [smem:[%s6488_s0 + %s5696_s18]]   ;;  %s5699_s30 = smov 7  }
   0x6   :  { %s5790_s25 = sld [smem:[%s6488_s0 + %s5697_s22]]   ;;  %s5700_s4 = smov 8  }
   0x7   :  { %6492 = sst [smem:[#allocation48_spill]] %s5765_s5  ;;  %s5701_s10 = smov 9  }
   0x8   :  { %6493 = sst [smem:[#allocation49_spill]] %s5770_s9  ;;  %s5702_s15 = smov 10  }
   0x9   :  { %s5795_s29 = sld [smem:[%s6488_s0 + %s5698_s26]]   ;;  %s5703_s20 = smov 11  }
   0xa   :  { %6494 = sst [smem:[#allocation50_spill]] %s5780_s17  ;;  %s5704_s26 = smov 12  }
   0xb   :  { %s5800_s3 = sld [smem:[%s6488_s0 + %s5699_s30]]   ;;  %s5705_s1 = smov 13  }
   0xc   :  { %s5805_s8 = sld [smem:[%s6488_s0 + %s5700_s4]]   ;;  %s5706_s7 = smov 14  }
   0xd   :  { %s5810_s14 = sld [smem:[%s6488_s0 + %s5701_s10]]   ;;  %s5708_s22 = smov 16  }
   0xe   :  { %s5815_s19 = sld [smem:[%s6488_s0 + %s5702_s15]]   ;;  %s5707_s15 = smov 15  }
   0xf   :  { %s5820_s24 = sld [smem:[%s6488_s0 + %s5703_s20]]   ;;  %s5709_s28 = smov 17  }
  0x10   :  { %s5825_s30 = sld [smem:[%s6488_s0 + %s5704_s26]]  }
  0x11   :  { %s5830_s6 = sld [smem:[%s6488_s0 + %s5705_s1]]  }
  0x12   :  { %s5835_s12 = sld [smem:[%s6488_s0 + %s5706_s7]]   ;;  %s5710_s7 = smov 18  }
  0x13   :  { %6495 = sst [smem:[#allocation51_spill]] %s5810_s14 }
  0x14   :  { %s5840_s20 = sld [smem:[%s6488_s0 + %s5707_s15]]   ;;  %s5711_s15 = smov 19  }
  0x15   :  { %s5845_s27 = sld [smem:[%s6488_s0 + %s5708_s22]]   ;;  %s5712_s22 = smov 20  }
  0x16   :  { %s5850_s4 = sld [smem:[%s6488_s0 + %s5709_s28]]   ;;  %s5713_s28 = smov 21  }
  0x17   :  { %s5855_s14 = sld [smem:[%s6488_s0 + %s5710_s7]]   ;;  %s5714_s7 = smov 22  }
  0x18   :  { %6496 = sst [smem:[#allocation52_spill]] %s5835_s12 }
  0x19   :  { %s5860_s9 = sld [smem:[%s6488_s0 + %s5711_s15]]   ;;  %s5715_s15 = smov 23  }
  0x1a   :  { %s5870_s17 = sld [smem:[%s6488_s0 + %s5713_s28]]   ;;  %s5717_s28 = smov 25  }
  0x1b   :  { %6497 = sst [smem:[#allocation53_spill]] %s5845_s27 }
  0x1c   :  { %6498 = sst [smem:[#allocation54_spill]] %s5850_s4 }
  0x1d   :  { %s5865_s27 = sld [smem:[%s6488_s0 + %s5712_s22]]   ;;  %s5716_s22 = smov 24  }
  0x1e   :  { %s5875_s5 = sld [smem:[%s6488_s0 + %s5714_s7]]   ;;  %s5718_s7 = smov 26  }
  0x1f   :  { %6499 = sst [smem:[#allocation55_spill]] %s5860_s9 }
  0x20   :  { %6501 = sst [smem:[#allocation57_spill]] %s5870_s17 }
  0x21   :  { %s5880_s9 = sld [smem:[%s6488_s0 + %s5715_s15]]   ;;  %s5719_s15 = smov 27  }
  0x22   :  { %s5890_s17 = sld [smem:[%s6488_s0 + %s5717_s28]]   ;;  %s5721_s28 = smov 29  }
  0x23   :  { %6500 = sst [smem:[#allocation56_spill]] %s5865_s27 }
  0x24   :  { %s5885_s27 = sld [smem:[%s6488_s0 + %s5716_s22]]   ;;  %s5720_s22 = smov 28  }
  0x25   :  { %s5895_s4 = sld [smem:[%s6488_s0 + %s5718_s7]]   ;;  %s5722_s7 = smov 30  }
  0x26   :  { %s5905_s12 = sld [smem:[%s6488_s0 + %s5720_s22]]   ;;  %s5724_s22 = smov 32  }
  0x27   :  { %6502 = sst [smem:[#allocation58_spill]] %s5880_s9 }
  0x28   :  { %6503 = sst [smem:[#allocation59_spill]] %s5890_s17 }
  0x29   :  { %s5900_s9 = sld [smem:[%s6488_s0 + %s5719_s15]]   ;;  %s5723_s15 = smov 31  }
  0x2a   :  { %s5910_s17 = sld [smem:[%s6488_s0 + %s5721_s28]]  }
  0x2b   :  { %6504 = sst [smem:[#allocation60_spill]] %s5895_s4 }
  0x2c   :  { %6506 = sst [smem:[#allocation62_spill]] %s5905_s12 }
  0x2d   :  { %s5915_s4 = sld [smem:[%s6488_s0 + %s5722_s7]]  }
  0x2e   :  { %s5925_s12 = sld [smem:[%s6488_s0 + %s5724_s22]]  }
  0x2f   :  { %6505 = sst [smem:[#allocation61_spill]] %s5900_s9 }
  0x30   :  { %s5920_s9 = sld [smem:[%s6488_s0 + %s5723_s15]]  }
  0x31   :  { %70 = vsyncpa [#allocation4], 0 }
  0x32   :  { %71 = vsyncpa [#allocation7], 0 }
  0x33   :  { %72 = vsyncpa [#allocation10], 0 }
  0x34   :  { %73 = vsyncpa [#allocation13], 0 }
  0x35   :  { %74 = vsyncpa [#allocation16], 0 }
  0x36   :  { %75 = vsyncpa [#allocation19], 0 }
  0x37   :  { %76 = vsyncpa [#allocation22], 0 }
  0x38   :  { %77 = vsyncpa [#allocation25], 0 }
  0x39   :  { %78 = vsyncpa [#allocation28], 0 }
  0x3a   :  { %79 = vsyncpa [#allocation31], 0 }
  0x3b   :  { %80 = vsyncpa [#allocation34], 0 }
  0x3c   :  { %81 = vsyncpa [#allocation5], 0  ;;  %s5725_s28 = smov [#allocation6]   ;;  %s5726_s2 = smov [#allocation9]  }
  0x3d   :  { %s104_s1 = sshll.u32 %s5725_s28, 4  ;;  %s126_s7 = sshll.u32 %s5726_s2, 4  ;;  %s105_s1 = int_to_ptr.vmem [resolvable:$true] %s104_s1  ;;  %s127_s7 = int_to_ptr.vmem [resolvable:$true] %s126_s7 }
  0x3e   :  { %s5257_s0 = scalar_lea.vmem %s105_s1, 48  ;;  %s5261_s10 = scalar_lea.vmem %s105_s1, 64 }
  0x3f   :  { %p5258_p0 = scmp.ne.s32.totalorder %s105_s1, %s5257_s0  ;;  %p5262_p1 = scmp.lt.s32.totalorder %s105_s1, %s105_s1 }
  0x40   :  { %p5263_p2 = scmp.lt.s32.totalorder %s5261_s10, %s5257_s0 }
  0x42   :  { %p5264_p3 = por %p5263_p2, %p5262_p1 }
  0x44   :  { %p5265_p4 = pnand %p5264_p3, %p5258_p0 }
  0x46   :  { %5268 = shalt.err (!%p5265_p4)
}
  0x47   :  { %107 = dma.hbm_to_vmem [thread:$0]  %s5785_s21, 48, %s105_s1, [#allocation7]  }
  0x48   :  { %s5277_s11 = scalar_lea.vmem %s127_s7, 16  ;;  %s5281_s15 = scalar_lea.vmem %s127_s7, 32 }
  0x49   :  { %p5278_p5 = scmp.ne.s32.totalorder %s127_s7, %s5277_s11  ;;  %p5282_p6 = scmp.lt.s32.totalorder %s127_s7, %s127_s7 }
  0x4a   :  { %p5283_p7 = scmp.lt.s32.totalorder %s5281_s15, %s5277_s11 }
  0x4c   :  { %p5284_p8 = por %p5283_p7, %p5282_p6 }
  0x4e   :  { %p5285_p9 = pnand %p5284_p8, %p5278_p5 }
  0x50   :  { %5288 = shalt.err (!%p5285_p9)
}
  0x51   :  { %129 = dma.hbm_to_vmem [thread:$0]  %s5795_s29, 16, %s127_s7, [#allocation10]  }
  0x52   :  { %s5727_s16 = smov [#allocation12]  }
  0x53   :  { %s146_s18 = sshll.u32 %s5727_s16, 4  ;;  %s147_s18 = int_to_ptr.vmem [resolvable:$true] %s146_s18 }
  0x54   :  { %s5297_s22 = scalar_lea.vmem %s147_s18, 16  ;;  %s5301_s23 = scalar_lea.vmem %s147_s18, 32 }
  0x55   :  { %p5298_p10 = scmp.ne.s32.totalorder %s147_s18, %s5297_s22  ;;  %p5302_p11 = scmp.lt.s32.totalorder %s147_s18, %s147_s18 }
  0x56   :  { %p5303_p12 = scmp.lt.s32.totalorder %s5301_s23, %s5297_s22 }
  0x58   :  { %p5304_p13 = por %p5303_p12, %p5302_p11 }
  0x5a   :  { %p5305_p0 = pnand %p5304_p13, %p5298_p10 }
  0x5c   :  { %5308 = shalt.err (!%p5305_p0)
}
  0x5d   :  { %149 = dma.hbm_to_vmem [thread:$0]  %s5805_s8, 16, %s147_s18, [#allocation13]  }
  0x5e   :  { %s5728_s21 = smov [#allocation15]   ;;  %s5729_s28 = smov [#allocation18]  }
  0x5f   :  { %s167_s26 = sshll.u32 %s5728_s21, 4  ;;  %s190_s1 = sshll.u32 %s5729_s28, 4  ;;  %s168_s26 = int_to_ptr.vmem [resolvable:$true] %s167_s26  ;;  %s191_s1 = int_to_ptr.vmem [resolvable:$true] %s190_s1 }
  0x60   :  { %s5317_s2 = scalar_lea.vmem %s168_s26, 2048  ;;  %p5322_p2 = scmp.lt.s32.totalorder %s168_s26, %s168_s26 }
  0x61   :  { %p5318_p1 = scmp.ne.s32.totalorder %s168_s26, %s5317_s2  ;;  %p5323_p3 = scmp.lt.s32.totalorder %s5317_s2, %s5317_s2 }
  0x63   :  { %p5324_p4 = por %p5323_p3, %p5322_p2 }
  0x65   :  { %p5325_p5 = pnand %p5324_p4, %p5318_p1 }
  0x67   :  { %5328 = shalt.err (!%p5325_p5)
}
  0x68   :  { %s5730_s29 = smov 64   ;;  %s5731_s7 = smov 4  }
  0x69   :  { %173 = dma.hbm_to_vmem [thread:$0]  %s5820_s24, 2048, %s168_s26, [#allocation16], %s5730_s29, %s5730_s29, %s5731_s7  }
  0x6a   :  { %s5337_s8 = scalar_lea.vmem %s191_s1, 16  ;;  %s5341_s0 = scalar_lea.vmem %s191_s1, 32 }
  0x6b   :  { %p5338_p6 = scmp.ne.s32.totalorder %s191_s1, %s5337_s8  ;;  %p5342_p7 = scmp.lt.s32.totalorder %s191_s1, %s191_s1 }
  0x6c   :  { %p5343_p8 = scmp.lt.s32.totalorder %s5341_s0, %s5337_s8 }
  0x6e   :  { %p5344_p9 = por %p5343_p8, %p5342_p7 }
  0x70   :  { %p5345_p10 = pnand %p5344_p9, %p5338_p6 }
  0x72   :  { %5348 = shalt.err (!%p5345_p10)
}
  0x73   :  { %193 = dma.hbm_to_vmem [thread:$0]  %s5830_s6, 16, %s191_s1, [#allocation19]  }
  0x74   :  { %s5732_s10 = smov [#allocation21]  }
  0x75   :  { %s209_s11 = sshll.u32 %s5732_s10, 4  ;;  %s210_s11 = int_to_ptr.vmem [resolvable:$true] %s209_s11 }
  0x76   :  { %s5357_s15 = scalar_lea.vmem %s210_s11, 3072  ;;  %p5362_p12 = scmp.lt.s32.totalorder %s210_s11, %s210_s11 }
  0x77   :  { %p5358_p11 = scmp.ne.s32.totalorder %s210_s11, %s5357_s15  ;;  %p5363_p13 = scmp.lt.s32.totalorder %s5357_s15, %s5357_s15 }
  0x79   :  { %p5364_p0 = por %p5363_p13, %p5362_p12 }
  0x7b   :  { %p5365_p1 = pnand %p5364_p0, %p5358_p11 }
  0x7d   :  { %5368 = shalt.err (!%p5365_p1)
}
  0x7e   :  { %s5733_s24 = smov 192   ;;  %s5734_s16 = smov 12  }
  0x7f   :  { %215 = dma.hbm_to_vmem [thread:$0]  %s5840_s20, 3072, %s210_s11, [#allocation22], %s5733_s24, %s5733_s24, %s5734_s16  }
  0x80   :  { %s5735_s18 = smov [#allocation24]   ;;  %s5736_s23 = smov [#allocation27]  }
  0x81   :  { %s236_s22 = sshll.u32 %s5735_s18, 4  ;;  %s262_s21 = sshll.u32 %s5736_s23, 4  ;;  %s237_s22 = int_to_ptr.vmem [resolvable:$true] %s236_s22  ;;  %s263_s21 = int_to_ptr.vmem [resolvable:$true] %s262_s21 }
  0x82   :  { %s5377_s6 = scalar_lea.vmem %s237_s22, 16  ;;  %s5381_s26 = scalar_lea.vmem %s237_s22, 32 }
  0x83   :  { %p5378_p2 = scmp.ne.s32.totalorder %s237_s22, %s5377_s6  ;;  %p5382_p3 = scmp.lt.s32.totalorder %s237_s22, %s237_s22 }
  0x84   :  { %p5383_p4 = scmp.lt.s32.totalorder %s5381_s26, %s5377_s6 }
  0x86   :  { %p5384_p5 = por %p5383_p4, %p5382_p3 }
  0x88   :  { %p5385_p6 = pnand %p5384_p5, %p5378_p2 }
  0x8a   :  { %5388 = shalt.err (!%p5385_p6)
}
  0x8b   :  { %239 = dma.hbm_to_vmem [thread:$0]  %s5855_s14, 16, %s237_s22, [#allocation25]  }
  0x8c   :  { %s5397_s28 = scalar_lea.vmem %s263_s21, 32  ;;  %p5402_p8 = scmp.lt.s32.totalorder %s263_s21, %s263_s21 }
  0x8d   :  { %p5398_p7 = scmp.ne.s32.totalorder %s263_s21, %s5397_s28  ;;  %p5403_p9 = scmp.lt.s32.totalorder %s5397_s28, %s5397_s28 }
  0x8f   :  { %p5404_p10 = por %p5403_p9, %p5402_p8 }
  0x91   :  { %p5405_p11 = pnand %p5404_p10, %p5398_p7 }
  0x93   :  { %5408 = shalt.err (!%p5405_p11)
}
  0x94   :  { %265 = dma.hbm_to_vmem [thread:$0]  %s5875_s5, 32, %s263_s21, [#allocation28]  }
  0x95   :  { %s5737_s20 = smov [#allocation30]   ;;  %s5738_s2 = smov [#allocation3]  }
  0x96   :  { %s284_s1 = sshll.u32 %s5737_s20, 4  ;;  %s92_s8 = sshll.u32 %s5738_s2, 4  ;;  %s285_s1 = int_to_ptr.vmem [resolvable:$true] %s284_s1  ;;  %s93_s8 = int_to_ptr.vmem [resolvable:$true] %s92_s8 }
  0x97   :  { %s5417_s0 = scalar_lea.vmem %s285_s1, 16  ;;  %s5421_s10 = scalar_lea.vmem %s285_s1, 32 }
  0x98   :  { %p5418_p12 = scmp.ne.s32.totalorder %s285_s1, %s5417_s0  ;;  %p5422_p13 = scmp.lt.s32.totalorder %s285_s1, %s285_s1 }
  0x99   :  { %p5423_p0 = scmp.lt.s32.totalorder %s5421_s10, %s5417_s0 }
  0x9b   :  { %p5424_p1 = por %p5423_p0, %p5422_p13 }
  0x9d   :  { %p5425_p2 = pnand %p5424_p1, %p5418_p12 }
  0x9f   :  { %5428 = shalt.err (!%p5425_p2)
}
  0xa0   :  { %287 = dma.hbm_to_vmem [thread:$0]  %s5885_s27, 16, %s285_s1, [#allocation31]  }
  0xa1   :  { %s5437_s14 = scalar_lea.vmem %s93_s8, 16  ;;  %s5441_s11 = scalar_lea.vmem %s93_s8, 32 }
  0xa2   :  { %p5438_p3 = scmp.ne.s32.totalorder %s93_s8, %s5437_s14  ;;  %p5442_p4 = scmp.lt.s32.totalorder %s93_s8, %s93_s8 }
  0xa3   :  { %p5443_p5 = scmp.lt.s32.totalorder %s5441_s11, %s5437_s14 }
  0xa5   :  { %p5444_p6 = por %p5443_p5, %p5442_p4 }
  0xa7   :  { %p5445_p7 = pnand %p5444_p6, %p5438_p3 }
  0xa9   :  { %5448 = shalt.err (!%p5445_p7)
}
  0xaa   :  { %95 = dma.hbm_to_vmem [thread:$0]  %s5775_s13, 16, %s93_s8, [#allocation4]  }
  0xab   :  { %s5739_s5 = smov [#allocation8]   ;;  %s5740_s24 = smov [#allocation11]  }
  0xac   :  { %s113_s15 = sshll.u32 %s5739_s5, 4  ;;  %s136_s16 = sshll.u32 %s5740_s24, 4  ;;  %s114_s15 = int_to_ptr.vmem [resolvable:$true] %s113_s15  ;;  %s137_s16 = int_to_ptr.vmem [resolvable:$true] %s136_s16 }
  0xad   :  { %s5457_s18 = scalar_lea.vmem %s114_s15, 1024  ;;  %p5462_p9 = scmp.lt.s32.totalorder %s114_s15, %s114_s15 }
  0xae   :  { %p5458_p8 = scmp.ne.s32.totalorder %s114_s15, %s5457_s18  ;;  %p5463_p10 = scmp.lt.s32.totalorder %s5457_s18, %s5457_s18 }
  0xb0   :  { %p5464_p11 = por %p5463_p10, %p5462_p9 }
  0xb2   :  { %p5465_p12 = pnand %p5464_p11, %p5458_p8 }
  0xb4   :  { %5468 = shalt.err (!%p5465_p12)
}
  0xb5   :  { %119 = dma.hbm_to_vmem [thread:$0]  %s5790_s25, 1024, %s114_s15, [#allocation7], %s5730_s29, %s5730_s29, %s5731_s7  }
  0xb6   :  { %s5477_s27 = scalar_lea.vmem %s137_s16, 16  ;;  %s5481_s13 = scalar_lea.vmem %s137_s16, 32 }
  0xb7   :  { %p5478_p13 = scmp.ne.s32.totalorder %s137_s16, %s5477_s27  ;;  %p5482_p0 = scmp.lt.s32.totalorder %s137_s16, %s137_s16 }
  0xb8   :  { %p5483_p1 = scmp.lt.s32.totalorder %s5481_s13, %s5477_s27 }
  0xba   :  { %p5484_p2 = por %p5483_p1, %p5482_p0 }
  0xbc   :  { %p5485_p3 = pnand %p5484_p2, %p5478_p13 }
  0xbe   :  { %5488 = shalt.err (!%p5485_p3)
}
  0xbf   :  { %139 = dma.hbm_to_vmem [thread:$0]  %s5800_s3, 16, %s137_s16, [#allocation10]  }
  0xc0   :  { %s5741_s22 = smov [#allocation14]   ;;  %s5742_s21 = smov [#allocation17]  }
  0xc1   :  { %s158_s23 = sshll.u32 %s5741_s22, 4  ;;  %s180_s6 = sshll.u32 %s5742_s21, 4  ;;  %s159_s23 = int_to_ptr.vmem [resolvable:$true] %s158_s23  ;;  %s181_s6 = int_to_ptr.vmem [resolvable:$true] %s180_s6 }
  0xc2   :  { %s5497_s26 = scalar_lea.vmem %s159_s23, 32  ;;  %p5502_p5 = scmp.lt.s32.totalorder %s159_s23, %s159_s23 }
  0xc3   :  { %p5498_p4 = scmp.ne.s32.totalorder %s159_s23, %s5497_s26  ;;  %p5503_p6 = scmp.lt.s32.totalorder %s5497_s26, %s5497_s26 }
  0xc5   :  { %p5504_p7 = por %p5503_p6, %p5502_p5 }
  0xc7   :  { %p5505_p8 = pnand %p5504_p7, %p5498_p4 }
  0xc9   :  { %5508 = shalt.err (!%p5505_p8)
}
  0xca   :  { %161 = dma.hbm_to_vmem [thread:$0]  %s5815_s19, 32, %s159_s23, [#allocation13]  }
  0xcb   :  { %s5517_s25 = scalar_lea.vmem %s181_s6, 16  ;;  %s5521_s28 = scalar_lea.vmem %s181_s6, 32 }
  0xcc   :  { %p5518_p9 = scmp.ne.s32.totalorder %s181_s6, %s5517_s25  ;;  %p5522_p10 = scmp.lt.s32.totalorder %s181_s6, %s181_s6 }
  0xcd   :  { %p5523_p11 = scmp.lt.s32.totalorder %s5521_s28, %s5517_s25 }
  0xcf   :  { %p5524_p12 = por %p5523_p11, %p5522_p10 }
  0xd1   :  { %p5525_p13 = pnand %p5524_p12, %p5518_p9 }
  0xd3   :  { %5528 = shalt.err (!%p5525_p13)
}
  0xd4   :  { %183 = dma.hbm_to_vmem [thread:$0]  %s5825_s30, 16, %s181_s6, [#allocation16]  }
  0xd5   :  { %s5743_s3 = smov [#allocation20]   ;;  %s5744_s1 = smov [#allocation23]  }
  0xd6   :  { %s200_s20 = sshll.u32 %s5743_s3, 4  ;;  %s223_s2 = sshll.u32 %s5744_s1, 4  ;;  %s201_s20 = int_to_ptr.vmem [resolvable:$true] %s200_s20  ;;  %s224_s2 = int_to_ptr.vmem [resolvable:$true] %s223_s2 }
  0xd7   :  { %s5537_s8 = scalar_lea.vmem %s201_s20, 16  ;;  %s5541_s0 = scalar_lea.vmem %s201_s20, 32 }
  0xd8   :  { %p5538_p0 = scmp.ne.s32.totalorder %s201_s20, %s5537_s8  ;;  %p5542_p1 = scmp.lt.s32.totalorder %s201_s20, %s201_s20 }
  0xd9   :  { %p5543_p2 = scmp.lt.s32.totalorder %s5541_s0, %s5537_s8 }
  0xdb   :  { %p5544_p3 = por %p5543_p2, %p5542_p1 }
  0xdd   :  { %p5545_p4 = pnand %p5544_p3, %p5538_p0 }
  0xdf   :  { %5548 = shalt.err (!%p5545_p4)
}
  0xe0   :  { %s6507_s19 = sld [smem:[#allocation52_spill]]  ;;  %s5557_s10 = scalar_lea.vmem %s224_s2, 1024 }
  0xe1   :  { %p5558_p5 = scmp.ne.s32.totalorder %s224_s2, %s5557_s10  ;;  %p5562_p6 = scmp.lt.s32.totalorder %s224_s2, %s224_s2 }
  0xe2   :  { %p5563_p7 = scmp.lt.s32.totalorder %s5557_s10, %s5557_s10 }
  0xe4   :  { %p5564_p8 = por %p5563_p7, %p5562_p6 }
  0xe6   :  { %203 = dma.hbm_to_vmem [thread:$0]  %s6507_s19, 16, %s201_s20, [#allocation19]  }
  0xe7   :  { %p5565_p9 = pnand %p5564_p8, %p5558_p5 }
  0xe9   :  { %5568 = shalt.err (!%p5565_p9)
}
  0xea   :  { %s6508_s30 = sld [smem:[#allocation54_spill]]  ;;  %s5745_s14 = smov [#allocation26]  }
  0xeb   :  { %s249_s11 = sshll.u32 %s5745_s14, 4  ;;  %s250_s11 = int_to_ptr.vmem [resolvable:$true] %s249_s11 }
  0xec   :  { %s5577_s5 = scalar_lea.vmem %s250_s11, 2048  ;;  %p5582_p11 = scmp.lt.s32.totalorder %s250_s11, %s250_s11 }
  0xed   :  { %p5578_p10 = scmp.ne.s32.totalorder %s250_s11, %s5577_s5  ;;  %p5583_p12 = scmp.lt.s32.totalorder %s5577_s5, %s5577_s5 }
  0xef   :  { %p5584_p13 = por %p5583_p12, %p5582_p11 }
  0xf0   :  { %229 = dma.hbm_to_vmem [thread:$0]  %s6508_s30, 1024, %s224_s2, [#allocation22], %s5730_s29, %s5730_s29, %s5731_s7  }
  0xf1   :  { %p5585_p0 = pnand %p5584_p13, %p5578_p10 }
  0xf3   :  { %5588 = shalt.err (!%p5585_p0)
}
  0xf4   :  { %s5746_s15 = smov 128   ;;  %s6509_s24 = sld [smem:[#allocation57_spill]] }
  0xf5   :  { %s5747_s16 = smov 8   ;;  %s5748_s18 = smov [#allocation29]  }
  0xf6   :  { %s271_s27 = sshll.u32 %s5748_s18, 4  ;;  %s5749_s13 = smov [#allocation32]   ;;  %s272_s27 = int_to_ptr.vmem [resolvable:$true] %s271_s27 }
  0xf7   :  { %s297_s22 = sshll.u32 %s5749_s13, 4  ;;  %s5597_s23 = scalar_lea.vmem %s272_s27, 2048  ;;  %s298_s22 = int_to_ptr.vmem [resolvable:$true] %s297_s22 }
  0xf8   :  { %p5598_p1 = scmp.ne.s32.totalorder %s272_s27, %s5597_s23  ;;  %p5602_p2 = scmp.lt.s32.totalorder %s272_s27, %s272_s27 }
  0xf9   :  { %p5603_p3 = scmp.lt.s32.totalorder %s5597_s23, %s5597_s23 }
  0xfa   :  { %255 = dma.hbm_to_vmem [thread:$0]  %s6509_s24, 2048, %s250_s11, [#allocation25], %s5746_s15, %s5746_s15, %s5747_s16  }
  0xfb   :  { %p5604_p4 = por %p5603_p3, %p5602_p2 }
  0xfd   :  { %p5605_p5 = pnand %p5604_p4, %p5598_p1 }
  0xff   :  { %5608 = shalt.err (!%p5605_p5)
}
 0x100   :  { %s6510_s21 = sld [smem:[#allocation58_spill]]  ;;  %s5617_s6 = scalar_lea.vmem %s298_s22, 1024 }
 0x101   :  { %p5618_p6 = scmp.ne.s32.totalorder %s298_s22, %s5617_s6  ;;  %p5622_p7 = scmp.lt.s32.totalorder %s298_s22, %s298_s22 }
 0x102   :  { %p5623_p8 = scmp.lt.s32.totalorder %s5617_s6, %s5617_s6 }
 0x104   :  { %p5624_p9 = por %p5623_p8, %p5622_p7 }
 0x106   :  { %277 = dma.hbm_to_vmem [thread:$0]  %s6510_s21, 2048, %s272_s27, [#allocation28], %s5730_s29, %s5730_s29, %s5731_s7  }
 0x107   :  { %p5625_p10 = pnand %p5624_p9, %p5618_p6 }
 0x109   :  { %5628 = shalt.err (!%p5625_p10)
}
 0x10a   :  { %s6511_s26 = sld [smem:[#allocation61_spill]]  ;;  %s5750_s25 = smov [#allocation33]  }
 0x10b   :  { %s314_s28 = sshll.u32 %s5750_s25, 4  ;;  %s315_s28 = int_to_ptr.vmem [resolvable:$true] %s314_s28 }
 0x10c   :  { %s5637_s3 = scalar_lea.vmem %s315_s28, 16  ;;  %s5641_s20 = scalar_lea.vmem %s315_s28, 32 }
 0x10d   :  { %p5638_p11 = scmp.ne.s32.totalorder %s315_s28, %s5637_s3  ;;  %p5642_p12 = scmp.lt.s32.totalorder %s315_s28, %s315_s28 }
 0x10e   :  { %p5643_p13 = scmp.lt.s32.totalorder %s5641_s20, %s5637_s3 }
 0x110   :  { %303 = dma.hbm_to_vmem [thread:$0]  %s6511_s26, 1024, %s298_s22, [#allocation31], %s5730_s29, %s5730_s29, %s5731_s7  }
 0x111   :  { %p5644_p0 = por %p5643_p13, %p5642_p12 }
 0x113   :  { %p5645_p1 = pnand %p5644_p0, %p5638_p11 }
 0x115   :  { %5648 = shalt.err (!%p5645_p1)
}
 0x116   :  { %317 = dma.hbm_to_vmem [thread:$0]  %s5915_s4, 16, %s315_s28, [#allocation34]  }
 0x117   :  { %5669 = dma.done.wait [#allocation4], 16  }
 0x118   :  { %5670 = vsyncadd [#allocation4], 4294967280 }
 0x119   :  { %5671 = dma.done.wait [#allocation7], 1072  }
 0x11a   :  { %5672 = vsyncadd [#allocation7], 4294966224 }
 0x11b   :  { %5673 = dma.done.wait [#allocation10], 32  }
 0x11c   :  { %5674 = vsyncadd [#allocation10], 4294967264 }
 0x11d   :  { %5675 = dma.done.wait [#allocation13], 48  }
 0x11e   :  { %5676 = vsyncadd [#allocation13], 4294967248 }
 0x11f   :  { %5677 = dma.done.wait [#allocation16], 2064  }
 0x120   :  { %5678 = vsyncadd [#allocation16], 4294965232 }
 0x121   :  { %5679 = dma.done.wait [#allocation19], 32  }
 0x122   :  { %5680 = vsyncadd [#allocation19], 4294967264 }
 0x123   :  { %5681 = dma.done.wait [#allocation22], 4096  }
 0x124   :  { %5682 = vsyncadd [#allocation22], 4294963200 }
 0x125   :  { %5683 = dma.done.wait [#allocation25], 2064  }
 0x126   :  { %5684 = vsyncadd [#allocation25], 4294965232 }
 0x127   :  { %5685 = dma.done.wait [#allocation28], 2080  }
 0x128   :  { %5686 = vsyncadd [#allocation28], 4294965216 }
 0x129   :  { %5687 = dma.done.wait [#allocation31], 1040  }
 0x12a   :  { %5688 = vsyncadd [#allocation31], 4294966256 }
 0x12b   :  { %5689 = dma.done.wait [#allocation34], 16  }
 0x12c   :  { %5690 = vsyncadd [#allocation34], 4294967280  ;;  %s6512_s4 = sld [smem:[#allocation48_spill]]  ;;  %v5751_v4 = vmov 0.0   ;;  %v5752_v27 = vmov 0   ;;  %vm5753_vm0 = vmmov 0   ;;  %v459_v53 = vlaneseq }
 0x12d   :  { %s6513_s7 = sld [smem:[#allocation50_spill]]  ;;  %4590 = vmatprep.subr.bf16.mxu1 %v5751_v4  ;;  %634 = vmatprep.mubr.bf16.mxu0 %v5752_v27  ;;  %v4237_v48 = vld [vmem:[#allocation3] ss:$0 sm:$0xff]  ;;  %v457_v56 = vld [vmem:[#allocation6] sm:$0x7]  ;;  %vm689_vm1 = vcmask 261120  }
 0x12e   :  { %4606 = vmatprep.mubr.msk.bf16.mxu1 %vm5753_vm0, %v5751_v4  ;;  %4966 = vset.pattern.permute.xlu0 %v5752_v27  ;;  %s6514_s1 = sld [smem:[#allocation49_spill]]  ;;  %v6024_v54 = vshrl.u32 %v459_v53, 7  ;;  %vm752_vm2 = vcmask 1043456   ;;  %vm736_vm3 = vcmask 64512   ;;  %s5754_s2 = smov 96   ;;  %vm914_vm4 = vcmask 523520  }
 0x12f   :  { %s5755_s8 = smov 32   ;;  %vm1030_vm5 = vcmask 785920   ;;  %vm1146_vm6 = vcmask 1048320   ;;  %s6515_s0 = sld [smem:[#allocation51_spill]]  ;;  %vm3938_vm7 = vcmask 1041409   ;;  %vm4143_vm8 = vcmask 123904  }
 0x130   :  { %v6027_v55 = vsub.s32 1, %v6024_v54  ;;  %v6030_v57 = vsub.s32 0, %v6024_v54  ;;  %v469_v58 = vsub.s32 2, %v6024_v54  ;;  %s6516_s19 = sld [smem:[#allocation53_spill]]  ;;  %vm4168_vm10 = vcmask 1041408  }
 0x131   :  { %s6518_s10 = sld [smem:[#allocation56_spill]]  ;;  %vm4177_vm11 = vcmask 0  }
 0x132   :  { %v381_v0 = vld [vmem:[%s6512_s4] sm:$0xff]  ;;  %v382_v1 = vld [vmem:[%s6512_s4 + $0x8] sm:$0xff]  ;;  %v466_v59 = vrot.slane %v457_v56, %v6027_v55  ;;  %s6519_s30 = sld [smem:[#allocation59_spill]] }
 0x133   :  { %385 = vadd.xlane.f32.xlu0 %v381_v0  ;;  %v4967_v2 = vld [vmem:[%s6513_s7 + $0xac] ss:$12 sps:$4 sm:$0xff]   ;;  %v4969_v3 = vld [vmem:[%s6513_s7 + $0xa8] ss:$12 sps:$4 sm:$0xff]   ;;  %v4970_v5 = vld [vmem:[%s6513_s7 + $0xb0] ss:$12 sps:$4 sm:$0xff]  }
 0x134   :  { %602 = vmatprep.subr.bf16.mxu0 %v4967_v2  ;;  %4591 = vmatpush3.bf16.msra.mxu1 %v4970_v5  ;;  %v4971_v14 = vld [vmem:[%s6513_s7 + $0x94] ss:$12 sps:$4 sm:$0xff]   ;;  %v4973_v15 = vld [vmem:[%s6513_s7 + $0x90] ss:$12 sps:$4 sm:$0xff]   ;;  %v4974_v16 = vld [vmem:[%s6513_s7 + $0x98] ss:$12 sps:$4 sm:$0xff]  }
 0x135   :  { %603 = vmatpush1.bf16.msra.mxu0 %v4969_v3  ;;  %4592 = vmatprep.subr.bf16.mxu1 %v5751_v4  ;;  %v4975_v17 = vld [vmem:[%s6513_s7 + $0x7c] ss:$12 sps:$4 sm:$0xff]   ;;  %v4977_v18 = vld [vmem:[%s6513_s7 + $0x78] ss:$12 sps:$4 sm:$0xff]   ;;  %v4978_v19 = vld [vmem:[%s6513_s7 + $0x80] ss:$12 sps:$4 sm:$0xff]  }
 0x136   :  { %604 = vmatprep.subr.bf16.mxu0 %v4971_v14  ;;  %v4979_v20 = vld [vmem:[%s6513_s7 + $0x64] ss:$12 sps:$4 sm:$0xff]   ;;  %v4981_v21 = vld [vmem:[%s6513_s7 + $0x60] ss:$12 sps:$4 sm:$0xff]   ;;  %v4982_v22 = vld [vmem:[%s6513_s7 + $0x68] ss:$12 sps:$4 sm:$0xff]  }
 0x137   :  { %387 = vadd.xlane.f32.xlu0 %v382_v1  ;;  %v4983_v23 = vld [vmem:[%s6513_s7 + $0x4c] ss:$12 sps:$4 sm:$0xff]   ;;  %v4985_v24 = vld [vmem:[%s6513_s7 + $0x48] ss:$12 sps:$4 sm:$0xff]   ;;  %v4986_v25 = vld [vmem:[%s6513_s7 + $0x50] ss:$12 sps:$4 sm:$0xff]  }
 0x138   :  { %4593 = vmatpush3.bf16.msra.mxu1 %v4974_v16  ;;  %v4987_v26 = vld [vmem:[%s6513_s7 + $0x34] ss:$12 sps:$4 sm:$0xff]   ;;  %v4989_v28 = vld [vmem:[%s6513_s7 + $0x30] ss:$12 sps:$4 sm:$0xff]   ;;  %v4990_v29 = vld [vmem:[%s6513_s7 + $0x38] ss:$12 sps:$4 sm:$0xff]  }
 0x139   :  { %605 = vmatpush1.bf16.msra.mxu0 %v4973_v15  ;;  %4594 = vmatprep.subr.bf16.mxu1 %v5751_v4  ;;  %v4991_v30 = vld [vmem:[%s6513_s7 + $0x1c] ss:$12 sps:$4 sm:$0xff]   ;;  %v4993_v31 = vld [vmem:[%s6513_s7 + $0x18] ss:$12 sps:$4 sm:$0xff]   ;;  %v4994_v32 = vld [vmem:[%s6513_s7 + $0x20] ss:$12 sps:$4 sm:$0xff]  }
 0x13a   :  { %606 = vmatprep.subr.bf16.mxu0 %v4975_v17  ;;  %v4995_v33 = vld [vmem:[%s6513_s7 + $0x4] ss:$12 sps:$4 sm:$0xff]   ;;  %v4997_v34 = vld [vmem:[%s6513_s7] ss:$12 sps:$4 sm:$0xff]   ;;  %v4998_v35 = vld [vmem:[%s6513_s7 + $0x8] ss:$12 sps:$4 sm:$0xff]  }
 0x13b   :  { %v4236_v44 = vld [vmem:[%s6514_s1] ss:$0 sm:$0xff]  ;;  %s6520_s14 = sld [smem:[#allocation60_spill]] }
 0x13c   :  { %4595 = vmatpush3.bf16.msra.mxu1 %v4978_v19  ;;  %s6521_s11 = sld [smem:[#allocation62_spill]] }
 0x13d   :  { %607 = vmatpush1.bf16.msra.mxu0 %v4977_v18  ;;  %4596 = vmatprep.subr.bf16.mxu1 %v5751_v4 }
 0x13e   :  { %608 = vmatprep.subr.bf16.mxu0 %v4979_v20 }
 0x140   :  { %4597 = vmatpush3.bf16.msra.mxu1 %v4982_v22 }
 0x141   :  { %609 = vmatpush1.bf16.msra.mxu0 %v4981_v21  ;;  %4598 = vmatprep.subr.bf16.mxu1 %v5751_v4 }
 0x142   :  { %610 = vmatprep.subr.bf16.mxu0 %v4983_v23 }
 0x144   :  { %4599 = vmatpush3.bf16.msra.mxu1 %v4986_v25 }
 0x145   :  { %611 = vmatpush1.bf16.msra.mxu0 %v4985_v24  ;;  %4600 = vmatprep.subr.bf16.mxu1 %v5751_v4 }
 0x146   :  { %612 = vmatprep.subr.bf16.mxu0 %v4987_v26 }
 0x148   :  { %4601 = vmatpush3.bf16.msra.mxu1 %v4990_v29 }
 0x149   :  { %613 = vmatpush1.bf16.msra.mxu0 %v4989_v28  ;;  %4602 = vmatprep.subr.bf16.mxu1 %v5751_v4 }
 0x14a   :  { %614 = vmatprep.subr.bf16.mxu0 %v4991_v30 }
 0x14c   :  { %4603 = vmatpush3.bf16.msra.mxu1 %v4994_v32 }
 0x14d   :  { %615 = vmatpush1.bf16.msra.mxu0 %v4993_v31  ;;  %4604 = vmatprep.subr.bf16.mxu1 %v5751_v4 }
 0x14e   :  { %616 = vmatprep.subr.bf16.mxu0 %v4995_v33 }
 0x150   :  { %4605 = vmatpush3.bf16.msra.mxu1 %v4998_v35 }
 0x151   :  { %617 = vmatpush1.bf16.msra.mxu0 %v4997_v34  ;;  %4610 = vmatprep.subr.bf16.mxu1 %v5751_v4 }
 0x152   :  { %4634 = vmatprep.subr.bf16.mxu0 %v5751_v4 }
 0x1bc   :  { %v386_v6 = vpop.xlane.xlu0 %385 }
 0x1bd   :  { %v390_v7 = vmul.f32 0.0078125, %v386_v6 }
 0x1bf   :  { %v5969_v8 = vsub.f32 %v381_v0, %v390_v7  ;;  %v462_v0 = vrot.slane %v457_v56, %v6030_v57 }
 0x1c0   :  { %v388_v9 = vpop.xlane.xlu0 %387 }
 0x1c1   :  { %v391_v10 = vmul.f32 0.0078125, %v388_v9  ;;  %v394_v11 = vmul.f32 %v5969_v8, %v5969_v8 }
 0x1c3   :  { %396 = vadd.xlane.f32.xlu1 %v394_v11  ;;  %v5973_v12 = vsub.f32 %v382_v1, %v391_v10  ;;  %v470_v1 = vrot.slane %v457_v56, %v469_v58 }
 0x1c5   :  { %v395_v13 = vmul.f32 %v5973_v12, %v5973_v12 }
 0x1c7   :  { %398 = vadd.xlane.f32.xlu1 %v395_v13 }
 0x24c   :  { %v397_v36 = vpop.xlane.xlu1 %396 }
 0x24d   :  { %v400_v37 = vmul.f32 0.0078125, %v397_v36 }
 0x24f   :  { %v402_v38 = vadd.f32 1e-12, %v400_v37 }
 0x250   :  { %v399_v39 = vpop.xlane.xlu1 %398 }
 0x251   :  { %5143 = vrsqrt.f32 %v402_v38  ;;  %v401_v40 = vmul.f32 0.0078125, %v399_v39 }
 0x253   :  { %v403_v41 = vadd.f32 1e-12, %v401_v40 }
 0x255   :  { %5145 = vrsqrt.f32 %v403_v41 }
 0x25e   :  { %v5144_v42 = vpop.eup %5143 }
 0x25f   :  { %v406_v43 = vmul.f32 %v5144_v42, %v5969_v8 }
 0x261   :  { %v414_v47 = vmul.f32 %v4236_v44, %v406_v43 }
 0x262   :  { %v5146_v45 = vpop.eup %5145 }
 0x263   :  { %v407_v46 = vmul.f32 %v5146_v45, %v5973_v12  ;;  %v6013_v50 = vadd.f32 %v4237_v48, %v414_v47 }
 0x265   :  { %v415_v49 = vmul.f32 %v4236_v44, %v407_v46 }
 0x267   :  { %v6015_v51 = vadd.f32 %v4237_v48, %v415_v49 }
 0x269   :  { %v424_v52 = vpack.c.bf16 %v6015_v51, %v6013_v50 }
 0x26b   :  { %635 = vmatmul.mubr.bf16.vlgmr.msra.gmra.mxu0 %v424_v52  ;;  %4607 = vmatmul.mubr.bf16.vlgmr.msra.gmra.mxu1 %v424_v52 }
 0x26c   :  { %4612 = vmatprep.mubr.msk.bf16.mxu1 %vm5753_vm0, %v5751_v4  ;;  %4636 = vmatprep.mubr.msk.bf16.mxu0 %vm5753_vm0, %v5751_v4 }
 0x32b   :  { %v636_v60 = vpop.f32.mrf.mxu0  ;;  %v679_v61 = vpop.f32.mrf.mxu1 }
 0x32c   :  { %v680_v10 = vadd.f32 %v679_v61, %v470_v1  ;;  %v637_v12 = vadd.f32 %v636_v60, %v462_v0 }
 0x32d   :  { %v638_v62 = vpop.f32.mrf.mxu0  ;;  %v4608_v63 = vpop.f32.mrf.mxu1 }
 0x32e   :  { %v639_v2 = vadd.f32 %v638_v62, %v466_v59  ;;  %v6041_v13 = vpack.c.bf16 %v680_v10, %v680_v10  ;;  %v686_v14 = vpack.c.bf16 %v637_v12, %v637_v12 }
 0x32f   :  { %v640_v3 = vpop.f32.mrf.mxu0  ;;  %v682_v5 = vpop.f32.mrf.mxu1 }
 0x330   :  { %v687_v6 = vpack.c.bf16 %v639_v2, %v639_v2  ;;  %v641_v7 = vadd.f32 %v640_v3, %v462_v0  ;;  %v6037_v8 = vadd.f32 %v682_v5, %v470_v1  ;;  %v754_v15 = vsel %vm752_vm2, %v6041_v13, 0 }
 0x331   :  { %v4609_v9 = vpop.f32.mrf.mxu1  ;;  %v642_v21 = vpop.f32.mrf.mxu0 }
 0x332   :  { %v694_v11 = vsel %vm689_vm1, %v687_v6, 0  ;;  %v643_v22 = vadd.f32 %v642_v21, %v466_v59  ;;  %v1148_v30 = vpack.c.bf16 %v641_v7, %v641_v7 }
 0x333   :  { %4611 = vmatpush3.bf16.xpose.msra.mxu1 %v694_v11 }
 0x334   :  { %4616 = vmatprep.subr.bf16.mxu1 %v5751_v4  ;;  %v1149_v23 = vpack.c.bf16 %v643_v22, %v643_v22 }
 0x336   :  { %v1155_v44 = vsel %vm689_vm1, %v1149_v23, 0 }
 0x33a   :  { %4613 = vmatmul.mubr.msk.bf16.vlgmr.msra.gmra.mxu1 %vm689_vm1, %v686_v14 }
 0x33b   :  { %4617 = vmatpush3.bf16.msra.mxu1 %v754_v15  ;;  %4618 = vmatprep.mubr.msk.bf16.mxu1 %vm5753_vm0, %v5751_v4 }
 0x33c   :  { %4622 = vmatprep.subr.bf16.mxu1 %v5751_v4 }
 0x3fa   :  { %v730_v16 = vpop.f32.mrf.mxu1 }
 0x3fb   :  { %v737_v17 = vsel %vm736_vm3, %v730_v16, -inf }
 0x3fc   :  { %738 = vmax.xlane.f32.xlu0 %v737_v17  ;;  %v4614_v18 = vpop.f32.mrf.mxu1 }
 0x3fe   :  { %v733_v19 = vpop.f32.mrf.mxu1 }
 0x400   :  { %v4615_v20 = vpop.f32.mrf.mxu1 }
 0x412   :  { %801 = vrot.lane.b32.xlu0 %v687_v6, %s5754_s2 }
 0x416   :  { %1034 = vrot.lane.b32.xlu0 %v687_v6, %s5755_s8 }
 0x41a   :  { %1260 = vrot.lane.b32.xlu0 %v1149_v23, %s5754_s2 }
 0x41e   :  { %1376 = vrot.lane.b32.xlu0 %v1149_v23, %s5730_s29 }
 0x422   :  { %1491 = vrot.lane.b32.xlu0 %v1149_v23, %s5755_s8 }
 0x485   :  { %v739_v24 = vpop.xlane.xlu0 %738 }
 0x486   :  { %v740_v25 = vsub.f32 %v730_v16, %v739_v24 }
 0x488   :  { %v741_v26 = vmul.f32 1.442695, %v740_v25 }
 0x489   :  { %v802_v33 = vpop.permute.xlu0 %801 }
 0x48a   :  { %5147 = vpow2.f32 %v741_v26  ;;  %v807_v42 = vsel %vm689_vm1, %v802_v33, 0 }
 0x48d   :  { %v1035_v37 = vpop.permute.xlu0 %1034 }
 0x48e   :  { %v1040_v40 = vsel %vm689_vm1, %v1035_v37, 0 }
 0x491   :  { %v1261_v45 = vpop.permute.xlu0 %1260 }
 0x492   :  { %v1266_v46 = vsel %vm689_vm1, %v1261_v45, 0 }
 0x495   :  { %v1377_v47 = vpop.permute.xlu0 %1376 }
 0x496   :  { %v1382_v49 = vsel %vm689_vm1, %v1377_v47, 0 }
 0x497   :  { %v5148_v28 = vpop.eup %5147 }
 0x498   :  { %v743_v29 = vsel %vm736_vm3, %v5148_v28, 0.0 }
 0x499   :  { %744 = vadd.xlane.f32.xlu1 %v743_v29  ;;  %v1492_v52 = vpop.permute.xlu0 %1491 }
 0x49a   :  { %v1497_v59 = vsel %vm689_vm1, %v1492_v52, 0 }
 0x4aa   :  { %798 = vrot.lane.b32.xlu1 %v686_v14, %s5754_s2 }
 0x4ae   :  { %918 = vrot.lane.b32.xlu1 %v687_v6, %s5730_s29 }
 0x4b2   :  { %916 = vrot.lane.b32.xlu1 %v686_v14, %s5730_s29 }
 0x4b6   :  { %1032 = vrot.lane.b32.xlu1 %v686_v14, %s5755_s8 }
 0x4ba   :  { %1257 = vrot.lane.b32.xlu1 %v1148_v30, %s5754_s2 }
 0x4be   :  { %1374 = vrot.lane.b32.xlu1 %v1148_v30, %s5730_s29 }
 0x4c2   :  { %1489 = vrot.lane.b32.xlu1 %v1148_v30, %s5755_s8 }
 0x522   :  { %v745_v31 = vpop.xlane.xlu1 %744 }
 0x523   :  { %5149 = vrcp.f32 %v745_v31 }
 0x526   :  { %v799_v32 = vpop.permute.xlu1 %798 }
 0x52a   :  { %v919_v34 = vpop.permute.xlu1 %918 }
 0x52b   :  { %v924_v35 = vsel %vm689_vm1, %v919_v34, 0 }
 0x52c   :  { %4635 = vmatpush3.bf16.xpose.msra.mxu0 %v924_v35 }
 0x52d   :  { %4646 = vmatprep.subr.bf16.mxu0 %v5751_v4 }
 0x52e   :  { %v917_v39 = vpop.permute.xlu1 %916 }
 0x530   :  { %v5150_v36 = vpop.eup %5149 }
 0x531   :  { %v747_v38 = vmul.f32 %v5150_v36, %v5148_v28 }
 0x532   :  { %v1033_v43 = vpop.permute.xlu1 %1032 }
 0x533   :  { %4637 = vmatmul.mubr.msk.bf16.vlgmr.msra.gmra.mxu0 %vm689_vm1, %v917_v39  ;;  %v748_v41 = vpack.c.bf16 %v747_v38, %v747_v38 }
 0x534   :  { %4647 = vmatpush3.bf16.xpose.msra.mxu0 %v1040_v40  ;;  %4648 = vmatprep.mubr.msk.bf16.mxu0 %vm5753_vm0, %v5751_v4 }
 0x535   :  { %4619 = vmatmul.mubr.msk.bf16.vlgmr.msra.gmra.mxu1 %vm736_vm3, %v748_v41  ;;  %4658 = vmatprep.subr.bf16.mxu0 %v5751_v4 }
 0x536   :  { %4623 = vmatpush3.bf16.xpose.msra.mxu1 %v807_v42  ;;  %4624 = vmatprep.mubr.msk.bf16.mxu1 %vm5753_vm0, %v5751_v4  ;;  %v1258_v48 = vpop.permute.xlu1 %1257 }
 0x537   :  { %4628 = vmatprep.subr.bf16.mxu1 %v5751_v4 }
 0x53a   :  { %v1375_v56 = vpop.permute.xlu1 %1374 }
 0x53b   :  { %4649 = vmatmul.mubr.msk.bf16.vlgmr.msra.gmra.mxu0 %vm689_vm1, %v1033_v43 }
 0x53c   :  { %4659 = vmatpush3.bf16.xpose.msra.mxu0 %v1155_v44  ;;  %4660 = vmatprep.mubr.msk.bf16.mxu0 %vm5753_vm0, %v5751_v4 }
 0x53d   :  { %4625 = vmatmul.mubr.msk.bf16.vlgmr.msra.gmra.mxu1 %vm689_vm1, %v799_v32  ;;  %4670 = vmatprep.subr.bf16.mxu0 %v5751_v4 }
 0x53e   :  { %4630 = vmatprep.mubr.msk.bf16.mxu1 %vm5753_vm0, %v5751_v4  ;;  %v1490_v60 = vpop.permute.xlu1 %1489 }
 0x543   :  { %4661 = vmatmul.mubr.msk.bf16.vlgmr.msra.gmra.mxu0 %vm689_vm1, %v1148_v30 }
 0x544   :  { %4671 = vmatpush3.bf16.xpose.msra.mxu0 %v1266_v46  ;;  %4672 = vmatprep.mubr.msk.bf16.mxu0 %vm5753_vm0, %v5751_v4 }
 0x545   :  { %4682 = vmatprep.subr.bf16.mxu0 %v5751_v4 }
 0x54b   :  { %4673 = vmatmul.mubr.msk.bf16.vlgmr.msra.gmra.mxu0 %vm689_vm1, %v1258_v48 }
 0x54c   :  { %4683 = vmatpush3.bf16.xpose.msra.mxu0 %v1382_v49  ;;  %4684 = vmatprep.mubr.msk.bf16.mxu0 %vm5753_vm0, %v5751_v4 }
 0x54d   :  { %4694 = vmatprep.subr.bf16.mxu0 %v5751_v4 }
 0x553   :  { %4685 = vmatmul.mubr.msk.bf16.vlgmr.msra.gmra.mxu0 %vm689_vm1, %v1375_v56 }
 0x554   :  { %4695 = vmatpush3.bf16.xpose.msra.mxu0 %v1497_v59  ;;  %4696 = vmatprep.mubr.msk.bf16.mxu0 %vm5753_vm0, %v5751_v4 }
 0x555   :  { %4706 = vmatprep.subr.bf16.mxu0 %v5751_v4 }
 0x55b   :  { %4697 = vmatmul.mubr.msk.bf16.vlgmr.msra.gmra.mxu0 %vm689_vm1, %v1490_v60 }
 0x55c   :  { %4722 = vmatprep.mubr.msk.bf16.mxu0 %vm5753_vm0, %v5751_v4 }
 0x5f3   :  { %v960_v61 = vpop.f32.mrf.mxu0 }
 0x5f4   :  { %v966_v62 = vsel %vm736_vm3, %v960_v61, -inf }
 0x5f5   :  { %967 = vmax.xlane.f32.xlu1 %v966_v62  ;;  %v790_v63 = vpop.f32.mrf.mxu1  ;;  %v4638_v0 = vpop.f32.mrf.mxu0 }
 0x5f6   :  { %796 = vst.msk [vmem:[#allocation2] sm:$0xff] %vm689_vm1, %v790_v63 }
 0x5f7   :  { %v4620_v1 = vpop.f32.mrf.mxu1  ;;  %v963_v2 = vpop.f32.mrf.mxu0 }
 0x5f9   :  { %v793_v3 = vpop.f32.mrf.mxu1  ;;  %v4639_v5 = vpop.f32.mrf.mxu0 }
 0x5fb   :  { %v4621_v6 = vpop.f32.mrf.mxu1  ;;  %v1076_v7 = vpop.f32.mrf.mxu0 }
 0x5fc   :  { %v1082_v17 = vsel %vm736_vm3, %v1076_v7, -inf }
 0x5fd   :  { %v843_v9 = vpop.f32.mrf.mxu1  ;;  %v4650_v10 = vpop.f32.mrf.mxu0 }
 0x5fe   :  { %v849_v11 = vsel %vm736_vm3, %v843_v9, -inf }
 0x5ff   :  { %v1079_v12 = vpop.f32.mrf.mxu0  ;;  %850 = vmax.xlane.f32.xlu0 %v849_v11  ;;  %v4626_v14 = vpop.f32.mrf.mxu1 }
 0x601   :  { %v846_v15 = vpop.f32.mrf.mxu1  ;;  %v4651_v16 = vpop.f32.mrf.mxu0 }
 0x603   :  { %v1191_v18 = vpop.f32.mrf.mxu0  ;;  %1083 = vmax.xlane.f32.xlu0 %v1082_v17  ;;  %v4627_v19 = vpop.f32.mrf.mxu1 }
 0x604   :  { %v1197_v21 = vsel %vm736_vm3, %v1191_v18, -inf }
 0x605   :  { %v4662_v20 = vpop.f32.mrf.mxu0 }
 0x607   :  { %v1194_v22 = vpop.f32.mrf.mxu0  ;;  %1198 = vmax.xlane.f32.xlu0 %v1197_v21 }
 0x609   :  { %v4663_v23 = vpop.f32.mrf.mxu0 }
 0x60b   :  { %v1302_v24 = vpop.f32.mrf.mxu0 }
 0x60c   :  { %v1308_v25 = vsel %vm736_vm3, %v1302_v24, -inf }
 0x60d   :  { %v4674_v26 = vpop.f32.mrf.mxu0  ;;  %1309 = vmax.xlane.f32.xlu0 %v1308_v25 }
 0x60f   :  { %v1305_v28 = vpop.f32.mrf.mxu0 }
 0x611   :  { %v4675_v29 = vpop.f32.mrf.mxu0 }
 0x613   :  { %v1418_v30 = vpop.f32.mrf.mxu0 }
 0x614   :  { %v1424_v31 = vsel %vm736_vm3, %v1418_v30, -inf }
 0x615   :  { %1425 = vmax.xlane.f32.xlu1 %v1424_v31  ;;  %v4686_v32 = vpop.f32.mrf.mxu0 }
 0x617   :  { %v1421_v33 = vpop.f32.mrf.mxu0 }
 0x619   :  { %v4687_v34 = vpop.f32.mrf.mxu0 }
 0x61b   :  { %v1533_v35 = vpop.f32.mrf.mxu0 }
 0x61c   :  { %v1539_v36 = vsel %vm736_vm3, %v1533_v35, -inf }
 0x61d   :  { %v4698_v37 = vpop.f32.mrf.mxu0  ;;  %1540 = vmax.xlane.f32.xlu0 %v1539_v36 }
 0x61f   :  { %v1536_v38 = vpop.f32.mrf.mxu0 }
 0x621   :  { %v4699_v39 = vpop.f32.mrf.mxu0 }
 0x67e   :  { %v968_v40 = vpop.xlane.xlu1 %967 }
 0x67f   :  { %v969_v41 = vsub.f32 %v960_v61, %v968_v40 }
 0x681   :  { %v970_v42 = vmul.f32 1.442695, %v969_v41 }
 0x683   :  { %5151 = vpow2.f32 %v970_v42 }
 0x688   :  { %v851_v43 = vpop.xlane.xlu0 %850 }
 0x689   :  { %v852_v44 = vsub.f32 %v843_v9, %v851_v43 }
 0x68b   :  { %v853_v47 = vmul.f32 1.442695, %v852_v44 }
 0x68c   :  { %v1084_v45 = vpop.xlane.xlu0 %1083 }
 0x68d   :  { %v1085_v46 = vsub.f32 %v1076_v7, %v1084_v45 }
 0x68f   :  { %v1086_v48 = vmul.f32 1.442695, %v1085_v46 }
 0x690   :  { %v6109_v49 = vpop.eup %5151  ;;  %v1199_v52 = vpop.xlane.xlu0 %1198 }
 0x691   :  { %5153 = vpow2.f32 %v1086_v48  ;;  %v1200_v56 = vsub.f32 %v1191_v18, %v1199_v52  ;;  %v972_v59 = vsel %vm736_vm3, %v6109_v49, 0.0 }
 0x692   :  { %973 = vadd.xlane.f32.xlu0 %v972_v59  ;;  %5155 = vpow2.f32 %v853_v47 }
 0x693   :  { %v1201_v60 = vmul.f32 1.442695, %v1200_v56 }
 0x695   :  { %5157 = vpow2.f32 %v1201_v60 }
 0x696   :  { %v1310_v61 = vpop.xlane.xlu0 %1309 }
 0x697   :  { %v1311_v62 = vsub.f32 %v1302_v24, %v1310_v61 }
 0x699   :  { %v1312_v63 = vmul.f32 1.442695, %v1311_v62 }
 0x69b   :  { %5159 = vpow2.f32 %v1312_v63 }
 0x69e   :  { %v6113_v0 = vpop.eup %5153  ;;  %v1426_v10 = vpop.xlane.xlu1 %1425 }
 0x69f   :  { %v1088_v1 = vsel %vm736_vm3, %v6113_v0, 0.0  ;;  %v5156_v2 = vpop.eup %5155  ;;  %v1427_v11 = vsub.f32 %v1418_v30, %v1426_v10  ;;  %v4999_v10 = vld [vmem:[#allocation8 + $0x38] sm:$0xff]  }
 0x6a0   :  { %1089 = vadd.xlane.f32.xlu1 %v1088_v1  ;;  %v855_v5 = vsel %vm736_vm3, %v5156_v2, 0.0  ;;  %4707 = vmatpush3.bf16.msra.mxu0 %v4999_v10 }
 0x6a1   :  { %v1428_v12 = vmul.f32 1.442695, %v1427_v11  ;;  %4708 = vmatprep.subr.bf16.mxu0 %v5751_v4 }
 0x6a2   :  { %v6117_v3 = vpop.eup %5157 }
 0x6a3   :  { %v1203_v6 = vsel %vm736_vm3, %v6117_v3, 0.0  ;;  %5161 = vpow2.f32 %v1428_v12 }
 0x6a4   :  { %856 = vadd.xlane.f32.xlu1 %v855_v5  ;;  %1204 = vadd.xlane.f32.xlu0 %v1203_v6 }
 0x6a6   :  { %v1541_v14 = vpop.xlane.xlu0 %1540 }
 0x6a7   :  { %v1542_v15 = vsub.f32 %v1533_v35, %v1541_v14 }
 0x6a8   :  { %v6122_v7 = vpop.eup %5159 }
 0x6a9   :  { %v1314_v9 = vsel %vm736_vm3, %v6122_v7, 0.0  ;;  %v1543_v16 = vmul.f32 1.442695, %v1542_v15 }
 0x6aa   :  { %1315 = vadd.xlane.f32.xlu0 %v1314_v9 }
 0x6ab   :  { %5163 = vpow2.f32 %v1543_v16 }
 0x6b0   :  { %v6132_v17 = vpop.eup %5161 }
 0x6b1   :  { %v1430_v18 = vsel %vm736_vm3, %v6132_v17, 0.0 }
 0x6b5   :  { %862 = vrot.lane.b32.xlu1 %v6041_v13, %s5754_s2 }
 0x6b8   :  { %v6136_v19 = vpop.eup %5163 }
 0x6b9   :  { %v1545_v20 = vsel %vm736_vm3, %v6136_v19, 0.0 }
 0x6c0   :  { %978 = vrot.lane.b32.xlu0 %v6041_v13, %s5730_s29 }
 0x6c4   :  { %1094 = vrot.lane.b32.xlu0 %v6041_v13, %s5755_s8  ;;  %v1150_v13 = vpack.c.bf16 %v6037_v8, %v6037_v8 }
 0x6c6   :  { %v1213_v42 = vsel %vm752_vm2, %v1150_v13, 0 }
 0x6d9   :  { %1431 = vadd.xlane.f32.xlu1 %v1430_v18 }
 0x6e3   :  { %1546 = vadd.xlane.f32.xlu0 %v1545_v20 }
 0x6ea   :  { %1321 = vrot.lane.b32.xlu1 %v1150_v13, %s5754_s2 }
 0x6ee   :  { %1551 = vrot.lane.b32.xlu1 %v1150_v13, %s5755_s8 }
 0x6f9   :  { %1436 = vrot.lane.b32.xlu0 %v1150_v13, %s5730_s29 }
 0x71b   :  { %v974_v23 = vpop.xlane.xlu0 %973 }
 0x729   :  { %v1090_v21 = vpop.xlane.xlu1 %1089 }
 0x72d   :  { %v857_v22 = vpop.xlane.xlu1 %856  ;;  %v1205_v26 = vpop.xlane.xlu0 %1204 }
 0x72e   :  { %5165 = vrcp.f32 %v857_v22 }
 0x72f   :  { %5167 = vrcp.f32 %v974_v23 }
 0x730   :  { %5169 = vrcp.f32 %v1090_v21 }
 0x731   :  { %v863_v24 = vpop.permute.xlu1 %862  ;;  %5171 = vrcp.f32 %v1205_v26  ;;  %v5002_v26 = vld [vmem:[#allocation8 + $0x20] sm:$0xff]  }
 0x732   :  { %v868_v25 = vsel %vm752_vm2, %v863_v24, 0  ;;  %v5000_v24 = vld [vmem:[#allocation8 + $0x30] sm:$0xff]  }
 0x733   :  { %4629 = vmatpush3.bf16.msra.mxu1 %v868_v25  ;;  %v1316_v28 = vpop.xlane.xlu0 %1315  ;;  %4709 = vmatpush3.bf16.msra.mxu0 %v5000_v24  ;;  %v5001_v25 = vld [vmem:[#allocation8 + $0x28] sm:$0xff]  }
 0x734   :  { %4640 = vmatprep.subr.bf16.mxu1 %v5751_v4  ;;  %5173 = vrcp.f32 %v1316_v28  ;;  %4710 = vmatprep.subr.bf16.mxu0 %v5751_v4  ;;  %v5027_v24 = vld [vmem:[%s6515_s0 + $0x14] ss:$8 sps:$4 sm:$0xff]  }
 0x737   :  { %v979_v30 = vpop.permute.xlu0 %978  ;;  %4711 = vmatpush3.bf16.msra.mxu0 %v5001_v25  ;;  %v5025_v25 = vld [vmem:[%s6515_s0 + $0x10] ss:$8 sps:$4 sm:$0xff]  }
 0x738   :  { %v984_v33 = vsel %vm752_vm2, %v979_v30, 0  ;;  %4712 = vmatprep.subr.bf16.mxu0 %v5751_v4 }
 0x73b   :  { %v5166_v8 = vpop.eup %5165  ;;  %v1095_v35 = vpop.permute.xlu0 %1094  ;;  %4713 = vmatpush3.bf16.msra.mxu0 %v5002_v26  ;;  %v5030_v26 = vld [vmem:[%s6515_s0 + $0x4] ss:$8 sps:$4 sm:$0xff]  }
 0x73c   :  { %v859_v29 = vmul.f32 %v5166_v8, %v5156_v2  ;;  %v5168_v32 = vpop.eup %5167  ;;  %v1100_v38 = vsel %vm752_vm2, %v1095_v35, 0  ;;  %v5003_v8 = vld [vmem:[#allocation8 + $0x18] sm:$0xff]   ;;  %4714 = vmatprep.subr.bf16.mxu0 %v5751_v4 }
 0x73d   :  { %v976_v34 = vmul.f32 %v5168_v32, %v6109_v49  ;;  %v5170_v37 = vpop.eup %5169 }
 0x73e   :  { %v860_v31 = vpack.c.bf16 %v859_v29, %v859_v29  ;;  %v1092_v39 = vmul.f32 %v5170_v37, %v6113_v0  ;;  %v5172_v41 = vpop.eup %5171 }
 0x73f   :  { %v977_v36 = vpack.c.bf16 %v976_v34, %v976_v34  ;;  %v1207_v43 = vmul.f32 %v5172_v41, %v6117_v3  ;;  %4715 = vmatpush3.bf16.msra.mxu0 %v5003_v8 }
 0x740   :  { %4631 = vmatmul.mubr.msk.bf16.vlgmr.msra.gmra.mxu1 %vm736_vm3, %v860_v31  ;;  %v1093_v40 = vpack.c.bf16 %v1092_v39, %v1092_v39  ;;  %v5004_v31 = vld [vmem:[#allocation8 + $0x10] sm:$0xff]   ;;  %4716 = vmatprep.subr.bf16.mxu0 %v5751_v4 }
 0x741   :  { %4641 = vmatpush3.bf16.msra.mxu1 %v984_v33  ;;  %4642 = vmatprep.mubr.msk.bf16.mxu1 %vm5753_vm0, %v5751_v4  ;;  %v1208_v44 = vpack.c.bf16 %v1207_v43, %v1207_v43  ;;  %v5174_v45 = vpop.eup %5173  ;;  %v5005_v33 = vld [vmem:[#allocation8 + $0x8] sm:$0xff]  }
 0x742   :  { %4652 = vmatprep.subr.bf16.mxu1 %v5751_v4  ;;  %v1318_v47 = vmul.f32 %v5174_v45, %v6122_v7 }
 0x743   :  { %4717 = vmatpush3.bf16.msra.mxu0 %v5004_v31 }
 0x744   :  { %v1319_v52 = vpack.c.bf16 %v1318_v47, %v1318_v47  ;;  %4718 = vmatprep.subr.bf16.mxu0 %v5751_v4 }
 0x747   :  { %4719 = vmatpush3.bf16.msra.mxu0 %v5005_v33 }
 0x748   :  { %4643 = vmatmul.mubr.msk.bf16.vlgmr.msra.gmra.mxu1 %vm736_vm3, %v977_v36  ;;  %v5006_v36 = vld [vmem:[#allocation8] sm:$0xff]   ;;  %4720 = vmatprep.subr.bf16.mxu0 %v5751_v4 }
 0x749   :  { %4653 = vmatpush3.bf16.msra.mxu1 %v1100_v38  ;;  %4654 = vmatprep.mubr.msk.bf16.mxu1 %vm5753_vm0, %v5751_v4 }
 0x74a   :  { %4664 = vmatprep.subr.bf16.mxu1 %v5751_v4 }
 0x74b   :  { %4721 = vmatpush3.bf16.msra.mxu0 %v5006_v36  ;;  %v4287_v36 = vld [vmem:[#allocation11] ss:$0 sm:$0xff] }
 0x750   :  { %4655 = vmatmul.mubr.msk.bf16.vlgmr.msra.gmra.mxu1 %vm736_vm3, %v1093_v40 }
 0x751   :  { %4665 = vmatpush3.bf16.msra.mxu1 %v1213_v42  ;;  %4666 = vmatprep.mubr.msk.bf16.mxu1 %vm5753_vm0, %v5751_v4 }
 0x752   :  { %4676 = vmatprep.subr.bf16.mxu1 %v5751_v4 }
 0x758   :  { %4667 = vmatmul.mubr.msk.bf16.vlgmr.msra.gmra.mxu1 %vm736_vm3, %v1208_v44 }
 0x759   :  { %4678 = vmatprep.mubr.msk.bf16.mxu1 %vm5753_vm0, %v5751_v4 }
 0x762   :  { %v1432_v46 = vpop.xlane.xlu1 %1431 }
 0x763   :  { %5175 = vrcp.f32 %v1432_v46 }
 0x766   :  { %v1322_v48 = vpop.permute.xlu1 %1321 }
 0x767   :  { %v1327_v49 = vsel %vm752_vm2, %v1322_v48, 0 }
 0x768   :  { %4677 = vmatpush3.bf16.msra.mxu1 %v1327_v49 }
 0x769   :  { %4688 = vmatprep.subr.bf16.mxu1 %v5751_v4 }
 0x76a   :  { %v1552_v63 = vpop.permute.xlu1 %1551 }
 0x76b   :  { %4679 = vmatmul.mubr.msk.bf16.vlgmr.msra.gmra.mxu1 %vm736_vm3, %v1319_v52  ;;  %v1557_v1 = vsel %vm752_vm2, %v1552_v63, 0 }
 0x76c   :  { %v1547_v56 = vpop.xlane.xlu0 %1546  ;;  %4690 = vmatprep.mubr.msk.bf16.mxu1 %vm5753_vm0, %v5751_v4 }
 0x76d   :  { %5177 = vrcp.f32 %v1547_v56 }
 0x770   :  { %v5176_v59 = vpop.eup %5175  ;;  %v1437_v60 = vpop.permute.xlu0 %1436 }
 0x771   :  { %v1442_v61 = vsel %vm752_vm2, %v1437_v60, 0  ;;  %v1434_v62 = vmul.f32 %v5176_v59, %v6132_v17  ;;  %v4278_v59 = vld [vmem:[#allocation9] ss:$0 sm:$0xff] }
 0x772   :  { %4689 = vmatpush3.bf16.msra.mxu1 %v1442_v61 }
 0x773   :  { %v1435_v0 = vpack.c.bf16 %v1434_v62, %v1434_v62  ;;  %4700 = vmatprep.subr.bf16.mxu1 %v5751_v4 }
 0x775   :  { %4691 = vmatmul.mubr.msk.bf16.vlgmr.msra.gmra.mxu1 %vm736_vm3, %v1435_v0 }
 0x776   :  { %4701 = vmatpush3.bf16.msra.mxu1 %v1557_v1  ;;  %4702 = vmatprep.mubr.msk.bf16.mxu1 %vm5753_vm0, %v5751_v4 }
 0x77a   :  { %v5178_v2 = vpop.eup %5177 }
 0x77b   :  { %v1549_v3 = vmul.f32 %v5178_v2, %v6136_v19 }
 0x77d   :  { %v1550_v5 = vpack.c.bf16 %v1549_v3, %v1549_v3 }
 0x77f   :  { %4703 = vmatmul.mubr.msk.bf16.vlgmr.msra.gmra.mxu1 %vm736_vm3, %v1550_v5  ;;  %v5007_v5 = vld [vmem:[%s6515_s0 + $0x70] ss:$8 sps:$4 sm:$0xff]  }
 0x780   :  { %1902 = vmatprep.mubr.bf16.mxu1 %v5752_v27 }
 0x800   :  { %v904_v6 = vpop.f32.mrf.mxu1 }
 0x801   :  { %911 = vrot.lane.b32.xlu1 %v904_v6, %s5755_s8  ;;  %v5009_v6 = vld [vmem:[%s6515_s0 + $0x74] ss:$8 sps:$4 sm:$0xff]  }
 0x802   :  { %v4632_v7 = vpop.f32.mrf.mxu1  ;;  %1870 = vmatprep.subr.bf16.mxu1 %v5009_v6 }
 0x803   :  { %1871 = vmatpush1.bf16.msra.mxu1 %v5007_v5  ;;  %v1778_v5 = vld [vmem:[#allocation14] sm:$0x3] }
 0x804   :  { %v907_v9 = vpop.f32.mrf.mxu1  ;;  %v1783_v6 = vrot.slane %v1778_v5, %v6030_v57 }
 0x806   :  { %v4633_v11 = vpop.f32.mrf.mxu1 }
 0x808   :  { %v1020_v12 = vpop.f32.mrf.mxu1 }
 0x809   :  { %1027 = vrot.lane.b32.xlu1 %v1020_v12, %s5730_s29 }
 0x80a   :  { %v4644_v14 = vpop.f32.mrf.mxu1 }
 0x80c   :  { %v1023_v15 = vpop.f32.mrf.mxu1 }
 0x80d   :  { %v5012_v15 = vld [vmem:[%s6515_s0 + $0x64] ss:$8 sps:$4 sm:$0xff]  }
 0x80e   :  { %v4645_v16 = vpop.f32.mrf.mxu1  ;;  %1872 = vmatprep.subr.bf16.mxu1 %v5012_v15 }
 0x80f   :  { %v5010_v16 = vld [vmem:[%s6515_s0 + $0x60] ss:$8 sps:$4 sm:$0xff]  }
 0x810   :  { %v1136_v17 = vpop.f32.mrf.mxu1  ;;  %1873 = vmatpush1.bf16.msra.mxu1 %v5010_v16 }
 0x811   :  { %1143 = vrot.lane.b32.xlu0 %v1136_v17, %s5754_s2  ;;  %v5015_v17 = vld [vmem:[%s6515_s0 + $0x54] ss:$8 sps:$4 sm:$0xff]  }
 0x812   :  { %v4656_v18 = vpop.f32.mrf.mxu1  ;;  %1874 = vmatprep.subr.bf16.mxu1 %v5015_v17 }
 0x813   :  { %v5013_v18 = vld [vmem:[%s6515_s0 + $0x50] ss:$8 sps:$4 sm:$0xff]  }
 0x814   :  { %v1139_v19 = vpop.f32.mrf.mxu1  ;;  %1875 = vmatpush1.bf16.msra.mxu1 %v5013_v18 }
 0x815   :  { %v5016_v19 = vld [vmem:[%s6515_s0 + $0x40] ss:$8 sps:$4 sm:$0xff]  }
 0x816   :  { %v4657_v20 = vpop.f32.mrf.mxu1 }
 0x817   :  { %v5018_v20 = vld [vmem:[%s6515_s0 + $0x44] ss:$8 sps:$4 sm:$0xff]  }
 0x818   :  { %v1249_v13 = vpop.f32.mrf.mxu1  ;;  %1876 = vmatprep.subr.bf16.mxu1 %v5018_v20 }
 0x819   :  { %1255 = vst.msk [vmem:[#allocation2 + $0x8] sm:$0xff] %vm689_vm1, %v1249_v13  ;;  %v5021_v13 = vld [vmem:[%s6515_s0 + $0x34] ss:$8 sps:$4 sm:$0xff]   ;;  %1877 = vmatpush1.bf16.msra.mxu1 %v5016_v19 }
 0x81a   :  { %v4668_v21 = vpop.f32.mrf.mxu1  ;;  %1878 = vmatprep.subr.bf16.mxu1 %v5021_v13 }
 0x81b   :  { %v5019_v21 = vld [vmem:[%s6515_s0 + $0x30] ss:$8 sps:$4 sm:$0xff]  }
 0x81c   :  { %v1252_v22 = vpop.f32.mrf.mxu1 }
 0x81d   :  { %v5024_v22 = vld [vmem:[%s6515_s0 + $0x24] ss:$8 sps:$4 sm:$0xff]   ;;  %1879 = vmatpush1.bf16.msra.mxu1 %v5019_v21 }
 0x81e   :  { %v4669_v23 = vpop.f32.mrf.mxu1  ;;  %1880 = vmatprep.subr.bf16.mxu1 %v5024_v22 }
 0x81f   :  { %v5022_v23 = vld [vmem:[%s6515_s0 + $0x20] ss:$8 sps:$4 sm:$0xff]  }
 0x821   :  { %1881 = vmatpush1.bf16.msra.mxu1 %v5022_v23 }
 0x822   :  { %1882 = vmatprep.subr.bf16.mxu1 %v5027_v24 }
 0x825   :  { %1883 = vmatpush1.bf16.msra.mxu1 %v5025_v25 }
 0x826   :  { %1884 = vmatprep.subr.bf16.mxu1 %v5030_v26 }
 0x82b   :  { %v1363_v28 = vpop.f32.mrf.mxu1 }
 0x82c   :  { %1370 = vrot.lane.b32.xlu1 %v1363_v28, %s5755_s8  ;;  %v5028_v28 = vld [vmem:[%s6515_s0] ss:$8 sps:$4 sm:$0xff]  }
 0x82d   :  { %v4680_v29 = vpop.f32.mrf.mxu1  ;;  %1885 = vmatpush1.bf16.msra.mxu1 %v5028_v28 }
 0x82f   :  { %v1366_v30 = vpop.f32.mrf.mxu1 }
 0x831   :  { %v4681_v32 = vpop.f32.mrf.mxu1 }
 0x835   :  { %v1478_v34 = vpop.f32.mrf.mxu1 }
 0x836   :  { %1485 = vrot.lane.b32.xlu1 %v1478_v34, %s5730_s29 }
 0x837   :  { %v4692_v35 = vpop.f32.mrf.mxu1 }
 0x839   :  { %v1481_v37 = vpop.f32.mrf.mxu1 }
 0x83b   :  { %v4693_v38 = vpop.f32.mrf.mxu1 }
 0x83f   :  { %v1593_v39 = vpop.f32.mrf.mxu1 }
 0x840   :  { %1600 = vrot.lane.b32.xlu1 %v1593_v39, %s5754_s2 }
 0x841   :  { %v4704_v40 = vpop.f32.mrf.mxu1 }
 0x842   :  { %v4288_v40 = vld [vmem:[#allocation12] ss:$0 sm:$0xff] }
 0x843   :  { %v1596_v41 = vpop.f32.mrf.mxu1 }
 0x845   :  { %v4705_v42 = vpop.f32.mrf.mxu1 }
 0x873   :  { %v912_v43 = vpop.permute.xlu1 %911 }
 0x874   :  { %915 = vst.msk [vmem:[#allocation2] sm:$0xff] %vm914_vm4, %v912_v43 }
 0x87b   :  { %v1028_v44 = vpop.permute.xlu1 %1027 }
 0x87c   :  { %1031 = vst.msk [vmem:[#allocation2] sm:$0xff] %vm1030_vm5, %v1028_v44 }
 0x883   :  { %v1144_v45 = vpop.permute.xlu0 %1143 }
 0x884   :  { %1147 = vst.msk [vmem:[#allocation2] sm:$0xff] %vm1146_vm6, %v1144_v45  ;;  %v5031_v45 = vld [vmem:[#allocation15 + $0x78] sm:$0xff]  }
 0x885   :  { %4478 = vmatprep.subr.bf16.mxu0 %v5031_v45 }
 0x88b   :  { %v1604_v49 = vld [vmem:[#allocation2] sm:$0xff] }
 0x89e   :  { %v1371_v46 = vpop.permute.xlu1 %1370 }
 0x89f   :  { %1373 = vst.msk [vmem:[#allocation2 + $0x8] sm:$0xff] %vm914_vm4, %v1371_v46  ;;  %v5032_v46 = vld [vmem:[#allocation15 + $0x38] sm:$0xff]  }
 0x8a8   :  { %v1486_v47 = vpop.permute.xlu1 %1485 }
 0x8a9   :  { %1488 = vst.msk [vmem:[#allocation2 + $0x8] sm:$0xff] %vm1030_vm5, %v1486_v47  ;;  %v5033_v47 = vld [vmem:[#allocation15 + $0x70] sm:$0xff]  }
 0x8b2   :  { %v1601_v48 = vpop.permute.xlu1 %1600 }
 0x8b3   :  { %1603 = vst.msk [vmem:[#allocation2 + $0x8] sm:$0xff] %vm1146_vm6, %v1601_v48  ;;  %v5034_v48 = vld [vmem:[#allocation15 + $0x30] sm:$0xff]  }
 0x8ba   :  { %v1605_v52 = vld [vmem:[#allocation2 + $0x8] sm:$0xff] }
 0x8bb   :  { %v1606_v56 = vpack.c.bf16 %v1605_v52, %v1604_v49  ;;  %v5035_v49 = vld [vmem:[#allocation15 + $0x68] sm:$0xff]  }
 0x8bc   :  { %v5036_v52 = vld [vmem:[#allocation15 + $0x28] sm:$0xff]  }
 0x8bd   :  { %4723 = vmatmul.mubr.bf16.vlgmr.msra.gmra.mxu0 %v1606_v56  ;;  %v5037_v56 = vld [vmem:[#allocation15 + $0x60] sm:$0xff]  }
 0x8be   :  { %4479 = vmatpush3.bf16.msra.mxu0 %v5032_v46 }
 0x8bf   :  { %4480 = vmatprep.subr.bf16.mxu0 %v5033_v47 }
 0x8c2   :  { %4481 = vmatpush3.bf16.msra.mxu0 %v5034_v48 }
 0x8c3   :  { %4482 = vmatprep.subr.bf16.mxu0 %v5035_v49 }
 0x8c6   :  { %4483 = vmatpush3.bf16.msra.mxu0 %v5036_v52 }
 0x8c7   :  { %4484 = vmatprep.subr.bf16.mxu0 %v5037_v56 }
 0x97d   :  { %v1712_v60 = vpop.f32.mrf.mxu0 }
 0x97e   :  { %v1713_v61 = vadd.f32 %v4278_v59, %v1712_v60  ;;  %v5039_v60 = vld [vmem:[#allocation15 + $0x58] sm:$0xff]  }
 0x97f   :  { %v4724_v62 = vpop.f32.mrf.mxu0 }
 0x980   :  { %v1719_v63 = vadd.f32 %v1713_v61, %v6013_v50  ;;  %v5040_v61 = vld [vmem:[#allocation15 + $0x18] sm:$0xff]   ;;  %v5041_v62 = vld [vmem:[#allocation15 + $0x50] sm:$0xff]  }
 0x981   :  { %v1715_v0 = vpop.f32.mrf.mxu0 }
 0x982   :  { %v1716_v1 = vadd.f32 %v4278_v59, %v1715_v0  ;;  %1723 = vadd.xlane.f32.xlu0 %v1719_v63  ;;  %v5038_v59 = vld [vmem:[#allocation15 + $0x20] sm:$0xff]   ;;  %v5043_v0 = vld [vmem:[#allocation15 + $0x48] sm:$0xff]  }
 0x983   :  { %v4725_v2 = vpop.f32.mrf.mxu0  ;;  %4485 = vmatpush3.bf16.msra.mxu0 %v5038_v59 }
 0x984   :  { %v1720_v3 = vadd.f32 %v1716_v1, %v6015_v51  ;;  %4486 = vmatprep.subr.bf16.mxu0 %v5039_v60  ;;  %v5044_v1 = vld [vmem:[#allocation15 + $0x8] sm:$0xff]   ;;  %v5045_v2 = vld [vmem:[#allocation15 + $0x40] sm:$0xff]  }
 0x986   :  { %1725 = vadd.xlane.f32.xlu1 %v1720_v3 }
 0x987   :  { %4487 = vmatpush3.bf16.msra.mxu0 %v5040_v61 }
 0x988   :  { %4488 = vmatprep.subr.bf16.mxu0 %v5041_v62 }
 0xa0b   :  { %v1724_v7 = vpop.xlane.xlu0 %1723 }
 0xa0c   :  { %v1727_v9 = vmul.f32 0.0078125, %v1724_v7  ;;  %v1787_v7 = vrot.slane %v1778_v5, %v6027_v55 }
 0xa0e   :  { %v1729_v10 = vsub.f32 %v1719_v63, %v1727_v9  ;;  %v5042_v63 = vld [vmem:[#allocation15 + $0x10] sm:$0xff]  }
 0xa0f   :  { %v1726_v50 = vpop.xlane.xlu1 %1725  ;;  %4489 = vmatpush3.bf16.msra.mxu0 %v5042_v63  ;;  %v4305_v63 = vld [vmem:[#allocation17] ss:$0 sm:$0xff] }
 0xa10   :  { %v1728_v11 = vmul.f32 0.0078125, %v1726_v50  ;;  %v1731_v12 = vmul.f32 %v1729_v10, %v1729_v10  ;;  %4490 = vmatprep.subr.bf16.mxu0 %v5043_v0 }
 0xa12   :  { %v1730_v14 = vsub.f32 %v1720_v3, %v1728_v11  ;;  %1733 = vadd.xlane.f32.xlu0 %v1731_v12  ;;  %v5046_v3 = vld [vmem:[#allocation15] sm:$0xff]  }
 0xa13   :  { %4491 = vmatpush3.bf16.msra.mxu0 %v5044_v1 }
 0xa14   :  { %v1732_v51 = vmul.f32 %v1730_v14, %v1730_v14  ;;  %4492 = vmatprep.subr.bf16.mxu0 %v5045_v2 }
 0xa16   :  { %1735 = vadd.xlane.f32.xlu0 %v1732_v51 }
 0xa17   :  { %4493 = vmatpush3.bf16.msra.mxu0 %v5046_v3 }
 0xa18   :  { %4726 = vmatprep.subr.bf16.mxu0 %v5751_v4 }
 0xa9b   :  { %v1734_v8 = vpop.xlane.xlu0 %1733 }
 0xa9c   :  { %v1737_v29 = vmul.f32 0.0078125, %v1734_v8 }
 0xa9e   :  { %v1739_v30 = vadd.f32 1e-12, %v1737_v29 }
 0xa9f   :  { %v1736_v31 = vpop.xlane.xlu0 %1735 }
 0xaa0   :  { %5179 = vrsqrt.f32 %v1739_v30  ;;  %v1738_v32 = vmul.f32 0.0078125, %v1736_v31 }
 0xaa2   :  { %v1740_v33 = vadd.f32 1e-12, %v1738_v32 }
 0xaa4   :  { %5181 = vrsqrt.f32 %v1740_v33 }
 0xaad   :  { %v5180_v34 = vpop.eup %5179 }
 0xaae   :  { %v1743_v35 = vmul.f32 %v5180_v34, %v1729_v10 }
 0xab0   :  { %v1751_v39 = vmul.f32 %v4287_v36, %v1743_v35 }
 0xab1   :  { %v5182_v37 = vpop.eup %5181 }
 0xab2   :  { %v1744_v38 = vmul.f32 %v5182_v37, %v1730_v14  ;;  %v6222_v42 = vadd.f32 %v4288_v40, %v1751_v39 }
 0xab4   :  { %v1752_v41 = vmul.f32 %v4287_v36, %v1744_v38 }
 0xab6   :  { %v6224_v43 = vadd.f32 %v4288_v40, %v1752_v41 }
 0xab8   :  { %v1761_v44 = vpack.c.bf16 %v6224_v43, %v6222_v42 }
 0xaba   :  { %1903 = vmatmul.mubr.bf16.vlgmr.msra.gmra.mxu1 %v1761_v44 }
 0xabb   :  { %2379 = vmatprep.mubr.bf16.mxu1 %v5752_v27 }
 0xb7a   :  { %v1904_v9 = vpop.f32.mrf.mxu1 }
 0xb7b   :  { %v1905_v10 = vadd.f32 %v1904_v9, %v1783_v6 }
 0xb7c   :  { %v1906_v50 = vpop.f32.mrf.mxu1 }
 0xb7d   :  { %v1917_v11 = vmul.f32 0.044715, %v1905_v10  ;;  %v1907_v12 = vadd.f32 %v1906_v50, %v1787_v7  ;;  %v1913_v48 = vmul.f32 0.5, %v1905_v10  ;;  %v5047_v50 = vld [vmem:[#allocation21 + $0xa8] ss:$12 sps:$4 sm:$0xff]  }
 0xb7e   :  { %v1908_v14 = vpop.f32.mrf.mxu1 }
 0xb7f   :  { %v1921_v51 = vmul.f32 %v1917_v11, %v1905_v10  ;;  %v1918_v15 = vmul.f32 0.044715, %v1907_v12  ;;  %v1909_v16 = vadd.f32 %v1908_v14, %v1783_v6  ;;  %v1914_v45 = vmul.f32 0.5, %v1907_v12  ;;  %v5049_v11 = vld [vmem:[#allocation21 + $0xac] ss:$12 sps:$4 sm:$0xff]  }
 0xb80   :  { %v1910_v17 = vpop.f32.mrf.mxu1  ;;  %2347 = vmatprep.subr.bf16.mxu1 %v5049_v11 }
 0xb81   :  { %v1925_v18 = vmul.f32 %v1921_v51, %v1905_v10  ;;  %v1922_v19 = vmul.f32 %v1918_v15, %v1907_v12  ;;  %v1919_v20 = vmul.f32 0.044715, %v1909_v16  ;;  %v1911_v13 = vadd.f32 %v1910_v17, %v1787_v7  ;;  %2348 = vmatpush1.bf16.msra.mxu1 %v5047_v50 }
 0xb82   :  { %v1915_v41 = vmul.f32 0.5, %v1909_v16 }
 0xb83   :  { %v1929_v21 = vadd.f32 %v1925_v18, %v1905_v10  ;;  %v1926_v22 = vmul.f32 %v1922_v19, %v1907_v12  ;;  %v1923_v23 = vmul.f32 %v1919_v20, %v1909_v16  ;;  %v1920_v24 = vmul.f32 0.044715, %v1911_v13  ;;  %v5053_v19 = vld [vmem:[#allocation21 + $0x94] ss:$12 sps:$4 sm:$0xff]   ;;  %v5051_v20 = vld [vmem:[#allocation21 + $0x90] ss:$12 sps:$4 sm:$0xff]  }
 0xb84   :  { %v1916_v46 = vmul.f32 0.5, %v1911_v13  ;;  %2349 = vmatprep.subr.bf16.mxu1 %v5053_v19 }
 0xb85   :  { %v1927_v25 = vmul.f32 %v1923_v23, %v1909_v16  ;;  %v1924_v26 = vmul.f32 %v1920_v24, %v1911_v13  ;;  %v1930_v28 = vadd.f32 %v1926_v22, %v1907_v12  ;;  %v1933_v8 = vmul.f32 0.7978846, %v1929_v21  ;;  %v5050_v12 = vld [vmem:[#allocation21 + $0xb0] ss:$12 sps:$4 sm:$0xff]   ;;  %2350 = vmatpush1.bf16.msra.mxu1 %v5051_v20  ;;  %v5055_v22 = vld [vmem:[#allocation21 + $0x78] ss:$12 sps:$4 sm:$0xff]  }
 0xb86   :  { %v5057_v21 = vld [vmem:[#allocation21 + $0x7c] ss:$12 sps:$4 sm:$0xff]   ;;  %v5058_v23 = vld [vmem:[#allocation21 + $0x80] ss:$12 sps:$4 sm:$0xff]  }
 0xb87   :  { %v1931_v29 = vadd.f32 %v1927_v25, %v1909_v16  ;;  %v1928_v30 = vmul.f32 %v1924_v26, %v1911_v13  ;;  %v1934_v31 = vmul.f32 0.7978846, %v1930_v28  ;;  %2351 = vmatprep.subr.bf16.mxu1 %v5057_v21  ;;  %v5059_v24 = vld [vmem:[#allocation21 + $0x60] ss:$12 sps:$4 sm:$0xff]   ;;  %v5061_v25 = vld [vmem:[#allocation21 + $0x64] ss:$12 sps:$4 sm:$0xff]  }
 0xb88   :  { %v5062_v26 = vld [vmem:[#allocation21 + $0x68] ss:$12 sps:$4 sm:$0xff]   ;;  %v5065_v28 = vld [vmem:[#allocation21 + $0x4c] ss:$12 sps:$4 sm:$0xff]  }
 0xb89   :  { %v1935_v32 = vmul.f32 0.7978846, %v1931_v29  ;;  %v1932_v33 = vadd.f32 %v1928_v30, %v1911_v13  ;;  %5183 = vtanh.f32 %v1934_v31  ;;  %v5054_v13 = vld [vmem:[#allocation21 + $0x98] ss:$12 sps:$4 sm:$0xff]   ;;  %2352 = vmatpush1.bf16.msra.mxu1 %v5055_v22  ;;  %v5066_v29 = vld [vmem:[#allocation21 + $0x50] ss:$12 sps:$4 sm:$0xff]  }
 0xb8a   :  { %5185 = vtanh.f32 %v1933_v8  ;;  %2353 = vmatprep.subr.bf16.mxu1 %v5061_v25  ;;  %v5063_v8 = vld [vmem:[#allocation21 + $0x48] ss:$12 sps:$4 sm:$0xff]   ;;  %v5067_v31 = vld [vmem:[#allocation21 + $0x30] ss:$12 sps:$4 sm:$0xff]  }
 0xb8b   :  { %5187 = vtanh.f32 %v1935_v32  ;;  %v1936_v34 = vmul.f32 0.7978846, %v1932_v33  ;;  %v5069_v30 = vld [vmem:[#allocation21 + $0x34] ss:$12 sps:$4 sm:$0xff]   ;;  %v5070_v32 = vld [vmem:[#allocation21 + $0x38] ss:$12 sps:$4 sm:$0xff]  }
 0xb8c   :  { %v5073_v33 = vld [vmem:[#allocation21 + $0x1c] ss:$12 sps:$4 sm:$0xff]  }
 0xb8d   :  { %5189 = vtanh.f32 %v1936_v34  ;;  %2354 = vmatpush1.bf16.msra.mxu1 %v5059_v24  ;;  %v5071_v34 = vld [vmem:[#allocation21 + $0x18] ss:$12 sps:$4 sm:$0xff]  }
 0xb8e   :  { %2355 = vmatprep.subr.bf16.mxu1 %v5065_v28 }
 0xb91   :  { %2356 = vmatpush1.bf16.msra.mxu1 %v5063_v8 }
 0xb92   :  { %2357 = vmatprep.subr.bf16.mxu1 %v5069_v30 }
 0xb95   :  { %2358 = vmatpush1.bf16.msra.mxu1 %v5067_v31 }
 0xb96   :  { %v5184_v35 = vpop.eup %5183  ;;  %2359 = vmatprep.subr.bf16.mxu1 %v5073_v33 }
 0xb97   :  { %v5186_v36 = vpop.eup %5185  ;;  %v1942_v38 = vadd.f32 1.0, %v5184_v35  ;;  %v5074_v35 = vld [vmem:[#allocation21 + $0x20] ss:$12 sps:$4 sm:$0xff]  }
 0xb98   :  { %v5188_v37 = vpop.eup %5187  ;;  %v1941_v44 = vadd.f32 1.0, %v5186_v36  ;;  %v5077_v36 = vld [vmem:[#allocation21 + $0x4] ss:$12 sps:$4 sm:$0xff]  }
 0xb99   :  { %v1943_v39 = vadd.f32 1.0, %v5188_v37  ;;  %v1946_v52 = vmul.f32 %v1942_v38, %v1914_v45  ;;  %2360 = vmatpush1.bf16.msra.mxu1 %v5071_v34  ;;  %v5075_v37 = vld [vmem:[#allocation21] ss:$12 sps:$4 sm:$0xff]   ;;  %v5078_v38 = vld [vmem:[#allocation21 + $0x8] ss:$12 sps:$4 sm:$0xff]  }
 0xb9a   :  { %v5190_v40 = vpop.eup %5189  ;;  %v1945_v59 = vmul.f32 %v1941_v44, %v1913_v48  ;;  %2361 = vmatprep.subr.bf16.mxu1 %v5077_v36 }
 0xb9b   :  { %v1944_v47 = vadd.f32 1.0, %v5190_v40  ;;  %v1947_v49 = vmul.f32 %v1943_v39, %v1915_v41 }
 0xb9d   :  { %v1948_v56 = vmul.f32 %v1944_v47, %v1916_v46  ;;  %v1949_v61 = vpack.c.bf16 %v1947_v49, %v1945_v59  ;;  %2362 = vmatpush1.bf16.msra.mxu1 %v5075_v37  ;;  %v4322_v49 = vld [vmem:[#allocation18] ss:$0 sm:$0xff] }
 0xb9e   :  { %4746 = vmatprep.subr.bf16.mxu1 %v5751_v4 }
 0xb9f   :  { %v1950_v60 = vpack.c.bf16 %v1948_v56, %v1946_v52 }
 0xba1   :  { %2118 = vmatprep.mubr.bf16.mxu0 %v1950_v60  ;;  %v4323_v60 = vld [vmem:[#allocation20] ss:$0 sm:$0xff] }
 0xba2   :  { %2119 = vmatmul.mubr.bf16.vlgmr.msra.gmra.mxu0 %v1949_v61 }
 0xba3   :  { %4742 = vmatprep.mubr.msk.bf16.mxu0 %vm5753_vm0, %v5751_v4  ;;  %4727 = vmatpush3.bf16.msra.mxu0 %v5050_v12 }
 0xba4   :  { %4728 = vmatprep.subr.bf16.mxu0 %v5751_v4 }
 0xba7   :  { %4729 = vmatpush3.bf16.msra.mxu0 %v5054_v13 }
 0xba8   :  { %4730 = vmatprep.subr.bf16.mxu0 %v5751_v4 }
 0xbab   :  { %4731 = vmatpush3.bf16.msra.mxu0 %v5058_v23 }
 0xbac   :  { %4732 = vmatprep.subr.bf16.mxu0 %v5751_v4 }
 0xbaf   :  { %4733 = vmatpush3.bf16.msra.mxu0 %v5062_v26 }
 0xbb0   :  { %4734 = vmatprep.subr.bf16.mxu0 %v5751_v4 }
 0xbb3   :  { %4735 = vmatpush3.bf16.msra.mxu0 %v5066_v29 }
 0xbb4   :  { %4736 = vmatprep.subr.bf16.mxu0 %v5751_v4 }
 0xbb7   :  { %4737 = vmatpush3.bf16.msra.mxu0 %v5070_v32 }
 0xbb8   :  { %4738 = vmatprep.subr.bf16.mxu0 %v5751_v4 }
 0xbbb   :  { %4739 = vmatpush3.bf16.msra.mxu0 %v5074_v35 }
 0xbbc   :  { %4740 = vmatprep.subr.bf16.mxu0 %v5751_v4 }
 0xbbf   :  { %4741 = vmatpush3.bf16.msra.mxu0 %v5078_v38 }
 0xbc0   :  { %4770 = vmatprep.subr.bf16.mxu0 %v5751_v4 }
 0xc62   :  { %v4494_v62 = vpop.f32.mrf.mxu0 }
 0xc64   :  { %v4495_v0 = vpop.f32.mrf.mxu0 }
 0xc65   :  { %v4496_v1 = vadd.f32 %v4495_v0, %v4494_v62 }
 0xc66   :  { %v4497_v2 = vpop.f32.mrf.mxu0 }
 0xc67   :  { %v2121_v3 = vadd.f32 %v4496_v1, %v4305_v63  ;;  %v2202_v1 = vld [vmem:[%s6516_s19] sm:$0x7] }
 0xc68   :  { %v4498_v5 = vpop.f32.mrf.mxu0 }
 0xc69   :  { %v4499_v6 = vadd.f32 %v4498_v5, %v4497_v2  ;;  %v2127_v7 = vadd.f32 %v2121_v3, %v6222_v42  ;;  %v2211_v2 = vrot.slane %v2202_v1, %v6027_v55 }
 0xc6b   :  { %v2124_v9 = vadd.f32 %v4499_v6, %v4305_v63  ;;  %2131 = vadd.xlane.f32.xlu0 %v2127_v7 }
 0xc6d   :  { %v2128_v10 = vadd.f32 %v2124_v9, %v6224_v43  ;;  %v2207_v9 = vrot.slane %v2202_v1, %v6030_v57 }
 0xc6f   :  { %2133 = vadd.xlane.f32.xlu1 %v2128_v10 }
 0xcf4   :  { %v2132_v14 = vpop.xlane.xlu0 %2131 }
 0xcf5   :  { %v2135_v51 = vmul.f32 0.0078125, %v2132_v14 }
 0xcf7   :  { %v6237_v15 = vsub.f32 %v2127_v7, %v2135_v51 }
 0xcf8   :  { %v2134_v16 = vpop.xlane.xlu1 %2133 }
 0xcf9   :  { %v2136_v17 = vmul.f32 0.0078125, %v2134_v16  ;;  %v2139_v42 = vmul.f32 %v6237_v15, %v6237_v15 }
 0xcfb   :  { %v6241_v18 = vsub.f32 %v2128_v10, %v2136_v17  ;;  %2141 = vadd.xlane.f32.xlu0 %v2139_v42  ;;  %v2215_v10 = vrot.slane %v2202_v1, %v469_v58 }
 0xcfd   :  { %v2140_v43 = vmul.f32 %v6241_v18, %v6241_v18 }
 0xcff   :  { %2143 = vadd.xlane.f32.xlu1 %v2140_v43 }
 0xd84   :  { %v2142_v39 = vpop.xlane.xlu0 %2141 }
 0xd85   :  { %v2145_v40 = vmul.f32 0.0078125, %v2142_v39 }
 0xd87   :  { %v2147_v41 = vadd.f32 1e-12, %v2145_v40 }
 0xd88   :  { %v2144_v44 = vpop.xlane.xlu1 %2143 }
 0xd89   :  { %5191 = vrsqrt.f32 %v2147_v41  ;;  %v2146_v45 = vmul.f32 0.0078125, %v2144_v44 }
 0xd8b   :  { %v2148_v46 = vadd.f32 1e-12, %v2146_v45 }
 0xd8d   :  { %5193 = vrsqrt.f32 %v2148_v46 }
 0xd96   :  { %v5192_v47 = vpop.eup %5191 }
 0xd97   :  { %v2151_v48 = vmul.f32 %v5192_v47, %v6237_v15 }
 0xd99   :  { %v2159_v59 = vmul.f32 %v4322_v49, %v2151_v48 }
 0xd9a   :  { %v5194_v52 = vpop.eup %5193 }
 0xd9b   :  { %v2152_v56 = vmul.f32 %v5194_v52, %v6241_v18  ;;  %v6255_v62 = vadd.f32 %v4323_v60, %v2159_v59 }
 0xd9d   :  { %v2160_v61 = vmul.f32 %v4322_v49, %v2152_v56 }
 0xd9f   :  { %v6257_v63 = vadd.f32 %v4323_v60, %v2160_v61 }
 0xda1   :  { %v2169_v0 = vpack.c.bf16 %v6257_v63, %v6255_v62 }
 0xda3   :  { %2380 = vmatmul.mubr.bf16.vlgmr.msra.gmra.mxu1 %v2169_v0  ;;  %4743 = vmatmul.mubr.bf16.vlgmr.msra.gmra.mxu0 %v2169_v0 }
 0xda4   :  { %4748 = vmatprep.mubr.msk.bf16.mxu1 %vm5753_vm0, %v5751_v4  ;;  %4772 = vmatprep.mubr.msk.bf16.mxu0 %vm5753_vm0, %v5751_v4 }
 0xe63   :  { %v2381_v3 = vpop.f32.mrf.mxu1  ;;  %v2424_v5 = vpop.f32.mrf.mxu0 }
 0xe64   :  { %v2425_v17 = vadd.f32 %v2424_v5, %v2215_v10  ;;  %v2382_v18 = vadd.f32 %v2381_v3, %v2207_v9 }
 0xe65   :  { %v2383_v6 = vpop.f32.mrf.mxu1  ;;  %v4744_v7 = vpop.f32.mrf.mxu0 }
 0xe66   :  { %v2384_v50 = vadd.f32 %v2383_v6, %v2211_v2  ;;  %v6274_v43 = vpack.c.bf16 %v2425_v17, %v2425_v17  ;;  %v2431_v19 = vpack.c.bf16 %v2382_v18, %v2382_v18 }
 0xe67   :  { %v2385_v11 = vpop.f32.mrf.mxu1  ;;  %v2427_v12 = vpop.f32.mrf.mxu0 }
 0xe68   :  { %v2432_v14 = vpack.c.bf16 %v2384_v50, %v2384_v50  ;;  %v2386_v51 = vadd.f32 %v2385_v11, %v2207_v9  ;;  %v6270_v15 = vadd.f32 %v2427_v12, %v2215_v10  ;;  %v2496_v54 = vsel %vm752_vm2, %v6274_v43, 0 }
 0xe69   :  { %v4745_v16 = vpop.f32.mrf.mxu0  ;;  %v2387_v58 = vpop.f32.mrf.mxu1 }
 0xe6a   :  { %v2438_v42 = vsel %vm689_vm1, %v2432_v14, 0  ;;  %v2388_v24 = vadd.f32 %v2387_v58, %v2211_v2  ;;  %v2887_v31 = vpack.c.bf16 %v2386_v51, %v2386_v51 }
 0xe6b   :  { %4747 = vmatpush3.bf16.xpose.msra.mxu1 %v2438_v42 }
 0xe6c   :  { %4752 = vmatprep.subr.bf16.mxu1 %v5751_v4  ;;  %v2888_v25 = vpack.c.bf16 %v2388_v24, %v2388_v24 }
 0xe6e   :  { %v2894_v47 = vsel %vm689_vm1, %v2888_v25, 0 }
 0xe72   :  { %4749 = vmatmul.mubr.msk.bf16.vlgmr.msra.gmra.mxu1 %vm689_vm1, %v2431_v19 }
 0xe73   :  { %4753 = vmatpush3.bf16.msra.mxu1 %v2496_v54  ;;  %4754 = vmatprep.mubr.msk.bf16.mxu1 %vm5753_vm0, %v5751_v4 }
 0xe74   :  { %4758 = vmatprep.subr.bf16.mxu1 %v5751_v4 }
 0xf32   :  { %v2474_v20 = vpop.f32.mrf.mxu1 }
 0xf33   :  { %v2480_v13 = vsel %vm736_vm3, %v2474_v20, -inf }
 0xf34   :  { %2481 = vmax.xlane.f32.xlu0 %v2480_v13  ;;  %v4750_v21 = vpop.f32.mrf.mxu1 }
 0xf36   :  { %v2477_v22 = vpop.f32.mrf.mxu1 }
 0xf38   :  { %v4751_v23 = vpop.f32.mrf.mxu1 }
 0xf4a   :  { %2543 = vrot.lane.b32.xlu0 %v2432_v14, %s5754_s2 }
 0xf4e   :  { %2774 = vrot.lane.b32.xlu0 %v2432_v14, %s5755_s8 }
 0xf52   :  { %2999 = vrot.lane.b32.xlu0 %v2888_v25, %s5754_s2 }
 0xf56   :  { %3115 = vrot.lane.b32.xlu0 %v2888_v25, %s5730_s29 }
 0xf5a   :  { %3230 = vrot.lane.b32.xlu0 %v2888_v25, %s5755_s8 }
 0xfbd   :  { %v2482_v26 = vpop.xlane.xlu0 %2481 }
 0xfbe   :  { %v2483_v28 = vsub.f32 %v2474_v20, %v2482_v26 }
 0xfc0   :  { %v2484_v8 = vmul.f32 1.442695, %v2483_v28 }
 0xfc1   :  { %v2544_v34 = vpop.permute.xlu0 %2543 }
 0xfc2   :  { %5195 = vpow2.f32 %v2484_v8  ;;  %v2549_v45 = vsel %vm689_vm1, %v2544_v34, 0 }
 0xfc5   :  { %v2775_v38 = vpop.permute.xlu0 %2774 }
 0xfc6   :  { %v2780_v41 = vsel %vm689_vm1, %v2775_v38, 0 }
 0xfc9   :  { %v3000_v48 = vpop.permute.xlu0 %2999 }
 0xfca   :  { %v3005_v49 = vsel %vm689_vm1, %v3000_v48, 0 }
 0xfcd   :  { %v3116_v52 = vpop.permute.xlu0 %3115 }
 0xfce   :  { %v3121_v59 = vsel %vm689_vm1, %v3116_v52, 0 }
 0xfcf   :  { %v5196_v29 = vpop.eup %5195 }
 0xfd0   :  { %v2486_v30 = vsel %vm736_vm3, %v5196_v29, 0.0 }
 0xfd1   :  { %2487 = vadd.xlane.f32.xlu1 %v2486_v30  ;;  %v3231_v60 = vpop.permute.xlu0 %3230 }
 0xfd2   :  { %v3236_v0 = vsel %vm689_vm1, %v3231_v60, 0 }
 0xfe2   :  { %2540 = vrot.lane.b32.xlu1 %v2431_v19, %s5754_s2 }
 0xfe6   :  { %2659 = vrot.lane.b32.xlu1 %v2432_v14, %s5730_s29 }
 0xfea   :  { %2657 = vrot.lane.b32.xlu1 %v2431_v19, %s5730_s29 }
 0xfee   :  { %2772 = vrot.lane.b32.xlu1 %v2431_v19, %s5755_s8 }
 0xff2   :  { %2996 = vrot.lane.b32.xlu1 %v2887_v31, %s5754_s2 }
 0xff6   :  { %3113 = vrot.lane.b32.xlu1 %v2887_v31, %s5730_s29 }
 0xffa   :  { %3228 = vrot.lane.b32.xlu1 %v2887_v31, %s5755_s8 }
0x105a   :  { %v2488_v32 = vpop.xlane.xlu1 %2487 }
0x105b   :  { %5197 = vrcp.f32 %v2488_v32 }
0x105e   :  { %v2541_v33 = vpop.permute.xlu1 %2540 }
0x1062   :  { %v2660_v35 = vpop.permute.xlu1 %2659 }
0x1063   :  { %v2665_v36 = vsel %vm689_vm1, %v2660_v35, 0 }
0x1064   :  { %4771 = vmatpush3.bf16.xpose.msra.mxu0 %v2665_v36 }
0x1065   :  { %4782 = vmatprep.subr.bf16.mxu0 %v5751_v4 }
0x1066   :  { %v2658_v40 = vpop.permute.xlu1 %2657 }
0x1068   :  { %v5198_v37 = vpop.eup %5197 }
0x1069   :  { %v2490_v39 = vmul.f32 %v5198_v37, %v5196_v29 }
0x106a   :  { %v2773_v46 = vpop.permute.xlu1 %2772 }
0x106b   :  { %4773 = vmatmul.mubr.msk.bf16.vlgmr.msra.gmra.mxu0 %vm689_vm1, %v2658_v40  ;;  %v2491_v44 = vpack.c.bf16 %v2490_v39, %v2490_v39 }
0x106c   :  { %4783 = vmatpush3.bf16.xpose.msra.mxu0 %v2780_v41  ;;  %4784 = vmatprep.mubr.msk.bf16.mxu0 %vm5753_vm0, %v5751_v4 }
0x106d   :  { %4755 = vmatmul.mubr.msk.bf16.vlgmr.msra.gmra.mxu1 %vm736_vm3, %v2491_v44  ;;  %4794 = vmatprep.subr.bf16.mxu0 %v5751_v4 }
0x106e   :  { %4759 = vmatpush3.bf16.xpose.msra.mxu1 %v2549_v45  ;;  %4760 = vmatprep.mubr.msk.bf16.mxu1 %vm5753_vm0, %v5751_v4  ;;  %v2997_v56 = vpop.permute.xlu1 %2996 }
0x106f   :  { %4764 = vmatprep.subr.bf16.mxu1 %v5751_v4 }
0x1072   :  { %v3114_v61 = vpop.permute.xlu1 %3113 }
0x1073   :  { %4785 = vmatmul.mubr.msk.bf16.vlgmr.msra.gmra.mxu0 %vm689_vm1, %v2773_v46 }
0x1074   :  { %4795 = vmatpush3.bf16.xpose.msra.mxu0 %v2894_v47  ;;  %4796 = vmatprep.mubr.msk.bf16.mxu0 %vm5753_vm0, %v5751_v4 }
0x1075   :  { %4761 = vmatmul.mubr.msk.bf16.vlgmr.msra.gmra.mxu1 %vm689_vm1, %v2541_v33  ;;  %4806 = vmatprep.subr.bf16.mxu0 %v5751_v4 }
0x1076   :  { %4766 = vmatprep.mubr.msk.bf16.mxu1 %vm5753_vm0, %v5751_v4  ;;  %v3229_v1 = vpop.permute.xlu1 %3228 }
0x107b   :  { %4797 = vmatmul.mubr.msk.bf16.vlgmr.msra.gmra.mxu0 %vm689_vm1, %v2887_v31 }
0x107c   :  { %4807 = vmatpush3.bf16.xpose.msra.mxu0 %v3005_v49  ;;  %4808 = vmatprep.mubr.msk.bf16.mxu0 %vm5753_vm0, %v5751_v4 }
0x107d   :  { %4818 = vmatprep.subr.bf16.mxu0 %v5751_v4 }
0x1083   :  { %4809 = vmatmul.mubr.msk.bf16.vlgmr.msra.gmra.mxu0 %vm689_vm1, %v2997_v56 }
0x1084   :  { %4819 = vmatpush3.bf16.xpose.msra.mxu0 %v3121_v59  ;;  %4820 = vmatprep.mubr.msk.bf16.mxu0 %vm5753_vm0, %v5751_v4 }
0x1085   :  { %4830 = vmatprep.subr.bf16.mxu0 %v5751_v4 }
0x108b   :  { %4821 = vmatmul.mubr.msk.bf16.vlgmr.msra.gmra.mxu0 %vm689_vm1, %v3114_v61 }
0x108c   :  { %4831 = vmatpush3.bf16.xpose.msra.mxu0 %v3236_v0  ;;  %4832 = vmatprep.mubr.msk.bf16.mxu0 %vm5753_vm0, %v5751_v4 }
0x108d   :  { %4842 = vmatprep.subr.bf16.mxu0 %v5751_v4 }
0x1093   :  { %4833 = vmatmul.mubr.msk.bf16.vlgmr.msra.gmra.mxu0 %vm689_vm1, %v3229_v1 }
0x1094   :  { %4858 = vmatprep.mubr.msk.bf16.mxu0 %vm5753_vm0, %v5751_v4 }
0x112b   :  { %v2701_v2 = vpop.f32.mrf.mxu0 }
0x112c   :  { %v2707_v3 = vsel %vm736_vm3, %v2701_v2, -inf }
0x112d   :  { %2708 = vmax.xlane.f32.xlu1 %v2707_v3  ;;  %v2532_v5 = vpop.f32.mrf.mxu1  ;;  %v4774_v6 = vpop.f32.mrf.mxu0 }
0x112e   :  { %2538 = vst.msk [vmem:[#allocation2] sm:$0xff] %vm689_vm1, %v2532_v5 }
0x112f   :  { %v4756_v7 = vpop.f32.mrf.mxu1  ;;  %v2704_v9 = vpop.f32.mrf.mxu0 }
0x1131   :  { %v2535_v10 = vpop.f32.mrf.mxu1  ;;  %v4775_v50 = vpop.f32.mrf.mxu0 }
0x1133   :  { %v4757_v11 = vpop.f32.mrf.mxu1  ;;  %v2816_v12 = vpop.f32.mrf.mxu0 }
0x1134   :  { %v2822_v54 = vsel %vm736_vm3, %v2816_v12, -inf }
0x1135   :  { %v2585_v14 = vpop.f32.mrf.mxu1  ;;  %v4786_v51 = vpop.f32.mrf.mxu0 }
0x1136   :  { %v2591_v16 = vsel %vm736_vm3, %v2585_v14, -inf }
0x1137   :  { %v2819_v17 = vpop.f32.mrf.mxu0  ;;  %2592 = vmax.xlane.f32.xlu0 %v2591_v16  ;;  %v4762_v42 = vpop.f32.mrf.mxu1 }
0x1139   :  { %v2588_v18 = vpop.f32.mrf.mxu1  ;;  %v4787_v19 = vpop.f32.mrf.mxu0 }
0x113b   :  { %v2930_v58 = vpop.f32.mrf.mxu0  ;;  %2823 = vmax.xlane.f32.xlu0 %v2822_v54  ;;  %v4763_v20 = vpop.f32.mrf.mxu1 }
0x113c   :  { %v2936_v21 = vsel %vm736_vm3, %v2930_v58, -inf }
0x113d   :  { %v4798_v13 = vpop.f32.mrf.mxu0 }
0x113f   :  { %v2933_v22 = vpop.f32.mrf.mxu0  ;;  %2937 = vmax.xlane.f32.xlu0 %v2936_v21 }
0x1141   :  { %v4799_v23 = vpop.f32.mrf.mxu0 }
0x1143   :  { %v3041_v24 = vpop.f32.mrf.mxu0 }
0x1144   :  { %v3047_v25 = vsel %vm736_vm3, %v3041_v24, -inf }
0x1145   :  { %v4810_v26 = vpop.f32.mrf.mxu0  ;;  %3048 = vmax.xlane.f32.xlu0 %v3047_v25 }
0x1147   :  { %v3044_v28 = vpop.f32.mrf.mxu0 }
0x1149   :  { %v4811_v8 = vpop.f32.mrf.mxu0 }
0x114b   :  { %v3157_v29 = vpop.f32.mrf.mxu0 }
0x114c   :  { %v3163_v30 = vsel %vm736_vm3, %v3157_v29, -inf }
0x114d   :  { %3164 = vmax.xlane.f32.xlu1 %v3163_v30  ;;  %v4822_v31 = vpop.f32.mrf.mxu0 }
0x114f   :  { %v3160_v32 = vpop.f32.mrf.mxu0 }
0x1151   :  { %v4823_v33 = vpop.f32.mrf.mxu0 }
0x1153   :  { %v3272_v34 = vpop.f32.mrf.mxu0 }
0x1154   :  { %v3278_v35 = vsel %vm736_vm3, %v3272_v34, -inf }
0x1155   :  { %v4834_v36 = vpop.f32.mrf.mxu0  ;;  %3279 = vmax.xlane.f32.xlu0 %v3278_v35 }
0x1157   :  { %v3275_v37 = vpop.f32.mrf.mxu0 }
0x1159   :  { %v4835_v38 = vpop.f32.mrf.mxu0 }
0x11b6   :  { %v2709_v39 = vpop.xlane.xlu1 %2708 }
0x11b7   :  { %v2710_v40 = vsub.f32 %v2701_v2, %v2709_v39 }
0x11b9   :  { %v2711_v41 = vmul.f32 1.442695, %v2710_v40 }
0x11bb   :  { %5199 = vpow2.f32 %v2711_v41 }
0x11c0   :  { %v2593_v44 = vpop.xlane.xlu0 %2592 }
0x11c1   :  { %v2594_v45 = vsub.f32 %v2585_v14, %v2593_v44 }
0x11c3   :  { %v2595_v48 = vmul.f32 1.442695, %v2594_v45 }
0x11c4   :  { %v2824_v46 = vpop.xlane.xlu0 %2823 }
0x11c5   :  { %v2825_v47 = vsub.f32 %v2816_v12, %v2824_v46 }
0x11c7   :  { %v2826_v49 = vmul.f32 1.442695, %v2825_v47 }
0x11c8   :  { %v6342_v52 = vpop.eup %5199  ;;  %v2938_v56 = vpop.xlane.xlu0 %2937 }
0x11c9   :  { %5201 = vpow2.f32 %v2826_v49  ;;  %v2939_v59 = vsub.f32 %v2930_v58, %v2938_v56  ;;  %v2713_v60 = vsel %vm736_vm3, %v6342_v52, 0.0 }
0x11ca   :  { %2714 = vadd.xlane.f32.xlu0 %v2713_v60  ;;  %5203 = vpow2.f32 %v2595_v48 }
0x11cb   :  { %v2940_v61 = vmul.f32 1.442695, %v2939_v59 }
0x11cd   :  { %5205 = vpow2.f32 %v2940_v61 }
0x11ce   :  { %v3049_v0 = vpop.xlane.xlu0 %3048 }
0x11cf   :  { %v3050_v1 = vsub.f32 %v3041_v24, %v3049_v0 }
0x11d1   :  { %v3051_v2 = vmul.f32 1.442695, %v3050_v1 }
0x11d3   :  { %5207 = vpow2.f32 %v3051_v2 }
0x11d6   :  { %v6346_v3 = vpop.eup %5201  ;;  %v3165_v12 = vpop.xlane.xlu1 %3164 }
0x11d7   :  { %v2828_v5 = vsel %vm736_vm3, %v6346_v3, 0.0  ;;  %v5204_v6 = vpop.eup %5203  ;;  %v3166_v14 = vsub.f32 %v3157_v29, %v3165_v12 }
0x11d8   :  { %2829 = vadd.xlane.f32.xlu1 %v2828_v5  ;;  %v2597_v9 = vsel %vm736_vm3, %v5204_v6, 0.0 }
0x11d9   :  { %v3167_v51 = vmul.f32 1.442695, %v3166_v14 }
0x11da   :  { %v6350_v7 = vpop.eup %5205 }
0x11db   :  { %v2942_v10 = vsel %vm736_vm3, %v6350_v7, 0.0  ;;  %5209 = vpow2.f32 %v3167_v51 }
0x11dc   :  { %2598 = vadd.xlane.f32.xlu1 %v2597_v9  ;;  %2943 = vadd.xlane.f32.xlu0 %v2942_v10 }
0x11de   :  { %v3280_v16 = vpop.xlane.xlu0 %3279 }
0x11df   :  { %v3281_v17 = vsub.f32 %v3272_v34, %v3280_v16 }
0x11e0   :  { %v6355_v50 = vpop.eup %5207 }
0x11e1   :  { %v3053_v11 = vsel %vm736_vm3, %v6355_v50, 0.0  ;;  %v3282_v42 = vmul.f32 1.442695, %v3281_v17 }
0x11e2   :  { %3054 = vadd.xlane.f32.xlu0 %v3053_v11 }
0x11e3   :  { %5211 = vpow2.f32 %v3282_v42 }
0x11e8   :  { %v6365_v18 = vpop.eup %5209 }
0x11e9   :  { %v3169_v19 = vsel %vm736_vm3, %v6365_v18, 0.0 }
0x11ed   :  { %2604 = vrot.lane.b32.xlu1 %v6274_v43, %s5754_s2 }
0x11f0   :  { %v6369_v54 = vpop.eup %5211 }
0x11f1   :  { %v3284_v58 = vsel %vm736_vm3, %v6369_v54, 0.0 }
0x11f8   :  { %2719 = vrot.lane.b32.xlu0 %v6274_v43, %s5730_s29 }
0x11fc   :  { %2834 = vrot.lane.b32.xlu0 %v6274_v43, %s5755_s8  ;;  %v2889_v43 = vpack.c.bf16 %v6270_v15, %v6270_v15 }
0x11fe   :  { %v2952_v39 = vsel %vm752_vm2, %v2889_v43, 0 }
0x1211   :  { %3170 = vadd.xlane.f32.xlu1 %v3169_v19 }
0x121b   :  { %3285 = vadd.xlane.f32.xlu0 %v3284_v58 }
0x1222   :  { %3060 = vrot.lane.b32.xlu1 %v2889_v43, %s5754_s2 }
0x1226   :  { %3290 = vrot.lane.b32.xlu1 %v2889_v43, %s5755_s8 }
0x1231   :  { %3175 = vrot.lane.b32.xlu0 %v2889_v43, %s5730_s29 }
0x1253   :  { %v2715_v21 = vpop.xlane.xlu0 %2714 }
0x1261   :  { %v2830_v20 = vpop.xlane.xlu1 %2829 }
0x1265   :  { %v2599_v13 = vpop.xlane.xlu1 %2598  ;;  %v2944_v24 = vpop.xlane.xlu0 %2943 }
0x1266   :  { %5213 = vrcp.f32 %v2599_v13  ;;  %v5081_v13 = vld [vmem:[#allocation23 + $0x28] sm:$0xff]  }
0x1267   :  { %5215 = vrcp.f32 %v2715_v21  ;;  %v5082_v21 = vld [vmem:[#allocation23 + $0x20] sm:$0xff]  }
0x1268   :  { %5217 = vrcp.f32 %v2830_v20  ;;  %v5080_v20 = vld [vmem:[#allocation23 + $0x30] sm:$0xff]  }
0x1269   :  { %v2605_v22 = vpop.permute.xlu1 %2604  ;;  %5219 = vrcp.f32 %v2944_v24 }
0x126a   :  { %v2610_v23 = vsel %vm752_vm2, %v2605_v22, 0 }
0x126b   :  { %4765 = vmatpush3.bf16.msra.mxu1 %v2610_v23  ;;  %v3055_v25 = vpop.xlane.xlu0 %3054  ;;  %v5083_v23 = vld [vmem:[#allocation23 + $0x18] sm:$0xff]  }
0x126c   :  { %4776 = vmatprep.subr.bf16.mxu1 %v5751_v4  ;;  %5221 = vrcp.f32 %v3055_v25 }
0x126f   :  { %v2720_v28 = vpop.permute.xlu0 %2719 }
0x1270   :  { %v2725_v30 = vsel %vm752_vm2, %v2720_v28, 0  ;;  %v5085_v28 = vld [vmem:[#allocation23 + $0x8] sm:$0xff]  }
0x1273   :  { %v5214_v15 = vpop.eup %5213  ;;  %v2835_v32 = vpop.permute.xlu0 %2834 }
0x1274   :  { %v2601_v26 = vmul.f32 %v5214_v15, %v5204_v6  ;;  %v5216_v29 = vpop.eup %5215  ;;  %v2840_v35 = vsel %vm752_vm2, %v2835_v32, 0  ;;  %v5084_v15 = vld [vmem:[#allocation23 + $0x10] sm:$0xff]  }
0x1275   :  { %v2717_v31 = vmul.f32 %v5216_v29, %v6342_v52  ;;  %v5218_v34 = vpop.eup %5217 }
0x1276   :  { %v2602_v8 = vpack.c.bf16 %v2601_v26, %v2601_v26  ;;  %v2832_v36 = vmul.f32 %v5218_v34, %v6346_v3  ;;  %v5220_v38 = vpop.eup %5219 }
0x1277   :  { %v2718_v33 = vpack.c.bf16 %v2717_v31, %v2717_v31  ;;  %v2946_v40 = vmul.f32 %v5220_v38, %v6350_v7 }
0x1278   :  { %4767 = vmatmul.mubr.msk.bf16.vlgmr.msra.gmra.mxu1 %vm736_vm3, %v2602_v8  ;;  %v2833_v37 = vpack.c.bf16 %v2832_v36, %v2832_v36 }
0x1279   :  { %4777 = vmatpush3.bf16.msra.mxu1 %v2725_v30  ;;  %4778 = vmatprep.mubr.msk.bf16.mxu1 %vm5753_vm0, %v5751_v4  ;;  %v2947_v41 = vpack.c.bf16 %v2946_v40, %v2946_v40  ;;  %v5222_v44 = vpop.eup %5221  ;;  %v5086_v30 = vld [vmem:[#allocation23] sm:$0xff]  }
0x127a   :  { %4788 = vmatprep.subr.bf16.mxu1 %v5751_v4  ;;  %v3057_v46 = vmul.f32 %v5222_v44, %v6355_v50  ;;  %v5079_v50 = vld [vmem:[#allocation23 + $0x38] sm:$0xff]  }
0x127b   :  { %4843 = vmatpush3.bf16.msra.mxu0 %v5079_v50 }
0x127c   :  { %v3058_v49 = vpack.c.bf16 %v3057_v46, %v3057_v46  ;;  %4844 = vmatprep.subr.bf16.mxu0 %v5751_v4 }
0x127f   :  { %4845 = vmatpush3.bf16.msra.mxu0 %v5080_v20  ;;  %v5108_v20 = vld [vmem:[#allocation26] ss:$8 sps:$4 sm:$0xff]  }
0x1280   :  { %4779 = vmatmul.mubr.msk.bf16.vlgmr.msra.gmra.mxu1 %vm736_vm3, %v2718_v33  ;;  %4846 = vmatprep.subr.bf16.mxu0 %v5751_v4 }
0x1281   :  { %4789 = vmatpush3.bf16.msra.mxu1 %v2840_v35  ;;  %4790 = vmatprep.mubr.msk.bf16.mxu1 %vm5753_vm0, %v5751_v4 }
0x1282   :  { %4800 = vmatprep.subr.bf16.mxu1 %v5751_v4 }
0x1283   :  { %4847 = vmatpush3.bf16.msra.mxu0 %v5081_v13 }
0x1284   :  { %4848 = vmatprep.subr.bf16.mxu0 %v5751_v4 }
0x1287   :  { %4849 = vmatpush3.bf16.msra.mxu0 %v5082_v21 }
0x1288   :  { %4791 = vmatmul.mubr.msk.bf16.vlgmr.msra.gmra.mxu1 %vm736_vm3, %v2833_v37  ;;  %4850 = vmatprep.subr.bf16.mxu0 %v5751_v4 }
0x1289   :  { %4801 = vmatpush3.bf16.msra.mxu1 %v2952_v39  ;;  %4802 = vmatprep.mubr.msk.bf16.mxu1 %vm5753_vm0, %v5751_v4 }
0x128a   :  { %4812 = vmatprep.subr.bf16.mxu1 %v5751_v4 }
0x128b   :  { %4851 = vmatpush3.bf16.msra.mxu0 %v5083_v23 }
0x128c   :  { %4852 = vmatprep.subr.bf16.mxu0 %v5751_v4 }
0x128f   :  { %4853 = vmatpush3.bf16.msra.mxu0 %v5084_v15 }
0x1290   :  { %4803 = vmatmul.mubr.msk.bf16.vlgmr.msra.gmra.mxu1 %vm736_vm3, %v2947_v41  ;;  %4854 = vmatprep.subr.bf16.mxu0 %v5751_v4 }
0x1291   :  { %4814 = vmatprep.mubr.msk.bf16.mxu1 %vm5753_vm0, %v5751_v4 }
0x1293   :  { %4855 = vmatpush3.bf16.msra.mxu0 %v5085_v28 }
0x1294   :  { %4856 = vmatprep.subr.bf16.mxu0 %v5751_v4 }
0x1297   :  { %4857 = vmatpush3.bf16.msra.mxu0 %v5086_v30 }
0x129a   :  { %v3171_v45 = vpop.xlane.xlu1 %3170 }
0x129b   :  { %5223 = vrcp.f32 %v3171_v45 }
0x129e   :  { %v3061_v47 = vpop.permute.xlu1 %3060 }
0x129f   :  { %v3066_v48 = vsel %vm752_vm2, %v3061_v47, 0 }
0x12a0   :  { %4813 = vmatpush3.bf16.msra.mxu1 %v3066_v48  ;;  %v4364_v48 = vld [vmem:[#allocation24] ss:$0 sm:$0xff] }
0x12a1   :  { %4824 = vmatprep.subr.bf16.mxu1 %v5751_v4 }
0x12a2   :  { %v3291_v0 = vpop.permute.xlu1 %3290 }
0x12a3   :  { %4815 = vmatmul.mubr.msk.bf16.vlgmr.msra.gmra.mxu1 %vm736_vm3, %v3058_v49  ;;  %v3296_v2 = vsel %vm752_vm2, %v3291_v0, 0 }
0x12a4   :  { %v3286_v52 = vpop.xlane.xlu0 %3285  ;;  %4826 = vmatprep.mubr.msk.bf16.mxu1 %vm5753_vm0, %v5751_v4 }
0x12a5   :  { %5225 = vrcp.f32 %v3286_v52 }
0x12a8   :  { %v5224_v56 = vpop.eup %5223  ;;  %v3176_v59 = vpop.permute.xlu0 %3175 }
0x12a9   :  { %v3181_v60 = vsel %vm752_vm2, %v3176_v59, 0  ;;  %v3173_v61 = vmul.f32 %v5224_v56, %v6365_v18 }
0x12aa   :  { %4825 = vmatpush3.bf16.msra.mxu1 %v3181_v60 }
0x12ab   :  { %v3174_v1 = vpack.c.bf16 %v3173_v61, %v3173_v61  ;;  %4836 = vmatprep.subr.bf16.mxu1 %v5751_v4 }
0x12ad   :  { %4827 = vmatmul.mubr.msk.bf16.vlgmr.msra.gmra.mxu1 %vm736_vm3, %v3174_v1 }
0x12ae   :  { %4837 = vmatpush3.bf16.msra.mxu1 %v3296_v2  ;;  %4838 = vmatprep.mubr.msk.bf16.mxu1 %vm5753_vm0, %v5751_v4  ;;  %v5087_v2 = vld [vmem:[#allocation26 + $0x70] ss:$8 sps:$4 sm:$0xff]  }
0x12b2   :  { %v5226_v3 = vpop.eup %5225 }
0x12b3   :  { %v3288_v5 = vmul.f32 %v5226_v3, %v6369_v54  ;;  %v5089_v3 = vld [vmem:[#allocation26 + $0x74] ss:$8 sps:$4 sm:$0xff]  }
0x12b4   :  { %3609 = vmatprep.subr.bf16.mxu1 %v5089_v3 }
0x12b5   :  { %v3289_v6 = vpack.c.bf16 %v3288_v5, %v3288_v5 }
0x12b7   :  { %4839 = vmatmul.mubr.msk.bf16.vlgmr.msra.gmra.mxu1 %vm736_vm3, %v3289_v6 }
0x12b8   :  { %3641 = vmatprep.mubr.bf16.mxu1 %v5752_v27  ;;  %3610 = vmatpush1.bf16.msra.mxu1 %v5087_v2 }
0x1338   :  { %v2646_v7 = vpop.f32.mrf.mxu1 }
0x1339   :  { %2653 = vrot.lane.b32.xlu1 %v2646_v7, %s5755_s8 }
0x133a   :  { %v4768_v9 = vpop.f32.mrf.mxu1 }
0x133c   :  { %v2649_v10 = vpop.f32.mrf.mxu1 }
0x133e   :  { %v4769_v11 = vpop.f32.mrf.mxu1 }
0x1340   :  { %v2761_v12 = vpop.f32.mrf.mxu1 }
0x1341   :  { %2768 = vrot.lane.b32.xlu1 %v2761_v12, %s5730_s29  ;;  %v5092_v12 = vld [vmem:[#allocation26 + $0x64] ss:$8 sps:$4 sm:$0xff]  }
0x1342   :  { %v4780_v14 = vpop.f32.mrf.mxu1  ;;  %3611 = vmatprep.subr.bf16.mxu1 %v5092_v12 }
0x1343   :  { %v5090_v14 = vld [vmem:[#allocation26 + $0x60] ss:$8 sps:$4 sm:$0xff]  }
0x1344   :  { %v2764_v51 = vpop.f32.mrf.mxu1  ;;  %3612 = vmatpush1.bf16.msra.mxu1 %v5090_v14 }
0x1345   :  { %v5093_v51 = vld [vmem:[#allocation26 + $0x50] ss:$8 sps:$4 sm:$0xff]  }
0x1346   :  { %v4781_v16 = vpop.f32.mrf.mxu1 }
0x1347   :  { %v5096_v16 = vld [vmem:[#allocation26 + $0x40] ss:$8 sps:$4 sm:$0xff]  }
0x1348   :  { %v2876_v17 = vpop.f32.mrf.mxu1 }
0x1349   :  { %2883 = vrot.lane.b32.xlu0 %v2876_v17, %s5754_s2  ;;  %v5098_v17 = vld [vmem:[#allocation26 + $0x44] ss:$8 sps:$4 sm:$0xff]  }
0x134a   :  { %v4792_v27 = vpop.f32.mrf.mxu1 }
0x134b   :  { %v5101_v27 = vld [vmem:[#allocation26 + $0x34] ss:$8 sps:$4 sm:$0xff]  }
0x134c   :  { %v2879_v42 = vpop.f32.mrf.mxu1 }
0x134d   :  { %v5099_v42 = vld [vmem:[#allocation26 + $0x30] ss:$8 sps:$4 sm:$0xff]  }
0x134e   :  { %v4793_v18 = vpop.f32.mrf.mxu1 }
0x134f   :  { %v5104_v18 = vld [vmem:[#allocation26 + $0x24] ss:$8 sps:$4 sm:$0xff]  }
0x1350   :  { %v2988_v19 = vpop.f32.mrf.mxu1 }
0x1351   :  { %2994 = vst.msk [vmem:[#allocation2 + $0x8] sm:$0xff] %vm689_vm1, %v2988_v19  ;;  %v5102_v19 = vld [vmem:[#allocation26 + $0x20] ss:$8 sps:$4 sm:$0xff]  }
0x1352   :  { %v4804_v54 = vpop.f32.mrf.mxu1 }
0x1353   :  { %v5107_v54 = vld [vmem:[#allocation26 + $0x14] ss:$8 sps:$4 sm:$0xff]  }
0x1354   :  { %v2991_v58 = vpop.f32.mrf.mxu1 }
0x1355   :  { %v5105_v58 = vld [vmem:[#allocation26 + $0x10] ss:$8 sps:$4 sm:$0xff]  }
0x1356   :  { %v4805_v43 = vpop.f32.mrf.mxu1 }
0x1357   :  { %v5110_v43 = vld [vmem:[#allocation26 + $0x4] ss:$8 sps:$4 sm:$0xff]  }
0x1363   :  { %v3102_v22 = vpop.f32.mrf.mxu1 }
0x1364   :  { %3109 = vrot.lane.b32.xlu1 %v3102_v22, %s5755_s8 }
0x1365   :  { %v4816_v24 = vpop.f32.mrf.mxu1 }
0x1367   :  { %v3105_v25 = vpop.f32.mrf.mxu1 }
0x1369   :  { %v4817_v26 = vpop.f32.mrf.mxu1 }
0x136d   :  { %v3217_v8 = vpop.f32.mrf.mxu1 }
0x136e   :  { %3224 = vrot.lane.b32.xlu1 %v3217_v8, %s5730_s29  ;;  %s6517_s29 = sld [smem:[#allocation55_spill]] }
0x136f   :  { %v4828_v29 = vpop.f32.mrf.mxu1 }
0x1371   :  { %v3220_v31 = vpop.f32.mrf.mxu1 }
0x1372   :  { %v4374_v31 = vld [vmem:[%s6518_s10] ss:$0 sm:$0xff] }
0x1373   :  { %v4829_v32 = vpop.f32.mrf.mxu1 }
0x1374   :  { %v4373_v28 = vld [vmem:[%s6517_s29] ss:$0 sm:$0xff] }
0x1377   :  { %v3332_v33 = vpop.f32.mrf.mxu1 }
0x1378   :  { %3339 = vrot.lane.b32.xlu1 %v3332_v33, %s5754_s2 }
0x1379   :  { %v4840_v34 = vpop.f32.mrf.mxu1 }
0x137b   :  { %v3335_v35 = vpop.f32.mrf.mxu1 }
0x137d   :  { %v4841_v36 = vpop.f32.mrf.mxu1 }
0x137e   :  { %v5111_v36 = vld [vmem:[#allocation29 + $0x78] sm:$0xff]  }
0x137f   :  { %4550 = vmatprep.subr.bf16.mxu0 %v5111_v36 }
0x13ab   :  { %v2654_v37 = vpop.permute.xlu1 %2653 }
0x13ac   :  { %2656 = vst.msk [vmem:[#allocation2] sm:$0xff] %vm914_vm4, %v2654_v37  ;;  %v5112_v37 = vld [vmem:[#allocation29 + $0x38] sm:$0xff]  }
0x13b3   :  { %v2769_v38 = vpop.permute.xlu1 %2768 }
0x13b4   :  { %2771 = vst.msk [vmem:[#allocation2] sm:$0xff] %vm1030_vm5, %v2769_v38  ;;  %v5113_v38 = vld [vmem:[#allocation29 + $0x70] sm:$0xff]  }
0x13bb   :  { %v2884_v39 = vpop.permute.xlu0 %2883 }
0x13bc   :  { %2886 = vst.msk [vmem:[#allocation2] sm:$0xff] %vm1146_vm6, %v2884_v39  ;;  %v5114_v39 = vld [vmem:[#allocation29 + $0x30] sm:$0xff]  }
0x13c3   :  { %v3343_v45 = vld [vmem:[#allocation2] sm:$0xff] }
0x13d6   :  { %v3110_v40 = vpop.permute.xlu1 %3109 }
0x13d7   :  { %3112 = vst.msk [vmem:[#allocation2 + $0x8] sm:$0xff] %vm914_vm4, %v3110_v40  ;;  %v5115_v40 = vld [vmem:[#allocation29 + $0x68] sm:$0xff]  }
0x13e0   :  { %v3225_v41 = vpop.permute.xlu1 %3224 }
0x13e1   :  { %3227 = vst.msk [vmem:[#allocation2 + $0x8] sm:$0xff] %vm1030_vm5, %v3225_v41  ;;  %v5116_v41 = vld [vmem:[#allocation29 + $0x28] sm:$0xff]  }
0x13ea   :  { %v3340_v44 = vpop.permute.xlu1 %3339 }
0x13eb   :  { %3342 = vst.msk [vmem:[#allocation2 + $0x8] sm:$0xff] %vm1146_vm6, %v3340_v44  ;;  %v5117_v44 = vld [vmem:[#allocation29 + $0x60] sm:$0xff]  }
0x13f2   :  { %v3344_v46 = vld [vmem:[#allocation2 + $0x8] sm:$0xff] }
0x13f3   :  { %v3345_v47 = vpack.c.bf16 %v3344_v46, %v3343_v45  ;;  %v5118_v45 = vld [vmem:[#allocation29 + $0x20] sm:$0xff]   ;;  %v5119_v46 = vld [vmem:[#allocation29 + $0x58] sm:$0xff]  }
0x13f5   :  { %4859 = vmatmul.mubr.bf16.vlgmr.msra.gmra.mxu0 %v3345_v47  ;;  %v5120_v47 = vld [vmem:[#allocation29 + $0x18] sm:$0xff]  }
0x13f6   :  { %4551 = vmatpush3.bf16.msra.mxu0 %v5112_v37 }
0x13f7   :  { %4552 = vmatprep.subr.bf16.mxu0 %v5113_v38 }
0x13fa   :  { %4553 = vmatpush3.bf16.msra.mxu0 %v5114_v39 }
0x13fb   :  { %4554 = vmatprep.subr.bf16.mxu0 %v5115_v40 }
0x13fe   :  { %4555 = vmatpush3.bf16.msra.mxu0 %v5116_v41 }
0x13ff   :  { %4556 = vmatprep.subr.bf16.mxu0 %v5117_v44  ;;  %v4391_v44 = vld [vmem:[#allocation30] ss:$0 sm:$0xff] }
0x1402   :  { %4557 = vmatpush3.bf16.msra.mxu0 %v5118_v45 }
0x1403   :  { %4558 = vmatprep.subr.bf16.mxu0 %v5119_v46 }
0x1406   :  { %4559 = vmatpush3.bf16.msra.mxu0 %v5120_v47 }
0x14b5   :  { %v3451_v49 = vpop.f32.mrf.mxu0 }
0x14b6   :  { %v3452_v52 = vadd.f32 %v4364_v48, %v3451_v49  ;;  %v5122_v49 = vld [vmem:[#allocation29 + $0x10] sm:$0xff]  }
0x14b7   :  { %v4860_v56 = vpop.f32.mrf.mxu0 }
0x14b8   :  { %v3458_v59 = vadd.f32 %v3452_v52, %v6255_v62  ;;  %v5123_v52 = vld [vmem:[#allocation29 + $0x48] sm:$0xff]  }
0x14b9   :  { %v3454_v60 = vpop.f32.mrf.mxu0  ;;  %v5124_v56 = vld [vmem:[#allocation29 + $0x8] sm:$0xff]  }
0x14ba   :  { %v3455_v61 = vadd.f32 %v4364_v48, %v3454_v60  ;;  %3462 = vadd.xlane.f32.xlu0 %v3458_v59  ;;  %v5121_v48 = vld [vmem:[#allocation29 + $0x50] sm:$0xff]   ;;  %v5126_v60 = vld [vmem:[#allocation29] sm:$0xff]  }
0x14bb   :  { %v4861_v0 = vpop.f32.mrf.mxu0  ;;  %4560 = vmatprep.subr.bf16.mxu0 %v5121_v48 }
0x14bc   :  { %v3459_v1 = vadd.f32 %v3455_v61, %v6257_v63  ;;  %v5095_v63 = vld [vmem:[#allocation26 + $0x54] ss:$8 sps:$4 sm:$0xff]   ;;  %4561 = vmatpush3.bf16.msra.mxu0 %v5122_v49  ;;  %v3517_v61 = vld [vmem:[#allocation27] sm:$0x3] }
0x14bd   :  { %3613 = vmatprep.subr.bf16.mxu1 %v5095_v63  ;;  %4562 = vmatprep.subr.bf16.mxu0 %v5123_v52  ;;  %v3522_v0 = vrot.slane %v3517_v61, %v6030_v57 }
0x14be   :  { %3464 = vadd.xlane.f32.xlu1 %v3459_v1  ;;  %3614 = vmatpush1.bf16.msra.mxu1 %v5093_v51 }
0x14bf   :  { %3615 = vmatprep.subr.bf16.mxu1 %v5098_v17 }
0x14c0   :  { %4563 = vmatpush3.bf16.msra.mxu0 %v5124_v56 }
0x14c2   :  { %3616 = vmatpush1.bf16.msra.mxu1 %v5096_v16 }
0x14c3   :  { %3617 = vmatprep.subr.bf16.mxu1 %v5101_v27 }
0x14c6   :  { %3618 = vmatpush1.bf16.msra.mxu1 %v5099_v42 }
0x14c7   :  { %3619 = vmatprep.subr.bf16.mxu1 %v5104_v18 }
0x14ca   :  { %3620 = vmatpush1.bf16.msra.mxu1 %v5102_v19 }
0x14cb   :  { %3621 = vmatprep.subr.bf16.mxu1 %v5107_v54 }
0x14ce   :  { %3622 = vmatpush1.bf16.msra.mxu1 %v5105_v58 }
0x14cf   :  { %3623 = vmatprep.subr.bf16.mxu1 %v5110_v43 }
0x14d2   :  { %3624 = vmatpush1.bf16.msra.mxu1 %v5108_v20 }
0x14d3   :  { %4862 = vmatprep.subr.bf16.mxu1 %v5751_v4 }
0x1543   :  { %v3463_v5 = vpop.xlane.xlu0 %3462 }
0x1544   :  { %v3466_v6 = vmul.f32 0.0078125, %v3463_v5 }
0x1546   :  { %v3468_v7 = vsub.f32 %v3458_v59, %v3466_v6  ;;  %v5125_v59 = vld [vmem:[#allocation29 + $0x40] sm:$0xff]  }
0x1547   :  { %v3465_v9 = vpop.xlane.xlu1 %3464  ;;  %4564 = vmatprep.subr.bf16.mxu0 %v5125_v59 }
0x1548   :  { %v3467_v10 = vmul.f32 0.0078125, %v3465_v9  ;;  %v3470_v50 = vmul.f32 %v3468_v7, %v3468_v7  ;;  %4565 = vmatpush3.bf16.msra.mxu0 %v5126_v60 }
0x1549   :  { %4882 = vmatprep.subr.bf16.mxu0 %v5751_v4 }
0x154a   :  { %v3469_v11 = vsub.f32 %v3459_v1, %v3467_v10  ;;  %3472 = vadd.xlane.f32.xlu0 %v3470_v50  ;;  %v3526_v1 = vrot.slane %v3517_v61, %v6027_v55 }
0x154c   :  { %v3471_v62 = vmul.f32 %v3469_v11, %v3469_v11 }
0x154e   :  { %3474 = vadd.xlane.f32.xlu0 %v3471_v62 }
0x15d3   :  { %v3473_v13 = vpop.xlane.xlu0 %3472 }
0x15d4   :  { %v3476_v21 = vmul.f32 0.0078125, %v3473_v13 }
0x15d6   :  { %v3478_v22 = vadd.f32 1e-12, %v3476_v21 }
0x15d7   :  { %v3475_v23 = vpop.xlane.xlu0 %3474 }
0x15d8   :  { %5227 = vrsqrt.f32 %v3478_v22  ;;  %v3477_v24 = vmul.f32 0.0078125, %v3475_v23 }
0x15da   :  { %v3479_v25 = vadd.f32 1e-12, %v3477_v24 }
0x15dc   :  { %5229 = vrsqrt.f32 %v3479_v25 }
0x15e5   :  { %v5228_v15 = vpop.eup %5227 }
0x15e6   :  { %v3482_v26 = vmul.f32 %v5228_v15, %v3468_v7 }
0x15e8   :  { %v3490_v30 = vmul.f32 %v4373_v28, %v3482_v26 }
0x15e9   :  { %v5230_v8 = vpop.eup %5229 }
0x15ea   :  { %v3483_v29 = vmul.f32 %v5230_v8, %v3469_v11  ;;  %v6442_v33 = vadd.f32 %v4374_v31, %v3490_v30 }
0x15ec   :  { %v3491_v32 = vmul.f32 %v4373_v28, %v3483_v29 }
0x15ee   :  { %v6444_v34 = vadd.f32 %v4374_v31, %v3491_v32 }
0x15f0   :  { %v3500_v35 = vpack.c.bf16 %v6444_v34, %v6442_v33 }
0x15f2   :  { %3642 = vmatmul.mubr.bf16.vlgmr.msra.gmra.mxu1 %v3500_v35 }
0x15f3   :  { %4878 = vmatprep.mubr.msk.bf16.mxu1 %vm5753_vm0, %v5751_v4 }
0x16b2   :  { %v3643_v2 = vpop.f32.mrf.mxu1 }
0x16b3   :  { %v3644_v3 = vadd.f32 %v3643_v2, %v3522_v0 }
0x16b4   :  { %v3645_v5 = vpop.f32.mrf.mxu1 }
0x16b5   :  { %v3656_v6 = vmul.f32 0.044715, %v3644_v3  ;;  %v3646_v7 = vadd.f32 %v3645_v5, %v3526_v1  ;;  %v3652_v32 = vmul.f32 0.5, %v3644_v3 }
0x16b6   :  { %v3647_v9 = vpop.f32.mrf.mxu1 }
0x16b7   :  { %v3660_v10 = vmul.f32 %v3656_v6, %v3644_v3  ;;  %v3657_v50 = vmul.f32 0.044715, %v3646_v7  ;;  %v3648_v11 = vadd.f32 %v3647_v9, %v3522_v0  ;;  %v3653_v29 = vmul.f32 0.5, %v3646_v7  ;;  %v5127_v9 = vld [vmem:[#allocation32 + $0x38] sm:$0xff]  }
0x16b8   :  { %v3649_v62 = vpop.f32.mrf.mxu1  ;;  %4863 = vmatpush3.bf16.msra.mxu1 %v5127_v9 }
0x16b9   :  { %v3664_v12 = vmul.f32 %v3660_v10, %v3644_v3  ;;  %v3661_v14 = vmul.f32 %v3657_v50, %v3646_v7  ;;  %v3658_v63 = vmul.f32 0.044715, %v3648_v11  ;;  %v3650_v51 = vadd.f32 %v3649_v62, %v3526_v1  ;;  %4864 = vmatprep.subr.bf16.mxu1 %v5751_v4  ;;  %v5130_v10 = vld [vmem:[#allocation32 + $0x20] sm:$0xff]   ;;  %v5131_v50 = vld [vmem:[#allocation32 + $0x18] sm:$0xff]   ;;  %v5133_v62 = vld [vmem:[#allocation32 + $0x8] sm:$0xff]  }
0x16ba   :  { %v3654_v28 = vmul.f32 0.5, %v3648_v11 }
0x16bb   :  { %v3668_v16 = vadd.f32 %v3664_v12, %v3644_v3  ;;  %v3665_v17 = vmul.f32 %v3661_v14, %v3646_v7  ;;  %v3662_v27 = vmul.f32 %v3658_v63, %v3648_v11  ;;  %v3659_v57 = vmul.f32 0.044715, %v3650_v51  ;;  %v5134_v12 = vld [vmem:[#allocation32] sm:$0xff]   ;;  %v5135_v14 = vld [vmem:[%s5910_s17 + $0x38] sm:$0xff]  }
0x16bc   :  { %v3655_v30 = vmul.f32 0.5, %v3650_v51  ;;  %v5136_v63 = vld [vmem:[%s5910_s17 + $0x30] sm:$0xff]  }
0x16bd   :  { %v3666_v42 = vmul.f32 %v3662_v27, %v3648_v11  ;;  %v3663_v55 = vmul.f32 %v3659_v57, %v3650_v51  ;;  %v3669_v18 = vadd.f32 %v3665_v17, %v3646_v7  ;;  %v3672_v19 = vmul.f32 0.7978846, %v3668_v16 }
0x16bf   :  { %v3670_v54 = vadd.f32 %v3666_v42, %v3648_v11  ;;  %v3667_v58 = vmul.f32 %v3663_v55, %v3650_v51  ;;  %v3673_v43 = vmul.f32 0.7978846, %v3669_v18  ;;  %v5132_v11 = vld [vmem:[#allocation32 + $0x10] sm:$0xff]  }
0x16c1   :  { %v3674_v20 = vmul.f32 0.7978846, %v3670_v54  ;;  %v3671_v13 = vadd.f32 %v3667_v58, %v3650_v51  ;;  %5231 = vtanh.f32 %v3673_v43  ;;  %v5137_v51 = vld [vmem:[%s5910_s17 + $0x28] sm:$0xff]  }
0x16c2   :  { %5233 = vtanh.f32 %v3672_v19  ;;  %v4408_v19 = vld [vmem:[%s6519_s30] ss:$0 sm:$0xff] }
0x16c3   :  { %5235 = vtanh.f32 %v3674_v20  ;;  %v3675_v21 = vmul.f32 0.7978846, %v3671_v13  ;;  %v4409_v20 = vld [vmem:[%s6520_s14] ss:$0 sm:$0xff] }
0x16c5   :  { %5237 = vtanh.f32 %v3675_v21 }
0x16ce   :  { %v5232_v22 = vpop.eup %5231 }
0x16cf   :  { %v5234_v23 = vpop.eup %5233  ;;  %v3681_v25 = vadd.f32 1.0, %v5232_v22 }
0x16d0   :  { %v5236_v24 = vpop.eup %5235  ;;  %v3680_v8 = vadd.f32 1.0, %v5234_v23 }
0x16d1   :  { %v3682_v15 = vadd.f32 1.0, %v5236_v24  ;;  %v3685_v36 = vmul.f32 %v3681_v25, %v3653_v29 }
0x16d2   :  { %v5238_v26 = vpop.eup %5237  ;;  %v3684_v38 = vmul.f32 %v3680_v8, %v3652_v32  ;;  %v5140_v32 = vld [vmem:[%s5910_s17 + $0x10] sm:$0xff]  }
0x16d3   :  { %v3683_v31 = vadd.f32 1.0, %v5238_v26  ;;  %v3686_v35 = vmul.f32 %v3682_v15, %v3654_v28 }
0x16d5   :  { %v3687_v37 = vmul.f32 %v3683_v31, %v3655_v30  ;;  %v3688_v40 = vpack.c.bf16 %v3686_v35, %v3684_v38  ;;  %v5138_v30 = vld [vmem:[%s5910_s17 + $0x20] sm:$0xff]   ;;  %v5139_v31 = vld [vmem:[%s5910_s17 + $0x18] sm:$0xff]   ;;  %v5141_v35 = vld [vmem:[%s5910_s17 + $0x8] sm:$0xff]  }
0x16d7   :  { %v3689_v39 = vpack.c.bf16 %v3687_v37, %v3685_v36  ;;  %v5142_v36 = vld [vmem:[%s5910_s17] sm:$0xff]  }
0x16d8   :  { %v4410_v37 = vld [vmem:[%s6521_s11] ss:$0 sm:$0xff] }
0x16d9   :  { %3857 = vmatprep.mubr.bf16.mxu0 %v3689_v39 }
0x16da   :  { %3858 = vmatmul.mubr.bf16.vlgmr.msra.gmra.mxu0 %v3688_v40 }
0x16db   :  { %4898 = vmatprep.mubr.msk.bf16.mxu0 %vm5753_vm0, %v5751_v4  ;;  %4883 = vmatpush3.bf16.msra.mxu0 %v5135_v14 }
0x16dc   :  { %4884 = vmatprep.subr.bf16.mxu0 %v5751_v4 }
0x16df   :  { %4885 = vmatpush3.bf16.msra.mxu0 %v5136_v63 }
0x16e0   :  { %4886 = vmatprep.subr.bf16.mxu0 %v5751_v4 }
0x16e3   :  { %4887 = vmatpush3.bf16.msra.mxu0 %v5137_v51 }
0x16e4   :  { %4888 = vmatprep.subr.bf16.mxu0 %v5751_v4 }
0x16e7   :  { %4889 = vmatpush3.bf16.msra.mxu0 %v5138_v30 }
0x16e8   :  { %4890 = vmatprep.subr.bf16.mxu0 %v5751_v4 }
0x16eb   :  { %4891 = vmatpush3.bf16.msra.mxu0 %v5139_v31 }
0x16ec   :  { %4892 = vmatprep.subr.bf16.mxu0 %v5751_v4 }
0x16ef   :  { %4893 = vmatpush3.bf16.msra.mxu0 %v5140_v32 }
0x16f0   :  { %4894 = vmatprep.subr.bf16.mxu0 %v5751_v4 }
0x16f3   :  { %4895 = vmatpush3.bf16.msra.mxu0 %v5141_v35 }
0x16f4   :  { %4896 = vmatprep.subr.bf16.mxu0 %v5751_v4 }
0x16f7   :  { %4897 = vmatpush3.bf16.msra.mxu0 %v5142_v36 }
0x179a   :  { %v4566_v41 = vpop.f32.mrf.mxu0 }
0x179c   :  { %v4567_v45 = vpop.f32.mrf.mxu0 }
0x179d   :  { %v4568_v46 = vadd.f32 %v4567_v45, %v4566_v41 }
0x179e   :  { %v4569_v47 = vpop.f32.mrf.mxu0 }
0x179f   :  { %v3860_v48 = vadd.f32 %v4568_v46, %v4391_v44 }
0x17a0   :  { %v4570_v49 = vpop.f32.mrf.mxu0 }
0x17a1   :  { %v4571_v52 = vadd.f32 %v4570_v49, %v4569_v47  ;;  %v3866_v56 = vadd.f32 %v3860_v48, %v6442_v33  ;;  %v5128_v33 = vld [vmem:[#allocation32 + $0x30] sm:$0xff]   ;;  %v4419_v47 = vld [vmem:[#allocation33] ss:$0 sm:$0xff] }
0x17a2   :  { %4865 = vmatpush3.bf16.msra.mxu1 %v5128_v33 }
0x17a3   :  { %v3863_v59 = vadd.f32 %v4571_v52, %v4391_v44  ;;  %3870 = vadd.xlane.f32.xlu1 %v3866_v56  ;;  %4866 = vmatprep.subr.bf16.mxu1 %v5751_v4 }
0x17a5   :  { %v3867_v60 = vadd.f32 %v3863_v59, %v6444_v34  ;;  %v5129_v34 = vld [vmem:[#allocation32 + $0x28] sm:$0xff]  }
0x17a6   :  { %4867 = vmatpush3.bf16.msra.mxu1 %v5129_v34 }
0x17a7   :  { %3872 = vadd.xlane.f32.xlu0 %v3867_v60  ;;  %4868 = vmatprep.subr.bf16.mxu1 %v5751_v4 }
0x17aa   :  { %4869 = vmatpush3.bf16.msra.mxu1 %v5130_v10 }
0x17ab   :  { %4870 = vmatprep.subr.bf16.mxu1 %v5751_v4 }
0x17ae   :  { %4871 = vmatpush3.bf16.msra.mxu1 %v5131_v50 }
0x17af   :  { %4872 = vmatprep.subr.bf16.mxu1 %v5751_v4 }
0x17b2   :  { %4873 = vmatpush3.bf16.msra.mxu1 %v5132_v11 }
0x17b3   :  { %4874 = vmatprep.subr.bf16.mxu1 %v5751_v4 }
0x17b6   :  { %4875 = vmatpush3.bf16.msra.mxu1 %v5133_v62 }
0x17b7   :  { %4876 = vmatprep.subr.bf16.mxu1 %v5751_v4 }
0x17ba   :  { %4877 = vmatpush3.bf16.msra.mxu1 %v5134_v12 }
0x182c   :  { %v3871_v61 = vpop.xlane.xlu1 %3870 }
0x182d   :  { %v3874_v0 = vmul.f32 0.0078125, %v3871_v61 }
0x182f   :  { %v3876_v1 = vsub.f32 %v3866_v56, %v3874_v0 }
0x1830   :  { %v3873_v2 = vpop.xlane.xlu0 %3872 }
0x1831   :  { %v3875_v3 = vmul.f32 0.0078125, %v3873_v2  ;;  %v3878_v5 = vmul.f32 %v3876_v1, %v3876_v1 }
0x1833   :  { %v3877_v6 = vsub.f32 %v3867_v60, %v3875_v3  ;;  %3880 = vadd.xlane.f32.xlu1 %v3878_v5  ;;  %v4158_v60 = vld [vmem:[%s5920_s9] sm:$0x3]  ;;  %s5756_s9 = smov [#allocation35]  }
0x1834   :  { %s4185_s17 = sshll.u32 %s5756_s9, 4  ;;  %s4186_s17 = int_to_ptr.vmem [resolvable:$true] %s4185_s17 }
0x1835   :  { %v3879_v7 = vmul.f32 %v3877_v6, %v3877_v6  ;;  %s5649_s5 = scalar_lea.vmem %s4186_s17, 16  ;;  %s5653_s15 = scalar_lea.vmem %s4186_s17, 32 }
0x1836   :  { %p5650_p2 = scmp.ne.s32.totalorder %s4186_s17, %s5649_s5  ;;  %p5654_p3 = scmp.lt.s32.totalorder %s4186_s17, %s4186_s17 }
0x1837   :  { %3882 = vadd.xlane.f32.xlu0 %v3879_v7  ;;  %p5655_p4 = scmp.lt.s32.totalorder %s5653_s15, %s5649_s5 }
0x1839   :  { %p5656_p5 = por %p5655_p4, %p5654_p3 }
0x183b   :  { %p5657_p6 = pnand %p5656_p5, %p5650_p2 }
0x18bc   :  { %v3881_v16 = vpop.xlane.xlu1 %3880 }
0x18bd   :  { %v3884_v17 = vmul.f32 0.0078125, %v3881_v16 }
0x18bf   :  { %v3886_v27 = vadd.f32 1e-12, %v3884_v17 }
0x18c0   :  { %v3883_v57 = vpop.xlane.xlu0 %3882 }
0x18c1   :  { %5239 = vrsqrt.f32 %v3886_v27  ;;  %v3885_v42 = vmul.f32 0.0078125, %v3883_v57 }
0x18c3   :  { %v3887_v55 = vadd.f32 1e-12, %v3885_v42 }
0x18c5   :  { %5241 = vrsqrt.f32 %v3887_v55 }
0x18ce   :  { %v5240_v18 = vpop.eup %5239 }
0x18cf   :  { %v3890_v54 = vmul.f32 %v5240_v18, %v3876_v1 }
0x18d1   :  { %v3898_v58 = vmul.f32 %v4408_v19, %v3890_v54 }
0x18d2   :  { %v5242_v43 = vpop.eup %5241 }
0x18d3   :  { %v3891_v13 = vmul.f32 %v5242_v43, %v3877_v6  ;;  %v3906_v22 = vadd.f32 %v4409_v20, %v3898_v58  ;;  %v4157_v6 = vand.u32 127, %v459_v53 }
0x18d5   :  { %v3899_v21 = vmul.f32 %v4408_v19, %v3891_v13  ;;  %v3908_v24 = vpack.c.bf16 %v3906_v22, %v3906_v22 }
0x18d7   :  { %v3907_v23 = vadd.f32 %v4409_v20, %v3899_v21  ;;  %v3935_v26 = vunpack.c.l.b16 %v3908_v24 }
0x18d9   :  { %v3909_v25 = vpack.c.bf16 %v3907_v23, %v3907_v23 }
0x18db   :  { %v3936_v15 = vunpack.c.l.b16 %v3909_v25 }
0x18dd   :  { %v3937_v28 = vrot.slane %v3936_v15, 7 }
0x18df   :  { %v3939_v8 = vsel %vm3938_vm7, %v3937_v28, %v3935_v26 }
0x18e0   :  { %v3940_v29 = vpack.c.b16 %v3939_v8, %v3939_v8 }
0x18e2   :  { %4879 = vmatmul.mubr.bf16.vlgmr.msra.gmra.mxu1 %v3940_v29 }
0x19a2   :  { %v4024_v38 = vpop.f32.mrf.mxu1 }
0x19a3   :  { %v4025_v39 = vadd.f32 %v4410_v37, %v4024_v38 }
0x19a4   :  { %v4880_v40 = vpop.f32.mrf.mxu1 }
0x19a5   :  { %5243 = vtanh.f32 %v4025_v39 }
0x19a6   :  { %v4027_v41 = vpop.f32.mrf.mxu1 }
0x19a8   :  { %v4881_v44 = vpop.f32.mrf.mxu1 }
0x19b2   :  { %v5244_v45 = vpop.eup %5243 }
0x19b3   :  { %v4031_v46 = vpack.c.bf16 %v5244_v45, %v5244_v45 }
0x19b5   :  { %4899 = vmatmul.mubr.bf16.vlgmr.msra.gmra.mxu0 %v4031_v46 }
0x1a75   :  { %v4137_v48 = vpop.f32.mrf.mxu0 }
0x1a76   :  { %v4138_v49 = vadd.f32 %v4419_v47, %v4137_v48 }
0x1a77   :  { %v4900_v52 = vpop.f32.mrf.mxu0 }
0x1a78   :  { %v4144_v4 = vsel %vm4143_vm8, %v4138_v49, -inf }
0x1a79   :  { %4145 = vmax.xlane.f32.xlu0 %v4144_v4  ;;  %v4140_v56 = vpop.f32.mrf.mxu0 }
0x1a7b   :  { %v4901_v59 = vpop.f32.mrf.mxu0 }
0x1a8f   :  { %4160 = vperm.xlu0 %4966, %v4158_v60  }
0x1b02   :  { %v4146_v61 = vpop.xlane.xlu0 %4145 }
0x1b03   :  { %v4147_v0 = vsub.f32 %v4138_v49, %v4146_v61 }
0x1b05   :  { %v4148_v1 = vmul.f32 1.442695, %v4147_v0 }
0x1b07   :  { %5245 = vpow2.f32 %v4148_v1 }
0x1b0a   :  { %v4161_v7 = vpop.permute.xlu0 %4160 }
0x1b0b   :  { %vm4162_vm9 = vcmp.eq.s32.totalorder %v4157_v6, %v4161_v7 }
0x1b14   :  { %v5246_v2 = vpop.eup %5245 }
0x1b15   :  { %v4150_v3 = vsel %vm4143_vm8, %v5246_v2, 0.0 }
0x1b16   :  { %4151 = vadd.xlane.f32.xlu1 %v4150_v3 }
0x1b9f   :  { %v4152_v5 = vpop.xlane.xlu1 %4151 }
0x1ba0   :  { %5247 = vlog2.f32 %v4152_v5 }
0x1bad   :  { %v5248_v9 = vpop.eup %5247 }
0x1bae   :  { %v4154_v33 = vmul.f32 0.6931472, %v5248_v9 }
0x1bb0   :  { %v4155_v34 = vsub.f32 %v4147_v0, %v4154_v33 }
0x1bb2   :  { %v4163_v10 = vsel %vm4162_vm9, %v4155_v34, 0.0 }
0x1bb3   :  { %v4164_v50 = vsel %vm4143_vm8, %v4163_v10, 0.0 }
0x1bb4   :  { %4165 = vadd.xlane.f32.xlu1 %v4164_v50 }
0x1c3d   :  { %v4166_v11 = vpop.xlane.xlu1 %4165 }
0x1c3e   :  { %v4167_v62 = vsub.f32 0.0, %v4166_v11 }
0x1c40   :  { %v4169_v12 = vsel %vm4168_vm10, %v4167_v62, 0.0 }
0x1c41   :  { %v4170_v14 = vrot.slane %v4169_v12, 4 }
0x1c43   :  { %v4171_v63 = vadd.f32 %v4170_v14, %v4169_v12 }
0x1c45   :  { %v4172_v51 = vrot.slane %v4171_v63, 2 }
0x1c47   :  { %v4173_v16 = vadd.f32 %v4172_v51, %v4171_v63 }
0x1c49   :  { %v4174_v17 = vrot.slane %v4173_v16, 1 }
0x1c4b   :  { %v4175_v53 = vadd.f32 %v4174_v17, %v4173_v16 }
0x1c4d   :  { %v4176_v27 = vmul.f32 0.5, %v4175_v53 }
0x1c4f   :  { %4178 = vst.msk [vmem:[#allocation35] sm:$0x1] %vm4177_vm11, %v4176_v27 }
0x1c50   :  { %5660 = shalt.err (!%p5657_p6)
}
0x1c51   :  { %4188 = dma.vmem_to_hbm [thread:$0]  %s4186_s17, 16, %s5925_s12, [#allocation5]  }
0x1c52   :  { %5691 = dma.done.wait [#allocation5], 16  }
0x1c53   :  { %5692 = vsyncadd [#allocation5], 4294967280 }
0x1c54   :  { %4192 = vsyncpa [#allocation4], 1 }
0x1c55   :  { %4193 = vsyncpa [#allocation7], 1 }
0x1c56   :  { %4194 = vsyncpa [#allocation10], 1 }
0x1c57   :  { %4195 = vsyncpa [#allocation13], 1 }
0x1c58   :  { %4196 = vsyncpa [#allocation16], 1 }
0x1c59   :  { %4197 = vsyncpa [#allocation19], 1 }
0x1c5a   :  { %4198 = vsyncpa [#allocation22], 1 }
0x1c5b   :  { %4199 = vsyncpa [#allocation25], 1 }
0x1c5c   :  { %4200 = vsyncpa [#allocation28], 1 }
0x1c5d   :  { %4201 = vsyncpa [#allocation31], 1 }
0x1c5e   :  { %4202 = vsyncpa [#allocation34], 1 }
0x1c5f   :  { %4203 = vsyncpa [#allocation5], 1 }

</bundles_post_ra>
